<compile_context>
chip_gen: v6e
topology: v6e:2x2x1
jax: 0.10.0
libtpu: 0.0.40
codegen_flags: <defaults>
</compile_context>

<pallas_src>
import functools

import jax
import jax.numpy as jnp
from jax import lax
from jax.experimental import pallas as pl
from jax.experimental.pallas import tpu as pltpu


def _wevade_kernel(x_ref, tgt_ref, w_ref, b_ref, out_ref, *,
                   max_iter, lr, xi, epsilon, msg_len):
    # x_ref   : (TM, D) f32   image tile (flattened, values in [0, 1])
    # tgt_ref : (TM, L) f32   target messages (0/1)
    # w_ref   : (D, L)  bf16  linear decoder weight (resident in VMEM)
    # b_ref   : (1, L)  f32   linear decoder bias   (resident in VMEM)
    # out_ref : (TM, D) f32   attacked image tile
    orig = x_ref[...]                      # (TM, D)
    target = tgt_ref[...]                  # (TM, L)

    step_scale = jnp.float32(lr * 2.0 / msg_len)   # lr * dMSE/ddecoded scale
    acc_thresh = jnp.float32(1.0 - epsilon)
    xi_f = jnp.float32(xi)
    inv_len = jnp.float32(1.0 / msg_len)

    # contract diff's L with W's L  ->  (TM, D)  (A @ W^T, MXU-native)
    trans_b_dims = (((1,), (1,)), ((), ()))

    def decode(x):                         # (TM, D) -> (TM, L), f32 accum
        return jnp.dot(x.astype(jnp.bfloat16), w_ref[...],
                       preferred_element_type=jnp.float32) + b_ref[...]

    def cond(carry):
        i, _x, _dec, done = carry
        return jnp.logical_and(i < max_iter, jnp.min(done) < 0.5)

    def body(carry):
        i, x, decoded, done = carry
        # per-image min/max at start of iteration (torch.min / torch.max)
        min_v = jnp.min(x, axis=-1, keepdims=True)        # (TM, 1)
        max_v = jnp.max(x, axis=-1, keepdims=True)

        # analytic gradient of MSE loss wrt the image (decoded is carried).
        # The lr*2/L scale and the per-row freeze mask are folded into the
        # small (TM, L) operand, so no extra (TM, D)-wide multiplies/selects.
        diff = (decoded - target) * ((1.0 - done) * step_scale)   # (TM, L)
        step = lax.dot_general(diff.astype(jnp.bfloat16), w_ref[...],
                               trans_b_dims,
                               preferred_element_type=jnp.float32)  # (TM, D)

        # gradient step + clamp to the iteration's per-image [min, max]
        x_new = jnp.clip(x - step, min_v, max_v)

        # L-inf projection onto the xi-ball around the original image.
        # Exact divide (per-row scalar) keeps converged rows exactly fixed.
        delta = x_new - orig
        pert = jnp.max(jnp.abs(delta), axis=-1, keepdims=True)   # (TM, 1)
        c = jnp.where(pert > xi_f, xi_f / pert, jnp.float32(1.0))
        x_new = jnp.clip(orig + c * delta, 0.0, 1.0)

        # decode the projected image once; reused as next iteration's input
        decoded_new = decode(x_new)                       # (TM, L)
        decoded_r = jnp.clip(jnp.round(decoded_new), 0.0, 1.0)
        acc = 1.0 - jnp.sum(jnp.abs(decoded_r - target),
                            axis=-1, keepdims=True) * inv_len   # (TM, 1)

        done_new = jnp.maximum(done, (acc >= acc_thresh).astype(jnp.float32))
        return (i + 1, x_new, decoded_new, done_new)

    tm = orig.shape[0]
    init = (jnp.int32(0), orig, decode(orig),
            jnp.zeros((tm, 1), jnp.float32))
    _, x_final, _, _ = lax.while_loop(cond, body, init)
    out_ref[...] = x_final


def wevade_attack(images, targets, w_dec, b_dec, *,
                  max_iter, lr, xi, epsilon, tm=None):
    """images: (B, D) f32 in [0,1]; targets: (B, L) f32 0/1."""
    images = images.astype(jnp.float32)
    targets = targets.astype(jnp.float32)
    B, D = images.shape
    L = w_dec.shape[-1]

    # Single bf16 copy of the decoder weight (f32 accumulation in-kernel);
    # the gradient matmul contracts on L directly, so no host-side W^T.
    w_bf16 = w_dec.astype(jnp.bfloat16).reshape(D, L)
    b_f32 = b_dec.astype(jnp.float32).reshape(1, L)

    # ---------------- device-aware VMEM budgeting --------------------------
    try:
        vmem_cap = int(pltpu.get_tpu_info().vmem_capacity_bytes)
    except Exception:
        vmem_cap = 64 << 20                      # conservative (v7x) default
    budget = int(0.85 * vmem_cap)

    weight_bytes = D * L * 2 + L * 4             # resident bf16 W + f32 bias

    def footprint(t):
        io = 2 * 2 * t * D * 4 + 2 * t * L * 4           # dbl-buffered x/out tiles + targets
        live = 4 * t * D * 4 + 3 * t * L * 4 + t * 4     # orig, x carry, step/x_new temps, decoded, diff
        return io + live + weight_bytes + (4 << 20)      # + headroom

    if tm is None:
        # Largest tile (multiple of 16 for bf16 packing, capped at 256 = MXU M
        # on v6e/v7x) dividing B that fits VMEM; prefer >= 2 grid steps
        # (v7x megacore) when that still keeps tm >= 128.
        cands = [t for t in range(min(B, 256), 0, -1)
                 if B % t == 0 and (t % 16 == 0 or t == B)]
        fitting = [t for t in cands if footprint(t) <= budget]
        if fitting:
            multi = [t for t in fitting if B // t >= 2 and t >= 128]
            tm = multi[0] if multi else fitting[0]
        else:
            tm = cands[-1]
    assert B % tm == 0, "batch must be divisible by the image tile TM"
    assert tm == B or tm % 16 == 0, "TM must be the full batch or a multiple of 16"

    vmem_limit = int(min(budget, max(footprint(tm) + (8 << 20), 32 << 20)))

    kernel = functools.partial(
        _wevade_kernel,
        max_iter=max_iter, lr=lr, xi=xi, epsilon=epsilon, msg_len=float(L))

    def build(resident_weights):
        if resident_weights:
            # Loop-invariant decoder params: one resident VMEM copy, no
            # per-grid-step double-buffering.
            w_spec = pl.BlockSpec(memory_space=pltpu.MemorySpace.VMEM)
            b_spec = pl.BlockSpec(memory_space=pltpu.MemorySpace.VMEM)
        else:
            w_spec = pl.BlockSpec((D, L), lambda b: (0, 0))
            b_spec = pl.BlockSpec((1, L), lambda b: (0, 0))
        return pl.pallas_call(
            kernel,
            out_shape=jax.ShapeDtypeStruct((B, D), jnp.float32),
            grid_spec=pltpu.PrefetchScalarGridSpec(
                num_scalar_prefetch=0,
                grid=(B // tm,),
                in_specs=[
                    pl.BlockSpec((tm, D), lambda b: (b, 0)),   # image tile
                    pl.BlockSpec((tm, L), lambda b: (b, 0)),   # target messages
                    w_spec,                                    # decoder W (bf16)
                    b_spec,                                    # decoder bias
                ],
                out_specs=pl.BlockSpec((tm, D), lambda b: (b, 0)),
            ),
            # the attack is an in-place update of the encoded images
            input_output_aliases={0: 0},
            compiler_params=pltpu.CompilerParams(
                dimension_semantics=("parallel",),
                vmem_limit_bytes=vmem_limit),
        )

    try:
        return build(True)(images, targets, w_bf16, b_f32)
    except Exception:
        # Fallback: default (tiled, double-buffered) weight residency.
        return build(False)(images, targets, w_bf16, b_f32)


if __name__ == "__main__":
    # Small shapes consistent with the module's forward.
    B, C, H, Wsz = 16, 4, 16, 16
    L = 128                      # message_length
    D = C * H * Wsz              # flattened image size

    # WEvade hyper-parameters (xi already divided by 255 as in __init__).
    max_iter = 10
    lr = 2.0
    xi = 2.0 / 255.0
    epsilon = 0.01

    key = jax.random.PRNGKey(0)
    k_img, k_tgt, k_w = jax.random.split(key, 3)

    # Encoded images in [0, 1] (NCHW), flattened for the kernel layout.
    images_nchw = jax.random.uniform(k_img, (B, C, H, Wsz), dtype=jnp.float32)
    images = images_nchw.reshape(B, D)

    # Random 0/1 target messages (np.random.choice([0., 1.]) equivalent).
    targets = jax.random.bernoulli(k_tgt, 0.5, (B, L)).astype(jnp.float32)

    # Deterministic synthetic "decoder" parameters (linear decoder).
    # TODO(synk): the real module receives an arbitrary pretrained decoder
    # nn.Module; only a linear decoder (with its analytic MSE gradient) is
    # implemented here.
    w_dec = jax.random.normal(k_w, (D, L), dtype=jnp.float32) * 0.05
    b_dec = jnp.zeros((1, L), dtype=jnp.float32)

    out = wevade_attack(images, targets, w_dec, b_dec,
                        max_iter=max_iter, lr=lr, xi=xi, epsilon=epsilon)
    out_nchw = out.reshape(B, C, H, Wsz)
    jax.block_until_ready(out_nchw)
    print("KERNEL_OK")
</pallas_src>

<mosaic_0001>
module attributes {stable_mosaic.version = 11 : i64} {
  func.func @_wevade_kernel(%arg0: i32, %arg1: memref<16x1024xf32, #tpu.memory_space<vmem>>, %arg2: memref<16x128xf32, #tpu.memory_space<vmem>>, %arg3: memref<1024x128xbf16, #tpu.memory_space<vmem>>, %arg4: memref<1x128xf32, #tpu.memory_space<vmem>>, %arg5: memref<16x1024xf32, #tpu.memory_space<vmem>>) attributes {dimension_semantics = [#tpu.dimension_semantics<parallel>], iteration_bounds = array<i64: 1>, scalar_prefetch = 0 : i64, scratch_operands = 0 : i64, tpu.core_type = #tpu.core_type<tc>, window_params = [{transform_indices = @transform_0, window_bounds = array<i64: 16, 1024>}, {transform_indices = @transform_1, window_bounds = array<i64: 16, 128>}, {pipeline_mode = #tpu.pipeline_mode<synchronous>, transform_indices = @transform_2, window_bounds = array<i64: 1024, 128>}, {pipeline_mode = #tpu.pipeline_mode<synchronous>, transform_indices = @transform_3, window_bounds = array<i64: 1, 128>}, {transform_indices = @transform_4, window_bounds = array<i64: 16, 1024>}]} {
    %c0 = arith.constant 0 : index
    %c0_0 = arith.constant 0 : index
    %0 = vector.load %arg1[%c0, %c0_0] : memref<16x1024xf32, #tpu.memory_space<vmem>>, vector<16x1024xf32>
    %c0_1 = arith.constant 0 : index
    %c0_2 = arith.constant 0 : index
    %1 = vector.load %arg2[%c0_1, %c0_2] : memref<16x128xf32, #tpu.memory_space<vmem>>, vector<16x128xf32>
    %2 = arith.truncf %0 : vector<16x1024xf32> to vector<16x1024xbf16>
    %c0_3 = arith.constant 0 : index
    %c0_4 = arith.constant 0 : index
    %3 = vector.load %arg3[%c0_3, %c0_4] : memref<1024x128xbf16, #tpu.memory_space<vmem>>, vector<1024x128xbf16>
    %cst = arith.constant dense<0.000000e+00> : vector<16x128xf32>
    %4 = tpu.matmul %2, %3, %cst {dimension_numbers = #tpu.dot_dimension_numbers<[1], [0], [0], [1], [0, 0, 1, 1], [], []>} : vector<16x1024xbf16>, vector<1024x128xbf16>, vector<16x128xf32> -> vector<16x128xf32>
    %c0_5 = arith.constant 0 : index
    %c0_6 = arith.constant 0 : index
    %5 = vector.load %arg4[%c0_5, %c0_6] : memref<1x128xf32, #tpu.memory_space<vmem>>, vector<1x128xf32>
    %6 = vector.broadcast %5 : vector<1x128xf32> to vector<16x128xf32>
    %7 = arith.addf %4, %6 : vector<16x128xf32>
    %cst_7 = arith.constant 0.000000e+00 : f32
    %8 = vector.broadcast %cst_7 : f32 to vector<16x1xf32>
    %cst_8 = arith.constant 3.125000e-02 : f32
    %cst_9 = arith.constant 0.00784313772 : f32
    %cst_10 = arith.constant 7.812500e-03 : f32
    %cst_11 = arith.constant 9.900000e-01 : f32
    %c0_i32 = arith.constant 0 : i32
    %9:4 = scf.while (%arg6 = %c0_i32, %arg7 = %0, %arg8 = %7, %arg9 = %8) : (i32, vector<16x1024xf32>, vector<16x128xf32>, vector<16x1xf32>) -> (i32, vector<16x1024xf32>, vector<16x128xf32>, vector<16x1xf32>) {
      %c10_i32 = arith.constant 10 : i32
      %11 = arith.cmpi slt, %arg6, %c10_i32 : i32
      %12 = vector.shape_cast %arg9 : vector<16x1xf32> to vector<1x16x1xf32>
      %cst_14 = arith.constant dense<0x7F800000> : vector<1xf32>
      %13 = vector.multi_reduction <minimumf>, %12, %cst_14 [1, 2] : vector<1x16x1xf32> to vector<1xf32>
      %14 = vector.shape_cast %13 : vector<1xf32> to vector<1x1x1xf32>
      %15 = vector.extract %14[0, 0, 0] : f32 from vector<1x1x1xf32>
      %cst_15 = arith.constant 5.000000e-01 : f32
      %16 = arith.cmpf olt, %15, %cst_15 : f32
      %17 = arith.andi %11, %16 : i1
      scf.condition(%17) %arg6, %arg7, %arg8, %arg9 : i32, vector<16x1024xf32>, vector<16x128xf32>, vector<16x1xf32>
    } do {
    ^bb0(%arg6: i32, %arg7: vector<16x1024xf32>, %arg8: vector<16x128xf32>, %arg9: vector<16x1xf32>):
      %cst_14 = arith.constant dense<0x7F800000> : vector<16xf32>
      %11 = vector.multi_reduction <minimumf>, %arg7, %cst_14 [1] : vector<16x1024xf32> to vector<16xf32>
      %12 = vector.shape_cast %11 : vector<16xf32> to vector<16x1xf32>
      %cst_15 = arith.constant dense<0xFF800000> : vector<16xf32>
      %13 = vector.multi_reduction <maximumf>, %arg7, %cst_15 [1] : vector<16x1024xf32> to vector<16xf32>
      %14 = vector.shape_cast %13 : vector<16xf32> to vector<16x1xf32>
      %15 = arith.subf %arg8, %1 : vector<16x128xf32>
      %cst_16 = arith.constant 1.000000e+00 : f32
      %16 = vector.broadcast %cst_16 : f32 to vector<16x1xf32>
      %17 = arith.subf %16, %arg9 : vector<16x1xf32>
      %18 = vector.broadcast %cst_8 : f32 to vector<16x1xf32>
      %19 = arith.mulf %17, %18 : vector<16x1xf32>
      %20 = vector.broadcast %19 : vector<16x1xf32> to vector<16x128xf32>
      %21 = arith.mulf %15, %20 : vector<16x128xf32>
      %22 = arith.truncf %21 : vector<16x128xf32> to vector<16x128xbf16>
      %c0_17 = arith.constant 0 : index
      %c0_18 = arith.constant 0 : index
      %23 = vector.load %arg3[%c0_17, %c0_18] : memref<1024x128xbf16, #tpu.memory_space<vmem>>, vector<1024x128xbf16>
      %cst_19 = arith.constant dense<0.000000e+00> : vector<16x1024xf32>
      %24 = tpu.matmul %22, %23, %cst_19 {dimension_numbers = #tpu.dot_dimension_numbers<[1], [1], [0], [0], [0, 0, 1, 0], [], []>} : vector<16x128xbf16>, vector<1024x128xbf16>, vector<16x1024xf32> -> vector<16x1024xf32>
      %25 = arith.subf %arg7, %24 : vector<16x1024xf32>
      %26 = vector.broadcast %12 : vector<16x1xf32> to vector<16x1024xf32>
      %27 = arith.maximumf %26, %25 : vector<16x1024xf32>
      %28 = vector.broadcast %14 : vector<16x1xf32> to vector<16x1024xf32>
      %29 = arith.minimumf %28, %27 : vector<16x1024xf32>
      %30 = arith.subf %29, %0 : vector<16x1024xf32>
      %31 = math.absf %30 : vector<16x1024xf32>
      %cst_20 = arith.constant dense<0xFF800000> : vector<16xf32>
      %32 = vector.multi_reduction <maximumf>, %31, %cst_20 [1] : vector<16x1024xf32> to vector<16xf32>
      %33 = vector.shape_cast %32 : vector<16xf32> to vector<16x1xf32>
      %34 = vector.broadcast %cst_9 : f32 to vector<16x1xf32>
      %35 = arith.cmpf ogt, %33, %34 : vector<16x1xf32>
      %36 = vector.broadcast %cst_9 : f32 to vector<16x1xf32>
      %37 = arith.divf %36, %33 : vector<16x1xf32>
      %cst_21 = arith.constant 1.000000e+00 : f32
      %38 = vector.broadcast %cst_21 : f32 to vector<16x1xf32>
      %39 = arith.select %35, %37, %38 : vector<16x1xi1>, vector<16x1xf32>
      %40 = vector.broadcast %39 : vector<16x1xf32> to vector<16x1024xf32>
      %41 = arith.mulf %40, %30 : vector<16x1024xf32>
      %42 = arith.addf %0, %41 : vector<16x1024xf32>
      %cst_22 = arith.constant 0.000000e+00 : f32
      %cst_23 = arith.constant 1.000000e+00 : f32
      %43 = vector.broadcast %cst_22 : f32 to vector<16x1024xf32>
      %44 = arith.maximumf %43, %42 : vector<16x1024xf32>
      %45 = vector.broadcast %cst_23 : f32 to vector<16x1024xf32>
      %46 = arith.minimumf %45, %44 : vector<16x1024xf32>
      %47 = arith.truncf %46 : vector<16x1024xf32> to vector<16x1024xbf16>
      %c0_24 = arith.constant 0 : index
      %c0_25 = arith.constant 0 : index
      %48 = vector.load %arg3[%c0_24, %c0_25] : memref<1024x128xbf16, #tpu.memory_space<vmem>>, vector<1024x128xbf16>
      %cst_26 = arith.constant dense<0.000000e+00> : vector<16x128xf32>
      %49 = tpu.matmul %47, %48, %cst_26 {dimension_numbers = #tpu.dot_dimension_numbers<[1], [0], [0], [1], [0, 0, 1, 1], [], []>} : vector<16x1024xbf16>, vector<1024x128xbf16>, vector<16x128xf32> -> vector<16x128xf32>
      %c0_27 = arith.constant 0 : index
      %c0_28 = arith.constant 0 : index
      %50 = vector.load %arg4[%c0_27, %c0_28] : memref<1x128xf32, #tpu.memory_space<vmem>>, vector<1x128xf32>
      %51 = vector.broadcast %50 : vector<1x128xf32> to vector<16x128xf32>
      %52 = arith.addf %49, %51 : vector<16x128xf32>
      %53 = math.roundeven %52 : vector<16x128xf32>
      %cst_29 = arith.constant 0.000000e+00 : f32
      %cst_30 = arith.constant 1.000000e+00 : f32
      %54 = vector.broadcast %cst_29 : f32 to vector<16x128xf32>
      %55 = arith.maximumf %54, %53 : vector<16x128xf32>
      %56 = vector.broadcast %cst_30 : f32 to vector<16x128xf32>
      %57 = arith.minimumf %56, %55 : vector<16x128xf32>
      %58 = arith.subf %57, %1 : vector<16x128xf32>
      %59 = math.absf %58 : vector<16x128xf32>
      %cst_31 = arith.constant dense<0.000000e+00> : vector<16xf32>
      %60 = vector.multi_reduction <add>, %59, %cst_31 [1] : vector<16x128xf32> to vector<16xf32>
      %61 = vector.shape_cast %60 : vector<16xf32> to vector<16x1xf32>
      %62 = vector.broadcast %cst_10 : f32 to vector<16x1xf32>
      %63 = arith.mulf %61, %62 : vector<16x1xf32>
      %cst_32 = arith.constant 1.000000e+00 : f32
      %64 = vector.broadcast %cst_32 : f32 to vector<16x1xf32>
      %65 = arith.subf %64, %63 : vector<16x1xf32>
      %66 = vector.broadcast %cst_11 : f32 to vector<16x1xf32>
      %67 = arith.cmpf oge, %65, %66 : vector<16x1xf32>
      %68 = arith.extui %67 : vector<16x1xi1> to vector<16x1xi32>
      %69 = arith.sitofp %68 : vector<16x1xi32> to vector<16x1xf32>
      %70 = arith.maximumf %arg9, %69 : vector<16x1xf32>
      %c1_i32 = arith.constant 1 : i32
      %71 = arith.addi %arg6, %c1_i32 : i32
      scf.yield %71, %46, %52, %70 : i32, vector<16x1024xf32>, vector<16x128xf32>, vector<16x1xf32>
    }
    %c0_12 = arith.constant 0 : index
    %c0_13 = arith.constant 0 : index
    %10 = vector.load %arg5[%c0_12, %c0_13] : memref<16x1024xf32, #tpu.memory_space<vmem>>, vector<16x1024xf32>
    tpu.vector_store %arg5[%c0_12, %c0_13], %9#1 {strides = array<i32>} : memref<16x1024xf32, #tpu.memory_space<vmem>>, vector<16x1024xf32>,
    return
  }
  func.func @transform_0(%arg0: i32) -> (i32, i32) {
    %c0_i32 = arith.constant 0 : i32
    %c0_i32_0 = arith.constant 0 : i32
    return %arg0, %c0_i32 : i32, i32
  }
  func.func @transform_1(%arg0: i32) -> (i32, i32) {
    %c0_i32 = arith.constant 0 : i32
    %c0_i32_0 = arith.constant 0 : i32
    return %arg0, %c0_i32 : i32, i32
  }
  func.func @transform_2(%arg0: i32) -> (i32, i32) {
    %c0_i32 = arith.constant 0 : i32
    %c0_i32_0 = arith.constant 0 : i32
    %c0_i32_1 = arith.constant 0 : i32
    return %c0_i32, %c0_i32_0 : i32, i32
  }
  func.func @transform_3(%arg0: i32) -> (i32, i32) {
    %c0_i32 = arith.constant 0 : i32
    %c0_i32_0 = arith.constant 0 : i32
    %c0_i32_1 = arith.constant 0 : i32
    return %c0_i32, %c0_i32_0 : i32, i32
  }
  func.func @transform_4(%arg0: i32) -> (i32, i32) {
    %c0_i32 = arith.constant 0 : i32
    %c0_i32_0 = arith.constant 0 : i32
    return %arg0, %c0_i32 : i32, i32
  }
}

module attributes {stable_mosaic.version = 11 : i64} {
  func.func @_wevade_kernel(%arg0: i32, %arg1: memref<16x1024xf32, #tpu.memory_space<vmem>>, %arg2: memref<16x128xf32, #tpu.memory_space<vmem>>, %arg3: memref<1024x128xbf16, #tpu.memory_space<vmem>>, %arg4: memref<1x128xf32, #tpu.memory_space<vmem>>, %arg5: memref<16x1024xf32, #tpu.memory_space<vmem>>) attributes {dimension_semantics = [#tpu.dimension_semantics<parallel>], iteration_bounds = array<i64: 1>, scalar_prefetch = 0 : i64, scratch_operands = 0 : i64, tpu.core_type = #tpu.core_type<tc>, window_params = [{transform_indices = @transform_0, window_bounds = array<i64: 16, 1024>}, {transform_indices = @transform_1, window_bounds = array<i64: 16, 128>}, {pipeline_mode = #tpu.pipeline_mode<synchronous>, transform_indices = @transform_2, window_bounds = array<i64: 1024, 128>}, {pipeline_mode = #tpu.pipeline_mode<synchronous>, transform_indices = @transform_3, window_bounds = array<i64: 1, 128>}, {transform_indices = @transform_4, window_bounds = array<i64: 16, 1024>}]} {
    %c0 = arith.constant 0 : index
    %c0_0 = arith.constant 0 : index
    %0 = vector.load %arg1[%c0, %c0_0] : memref<16x1024xf32, #tpu.memory_space<vmem>>, vector<16x1024xf32>
    %c0_1 = arith.constant 0 : index
    %c0_2 = arith.constant 0 : index
    %1 = vector.load %arg2[%c0_1, %c0_2] : memref<16x128xf32, #tpu.memory_space<vmem>>, vector<16x128xf32>
    %2 = arith.truncf %0 : vector<16x1024xf32> to vector<16x1024xbf16>
    %c0_3 = arith.constant 0 : index
    %c0_4 = arith.constant 0 : index
    %3 = vector.load %arg3[%c0_3, %c0_4] : memref<1024x128xbf16, #tpu.memory_space<vmem>>, vector<1024x128xbf16>
    %cst = arith.constant dense<0.000000e+00> : vector<16x128xf32>
    %4 = tpu.matmul %2, %3, %cst {dimension_numbers = #tpu.dot_dimension_numbers<[1], [0], [0], [1], [0, 0, 1, 1], [], []>} : vector<16x1024xbf16>, vector<1024x128xbf16>, vector<16x128xf32> -> vector<16x128xf32>
    %c0_5 = arith.constant 0 : index
    %c0_6 = arith.constant 0 : index
    %5 = vector.load %arg4[%c0_5, %c0_6] : memref<1x128xf32, #tpu.memory_space<vmem>>, vector<1x128xf32>
    %6 = vector.broadcast %5 : vector<1x128xf32> to vector<16x128xf32>
    %7 = arith.addf %4, %6 : vector<16x128xf32>
    %cst_7 = arith.constant 0.000000e+00 : f32
    %8 = vector.broadcast %cst_7 : f32 to vector<16x1xf32>
    %cst_8 = arith.constant 3.125000e-02 : f32
    %cst_9 = arith.constant 0.00784313772 : f32
    %cst_10 = arith.constant 7.812500e-03 : f32
    %cst_11 = arith.constant 9.900000e-01 : f32
    %c0_i32 = arith.constant 0 : i32
    %9:4 = scf.while (%arg6 = %c0_i32, %arg7 = %0, %arg8 = %7, %arg9 = %8) : (i32, vector<16x1024xf32>, vector<16x128xf32>, vector<16x1xf32>) -> (i32, vector<16x1024xf32>, vector<16x128xf32>, vector<16x1xf32>) {
      %c10_i32 = arith.constant 10 : i32
      %11 = arith.cmpi slt, %arg6, %c10_i32 : i32
      %12 = vector.shape_cast %arg9 : vector<16x1xf32> to vector<1x16x1xf32>
      %cst_14 = arith.constant dense<0x7F800000> : vector<1xf32>
      %13 = vector.multi_reduction <minimumf>, %12, %cst_14 [1, 2] : vector<1x16x1xf32> to vector<1xf32>
      %14 = vector.shape_cast %13 : vector<1xf32> to vector<1x1x1xf32>
      %15 = vector.extract %14[0, 0, 0] : f32 from vector<1x1x1xf32>
      %cst_15 = arith.constant 5.000000e-01 : f32
      %16 = arith.cmpf olt, %15, %cst_15 : f32
      %17 = arith.andi %11, %16 : i1
      scf.condition(%17) %arg6, %arg7, %arg8, %arg9 : i32, vector<16x1024xf32>, vector<16x128xf32>, vector<16x1xf32>
    } do {
    ^bb0(%arg6: i32, %arg7: vector<16x1024xf32>, %arg8: vector<16x128xf32>, %arg9: vector<16x1xf32>):
      %cst_14 = arith.constant dense<0x7F800000> : vector<16xf32>
      %11 = vector.multi_reduction <minimumf>, %arg7, %cst_14 [1] : vector<16x1024xf32> to vector<16xf32>
      %12 = vector.shape_cast %11 : vector<16xf32> to vector<16x1xf32>
      %cst_15 = arith.constant dense<0xFF800000> : vector<16xf32>
      %13 = vector.multi_reduction <maximumf>, %arg7, %cst_15 [1] : vector<16x1024xf32> to vector<16xf32>
      %14 = vector.shape_cast %13 : vector<16xf32> to vector<16x1xf32>
      %15 = arith.subf %arg8, %1 : vector<16x128xf32>
      %cst_16 = arith.constant 1.000000e+00 : f32
      %16 = vector.broadcast %cst_16 : f32 to vector<16x1xf32>
      %17 = arith.subf %16, %arg9 : vector<16x1xf32>
      %18 = vector.broadcast %cst_8 : f32 to vector<16x1xf32>
      %19 = arith.mulf %17, %18 : vector<16x1xf32>
      %20 = vector.broadcast %19 : vector<16x1xf32> to vector<16x128xf32>
      %21 = arith.mulf %15, %20 : vector<16x128xf32>
      %22 = arith.truncf %21 : vector<16x128xf32> to vector<16x128xbf16>
      %c0_17 = arith.constant 0 : index
      %c0_18 = arith.constant 0 : index
      %23 = vector.load %arg3[%c0_17, %c0_18] : memref<1024x128xbf16, #tpu.memory_space<vmem>>, vector<1024x128xbf16>
      %cst_19 = arith.constant dense<0.000000e+00> : vector<16x1024xf32>
      %24 = tpu.matmul %22, %23, %cst_19 {dimension_numbers = #tpu.dot_dimension_numbers<[1], [1], [0], [0], [0, 0, 1, 0], [], []>} : vector<16x128xbf16>, vector<1024x128xbf16>, vector<16x1024xf32> -> vector<16x1024xf32>
      %25 = arith.subf %arg7, %24 : vector<16x1024xf32>
      %26 = vector.broadcast %12 : vector<16x1xf32> to vector<16x1024xf32>
      %27 = arith.maximumf %26, %25 : vector<16x1024xf32>
      %28 = vector.broadcast %14 : vector<16x1xf32> to vector<16x1024xf32>
      %29 = arith.minimumf %28, %27 : vector<16x1024xf32>
      %30 = arith.subf %29, %0 : vector<16x1024xf32>
      %31 = math.absf %30 : vector<16x1024xf32>
      %cst_20 = arith.constant dense<0xFF800000> : vector<16xf32>
      %32 = vector.multi_reduction <maximumf>, %31, %cst_20 [1] : vector<16x1024xf32> to vector<16xf32>
      %33 = vector.shape_cast %32 : vector<16xf32> to vector<16x1xf32>
      %34 = vector.broadcast %cst_9 : f32 to vector<16x1xf32>
      %35 = arith.cmpf ogt, %33, %34 : vector<16x1xf32>
      %36 = vector.broadcast %cst_9 : f32 to vector<16x1xf32>
      %37 = arith.divf %36, %33 : vector<16x1xf32>
      %cst_21 = arith.constant 1.000000e+00 : f32
      %38 = vector.broadcast %cst_21 : f32 to vector<16x1xf32>
      %39 = arith.select %35, %37, %38 : vector<16x1xi1>, vector<16x1xf32>
      %40 = vector.broadcast %39 : vector<16x1xf32> to vector<16x1024xf32>
      %41 = arith.mulf %40, %30 : vector<16x1024xf32>
      %42 = arith.addf %0, %41 : vector<16x1024xf32>
      %cst_22 = arith.constant 0.000000e+00 : f32
      %cst_23 = arith.constant 1.000000e+00 : f32
      %43 = vector.broadcast %cst_22 : f32 to vector<16x1024xf32>
      %44 = arith.maximumf %43, %42 : vector<16x1024xf32>
      %45 = vector.broadcast %cst_23 : f32 to vector<16x1024xf32>
      %46 = arith.minimumf %45, %44 : vector<16x1024xf32>
      %47 = arith.truncf %46 : vector<16x1024xf32> to vector<16x1024xbf16>
      %c0_24 = arith.constant 0 : index
      %c0_25 = arith.constant 0 : index
      %48 = vector.load %arg3[%c0_24, %c0_25] : memref<1024x128xbf16, #tpu.memory_space<vmem>>, vector<1024x128xbf16>
      %cst_26 = arith.constant dense<0.000000e+00> : vector<16x128xf32>
      %49 = tpu.matmul %47, %48, %cst_26 {dimension_numbers = #tpu.dot_dimension_numbers<[1], [0], [0], [1], [0, 0, 1, 1], [], []>} : vector<16x1024xbf16>, vector<1024x128xbf16>, vector<16x128xf32> -> vector<16x128xf32>
      %c0_27 = arith.constant 0 : index
      %c0_28 = arith.constant 0 : index
      %50 = vector.load %arg4[%c0_27, %c0_28] : memref<1x128xf32, #tpu.memory_space<vmem>>, vector<1x128xf32>
      %51 = vector.broadcast %50 : vector<1x128xf32> to vector<16x128xf32>
      %52 = arith.addf %49, %51 : vector<16x128xf32>
      %53 = math.roundeven %52 : vector<16x128xf32>
      %cst_29 = arith.constant 0.000000e+00 : f32
      %cst_30 = arith.constant 1.000000e+00 : f32
      %54 = vector.broadcast %cst_29 : f32 to vector<16x128xf32>
      %55 = arith.maximumf %54, %53 : vector<16x128xf32>
      %56 = vector.broadcast %cst_30 : f32 to vector<16x128xf32>
      %57 = arith.minimumf %56, %55 : vector<16x128xf32>
      %58 = arith.subf %57, %1 : vector<16x128xf32>
      %59 = math.absf %58 : vector<16x128xf32>
      %cst_31 = arith.constant dense<0.000000e+00> : vector<16xf32>
      %60 = vector.multi_reduction <add>, %59, %cst_31 [1] : vector<16x128xf32> to vector<16xf32>
      %61 = vector.shape_cast %60 : vector<16xf32> to vector<16x1xf32>
      %62 = vector.broadcast %cst_10 : f32 to vector<16x1xf32>
      %63 = arith.mulf %61, %62 : vector<16x1xf32>
      %cst_32 = arith.constant 1.000000e+00 : f32
      %64 = vector.broadcast %cst_32 : f32 to vector<16x1xf32>
      %65 = arith.subf %64, %63 : vector<16x1xf32>
      %66 = vector.broadcast %cst_11 : f32 to vector<16x1xf32>
      %67 = arith.cmpf oge, %65, %66 : vector<16x1xf32>
      %68 = arith.extui %67 : vector<16x1xi1> to vector<16x1xi32>
      %69 = arith.sitofp %68 : vector<16x1xi32> to vector<16x1xf32>
      %70 = arith.maximumf %arg9, %69 : vector<16x1xf32>
      %c1_i32 = arith.constant 1 : i32
      %71 = arith.addi %arg6, %c1_i32 : i32
      scf.yield %71, %46, %52, %70 : i32, vector<16x1024xf32>, vector<16x128xf32>, vector<16x1xf32>
    }
    %c0_12 = arith.constant 0 : index
    %c0_13 = arith.constant 0 : index
    %10 = vector.load %arg5[%c0_12, %c0_13] : memref<16x1024xf32, #tpu.memory_space<vmem>>, vector<16x1024xf32>
    tpu.vector_store %arg5[%c0_12, %c0_13], %9#1 {strides = array<i32>} : memref<16x1024xf32, #tpu.memory_space<vmem>>, vector<16x1024xf32>,
    return
  }
  func.func @transform_0(%arg0: i32) -> (i32, i32) {
    %c0_i32 = arith.constant 0 : i32
    %c0_i32_0 = arith.constant 0 : i32
    return %arg0, %c0_i32 : i32, i32
  }
  func.func @transform_1(%arg0: i32) -> (i32, i32) {
    %c0_i32 = arith.constant 0 : i32
    %c0_i32_0 = arith.constant 0 : i32
    return %arg0, %c0_i32 : i32, i32
  }
  func.func @transform_2(%arg0: i32) -> (i32, i32) {
    %c0_i32 = arith.constant 0 : i32
    %c0_i32_0 = arith.constant 0 : i32
    %c0_i32_1 = arith.constant 0 : i32
    return %c0_i32, %c0_i32_0 : i32, i32
  }
  func.func @transform_3(%arg0: i32) -> (i32, i32) {
    %c0_i32 = arith.constant 0 : i32
    %c0_i32_0 = arith.constant 0 : i32
    %c0_i32_1 = arith.constant 0 : i32
    return %c0_i32, %c0_i32_0 : i32, i32
  }
  func.func @transform_4(%arg0: i32) -> (i32, i32) {
    %c0_i32 = arith.constant 0 : i32
    %c0_i32_0 = arith.constant 0 : i32
    return %arg0, %c0_i32 : i32, i32
  }
}

</mosaic_0001>

<bundles_post_ra>
// kernel: tpu_custom_call.1
= control target key start
LH: loop header
LB: loop body
LE: loop exit
PB: predicated region body
PF: predicated region fallthrough
CT: control target
= control target key end

     0   :  { %9 = vsyncpa [#allocation3], 0  ;;  %s4128_s0 = inlined_call_operand.hbm [shape: f32[16,1024], index: 0, kind: input, shape index: {}, may-alias: {0,4}]   ;;  %s4129_s1 = inlined_call_operand.vmem [shape: f32[16,128], index: 1, kind: input, shape index: {}]   ;;  %s4130_s2 = inlined_call_operand.hbm [shape: bf16[1024,128], index: 2, kind: input, shape index: {}]   ;;  %s4131_s3 = inlined_call_operand.vmem [shape: f32[1,128], index: 3, kind: input, shape index: {}]   ;;  %s4132_s4 = inlined_call_operand.hbm [shape: f32[16,1024], index: 4, kind: output, shape index: {}, may-alias: {0,4}]  }
   0x1   :  { %10 = vsyncpa [#allocation6], 0 }
   0x2   :  { %11 = vsyncpa [#allocation4], 0  ;;  %s3205_s15 = smov [#allocation2]  }
   0x3   :  { %s17_s16 = sshll.u32 %s3205_s15, 4  ;;  %s18_s16 = int_to_ptr.vmem [resolvable:$true] %s17_s16 }
   0x4   :  { %s2851_s17 = scalar_lea.vmem %s18_s16, 2048  ;;  %p2856_p1 = scmp.lt.s32.totalorder %s18_s16, %s18_s16 }
   0x5   :  { %p2852_p0 = scmp.ne.s32.totalorder %s18_s16, %s2851_s17  ;;  %p2857_p2 = scmp.lt.s32.totalorder %s2851_s17, %s2851_s17 }
   0x7   :  { %p2858_p3 = por %p2857_p2, %p2856_p1 }
   0x9   :  { %p2859_p4 = pnand %p2858_p3, %p2852_p0 }
   0xb   :  { %2862 = shalt.err (!%p2859_p4)
}
   0xc   :  { %s3206_s18 = smov 1024   ;;  %s3207_s19 = smov 64  }
   0xd   :  { %23 = dma.hbm_to_vmem [thread:$0]  %s4128_s0, 2048, %s18_s16, [#allocation3], %s3206_s18, %s3206_s18, %s3207_s19  }
   0xe   :  { %s3208_s22 = smov [#allocation5]  }
   0xf   :  { %s31_s23 = sshll.u32 %s3208_s22, 4  ;;  %s32_s23 = int_to_ptr.vmem [resolvable:$true] %s31_s23 }
  0x10   :  { %s2871_s24 = scalar_lea.vmem %s32_s23, 8192  ;;  %p2876_p6 = scmp.lt.s32.totalorder %s32_s23, %s32_s23 }
  0x11   :  { %p2872_p5 = scmp.ne.s32.totalorder %s32_s23, %s2871_s24  ;;  %p2877_p7 = scmp.lt.s32.totalorder %s2871_s24, %s2871_s24 }
  0x13   :  { %p2878_p8 = por %p2877_p7, %p2876_p6 }
  0x15   :  { %p2879_p9 = pnand %p2878_p8, %p2872_p5 }
  0x17   :  { %2882 = shalt.err (!%p2879_p9)
}
  0x18   :  { %s3209_s25 = smov 4  }
  0x19   :  { %37 = dma.hbm_to_vmem [thread:$0]  %s4130_s2, 8192, %s32_s23, [#allocation6], %s3207_s19, %s3207_s19, %s3209_s25  }
  0x1a   :  { %3051 = dma.done.wait [#allocation3], 2048  }
  0x1b   :  { %3052 = vsyncadd [#allocation3], 4294965248 }
  0x1c   :  { %3053 = dma.done.wait [#allocation6], 8192  }
  0x1d   :  { %3054 = vsyncadd [#allocation6], 4294959104  ;;  %v3252_v0 = vld [vmem:[%s4129_s1] sm:$0xff]  ;;  %v3257_v1 = vld [vmem:[%s4129_s1 + $0x8] sm:$0xff] }
  0x1e   :  { %4176 = vst [vmem:[#allocation11_spill] sm:$0xff] %v3252_v0  ;;  %4177 = vst [vmem:[#allocation12_spill] sm:$0xff] %v3257_v1  ;;  %v2711_v2 = vld [vmem:[#allocation5 + $0x78] sm:$0xff]   ;;  %v2715_v6 = vld [vmem:[#allocation5 + $0x70] sm:$0xff]  }
  0x1f   :  { %v2712_v3 = vld [vmem:[#allocation5 + $0xf8] sm:$0xff]   ;;  %2139 = vmatprep.subr.bf16.mxu0 %v2711_v2  ;;  %v2716_v7 = vld [vmem:[#allocation5 + $0xf0] sm:$0xff]   ;;  %v2719_v10 = vld [vmem:[#allocation5 + $0x68] sm:$0xff]  }
  0x20   :  { %v2713_v4 = vld [vmem:[#allocation5 + $0x38] sm:$0xff]   ;;  %2161 = vmatprep.subr.bf16.mxu1 %v2712_v3  ;;  %v2717_v8 = vld [vmem:[#allocation5 + $0x30] sm:$0xff]   ;;  %v2720_v11 = vld [vmem:[#allocation5 + $0xe8] sm:$0xff]  }
  0x21   :  { %v2714_v5 = vld [vmem:[#allocation5 + $0xb8] sm:$0xff]   ;;  %2140 = vmatpush3.bf16.msra.mxu0 %v2713_v4  ;;  %v2718_v9 = vld [vmem:[#allocation5 + $0xb0] sm:$0xff]   ;;  %v2721_v12 = vld [vmem:[#allocation5 + $0x28] sm:$0xff]  }
  0x22   :  { %2162 = vmatpush3.bf16.msra.mxu1 %v2714_v5  ;;  %2141 = vmatprep.subr.bf16.mxu0 %v2715_v6  ;;  %v2722_v13 = vld [vmem:[#allocation5 + $0xa8] sm:$0xff]   ;;  %v2723_v14 = vld [vmem:[#allocation5 + $0x60] sm:$0xff]   ;;  %v2727_v18 = vld [vmem:[#allocation5 + $0x58] sm:$0xff]  }
  0x23   :  { %2163 = vmatprep.subr.bf16.mxu1 %v2716_v7  ;;  %v2724_v15 = vld [vmem:[#allocation5 + $0xe0] sm:$0xff]   ;;  %v2728_v19 = vld [vmem:[#allocation5 + $0xd8] sm:$0xff]   ;;  %v2731_v22 = vld [vmem:[#allocation5 + $0x50] sm:$0xff]  }
  0x24   :  { %v2725_v16 = vld [vmem:[#allocation5 + $0x20] sm:$0xff]   ;;  %v2729_v20 = vld [vmem:[#allocation5 + $0x18] sm:$0xff]   ;;  %v2732_v23 = vld [vmem:[#allocation5 + $0xd0] sm:$0xff]  }
  0x25   :  { %2142 = vmatpush3.bf16.msra.mxu0 %v2717_v8  ;;  %v2726_v17 = vld [vmem:[#allocation5 + $0xa0] sm:$0xff]   ;;  %v2730_v21 = vld [vmem:[#allocation5 + $0x98] sm:$0xff]   ;;  %v2733_v24 = vld [vmem:[#allocation5 + $0x10] sm:$0xff]  }
  0x26   :  { %2164 = vmatpush3.bf16.msra.mxu1 %v2718_v9  ;;  %2143 = vmatprep.subr.bf16.mxu0 %v2719_v10  ;;  %v2734_v25 = vld [vmem:[#allocation5 + $0x90] sm:$0xff]   ;;  %v2735_v26 = vld [vmem:[#allocation5 + $0x48] sm:$0xff]   ;;  %v2739_v30 = vld [vmem:[#allocation5 + $0x40] sm:$0xff]  }
  0x27   :  { %2165 = vmatprep.subr.bf16.mxu1 %v2720_v11  ;;  %v2736_v27 = vld [vmem:[#allocation5 + $0xc8] sm:$0xff]   ;;  %v2740_v31 = vld [vmem:[#allocation5 + $0xc0] sm:$0xff]   ;;  %v3263_v36 = vld [vmem:[#allocation2 + $0x18] sm:$0xff]  }
  0x28   :  { %v2737_v28 = vld [vmem:[#allocation5 + $0x8] sm:$0xff]   ;;  %v2741_v32 = vld [vmem:[#allocation5] sm:$0xff]   ;;  %v3265_v37 = vld [vmem:[#allocation2 + $0x58] sm:$0xff]  }
  0x29   :  { %2144 = vmatpush3.bf16.msra.mxu0 %v2721_v12  ;;  %v2738_v29 = vld [vmem:[#allocation5 + $0x88] sm:$0xff]   ;;  %v2742_v33 = vld [vmem:[#allocation5 + $0x80] sm:$0xff]   ;;  %v68_v39 = vpack.c.bf16 %v3265_v37, %v3263_v36  ;;  %v3275_v42 = vld [vmem:[#allocation2 + $0x10] sm:$0xff]  }
  0x2a   :  { %2166 = vmatpush3.bf16.msra.mxu1 %v2722_v13  ;;  %2145 = vmatprep.subr.bf16.mxu0 %v2723_v14  ;;  %v3259_v34 = vld [vmem:[#allocation2 + $0x8] sm:$0xff]   ;;  %v3271_v40 = vld [vmem:[#allocation2] sm:$0xff]   ;;  %v3279_v44 = vld [vmem:[#allocation2 + $0x50] sm:$0xff]  }
  0x2b   :  { %2167 = vmatprep.subr.bf16.mxu1 %v2724_v15  ;;  %v3261_v35 = vld [vmem:[#allocation2 + $0x48] sm:$0xff]   ;;  %v3273_v41 = vld [vmem:[#allocation2 + $0x40] sm:$0xff]   ;;  %665 = vmatprep.mubr.bf16.mxu1 %v68_v39  ;;  %v67_v45 = vpack.c.bf16 %v3279_v44, %v3275_v42  ;;  %v2743_v46 = vld [vmem:[#allocation5 + $0x178] sm:$0xff]  }
  0x2c   :  { %v66_v38 = vpack.c.bf16 %v3261_v35, %v3259_v34  ;;  %v65_v43 = vpack.c.bf16 %v3273_v41, %v3271_v40  ;;  %v2744_v47 = vld [vmem:[#allocation5 + $0x1f8] sm:$0xff]   ;;  %v2747_v50 = vld [vmem:[#allocation5 + $0x170] sm:$0xff]   ;;  %v2751_v54 = vld [vmem:[#allocation5 + $0x168] sm:$0xff]  }
  0x2d   :  { %2146 = vmatpush3.bf16.msra.mxu0 %v2725_v16  ;;  %v2745_v48 = vld [vmem:[#allocation5 + $0x138] sm:$0xff]   ;;  %v2748_v51 = vld [vmem:[#allocation5 + $0x1f0] sm:$0xff]   ;;  %v2752_v55 = vld [vmem:[#allocation5 + $0x1e8] sm:$0xff]  }
  0x2e   :  { %2168 = vmatpush3.bf16.msra.mxu1 %v2726_v17  ;;  %2147 = vmatprep.subr.bf16.mxu0 %v2727_v18  ;;  %v2746_v49 = vld [vmem:[#allocation5 + $0x1b8] sm:$0xff]   ;;  %v2749_v52 = vld [vmem:[#allocation5 + $0x130] sm:$0xff]   ;;  %v2753_v56 = vld [vmem:[#allocation5 + $0x128] sm:$0xff]  }
  0x2f   :  { %2169 = vmatprep.subr.bf16.mxu1 %v2728_v19  ;;  %624 = vmatprep.mubr.bf16.mxu0 %v66_v38  ;;  %v2750_v53 = vld [vmem:[#allocation5 + $0x1b0] sm:$0xff]   ;;  %v2754_v57 = vld [vmem:[#allocation5 + $0x1a8] sm:$0xff]   ;;  %v2755_v58 = vld [vmem:[#allocation5 + $0x160] sm:$0xff]  }
  0x30   :  { %v2756_v59 = vld [vmem:[#allocation5 + $0x1e0] sm:$0xff]   ;;  %v2759_v62 = vld [vmem:[#allocation5 + $0x158] sm:$0xff]   ;;  %v2763_v4 = vld [vmem:[#allocation5 + $0x150] sm:$0xff]  }
  0x31   :  { %2148 = vmatpush3.bf16.msra.mxu0 %v2729_v20  ;;  %v2757_v60 = vld [vmem:[#allocation5 + $0x120] sm:$0xff]   ;;  %v2760_v63 = vld [vmem:[#allocation5 + $0x1d8] sm:$0xff]   ;;  %v2764_v5 = vld [vmem:[#allocation5 + $0x1d0] sm:$0xff]  }
  0x32   :  { %2170 = vmatpush3.bf16.msra.mxu1 %v2730_v21  ;;  %2149 = vmatprep.subr.bf16.mxu0 %v2731_v22  ;;  %v2758_v61 = vld [vmem:[#allocation5 + $0x1a0] sm:$0xff]   ;;  %v2761_v2 = vld [vmem:[#allocation5 + $0x118] sm:$0xff]   ;;  %v2765_v6 = vld [vmem:[#allocation5 + $0x110] sm:$0xff]  }
  0x33   :  { %2171 = vmatprep.subr.bf16.mxu1 %v2732_v23  ;;  %v2762_v3 = vld [vmem:[#allocation5 + $0x198] sm:$0xff]   ;;  %v2766_v7 = vld [vmem:[#allocation5 + $0x190] sm:$0xff]   ;;  %v2767_v8 = vld [vmem:[#allocation5 + $0x148] sm:$0xff]  }
  0x34   :  { %v2768_v9 = vld [vmem:[#allocation5 + $0x1c8] sm:$0xff]   ;;  %v2771_v12 = vld [vmem:[#allocation5 + $0x140] sm:$0xff]   ;;  %v3289_v19 = vld [vmem:[#allocation2 + $0x38] sm:$0xff]  }
  0x35   :  { %2150 = vmatpush3.bf16.msra.mxu0 %v2733_v24  ;;  %v2769_v10 = vld [vmem:[#allocation5 + $0x108] sm:$0xff]   ;;  %v2772_v13 = vld [vmem:[#allocation5 + $0x1c0] sm:$0xff]   ;;  %4180 = vst [vmem:[#allocation15_spill] sm:$0xff] %v3289_v19  ;;  %v3291_v20 = vld [vmem:[#allocation2 + $0x78] sm:$0xff]  }
  0x36   :  { %2172 = vmatpush3.bf16.msra.mxu1 %v2734_v25  ;;  %2151 = vmatprep.subr.bf16.mxu0 %v2735_v26  ;;  %v2770_v11 = vld [vmem:[#allocation5 + $0x188] sm:$0xff]   ;;  %v2773_v14 = vld [vmem:[#allocation5 + $0x100] sm:$0xff]   ;;  %4181 = vst [vmem:[#allocation16_spill] sm:$0xff] %v3291_v20  ;;  %v72_v22 = vpack.c.bf16 %v3291_v20, %v3289_v19  ;;  %v3299_v24 = vld [vmem:[#allocation2 + $0x30] sm:$0xff]  }
  0x37   :  { %2173 = vmatprep.subr.bf16.mxu1 %v2736_v27  ;;  %v2774_v15 = vld [vmem:[#allocation5 + $0x180] sm:$0xff]   ;;  %v3283_v16 = vld [vmem:[#allocation2 + $0x28] sm:$0xff]   ;;  %4184 = vst [vmem:[#allocation19_spill] sm:$0xff] %v3299_v24  ;;  %v3301_v25 = vld [vmem:[#allocation2 + $0x70] sm:$0xff]  }
  0x38   :  { %4178 = vst [vmem:[#allocation13_spill] sm:$0xff] %v3283_v16  ;;  %v3285_v17 = vld [vmem:[#allocation2 + $0x68] sm:$0xff]   ;;  %v3293_v21 = vld [vmem:[#allocation2 + $0x20] sm:$0xff]   ;;  %4185 = vst [vmem:[#allocation20_spill] sm:$0xff] %v3301_v25  ;;  %v71_v27 = vpack.c.bf16 %v3301_v25, %v3299_v24 }
  0x39   :  { %2152 = vmatpush3.bf16.msra.mxu0 %v2737_v28  ;;  %4179 = vst [vmem:[#allocation14_spill] sm:$0xff] %v3285_v17  ;;  %v70_v18 = vpack.c.bf16 %v3285_v17, %v3283_v16  ;;  %4182 = vst [vmem:[#allocation17_spill] sm:$0xff] %v3293_v21  ;;  %v3297_v23 = vld [vmem:[#allocation2 + $0x60] sm:$0xff]  }
  0x3a   :  { %2174 = vmatpush3.bf16.msra.mxu1 %v2738_v29  ;;  %2153 = vmatprep.subr.bf16.mxu0 %v2739_v30  ;;  %4183 = vst [vmem:[#allocation18_spill] sm:$0xff] %v3297_v23  ;;  %v69_v26 = vpack.c.bf16 %v3297_v23, %v3293_v21  ;;  %v2006_v39 = vld [vmem:[%s4131_s3] ss:$0 sm:$0xff] }
  0x3b   :  { %2175 = vmatprep.subr.bf16.mxu1 %v2740_v31 }
  0x3d   :  { %2154 = vmatpush3.bf16.msra.mxu0 %v2741_v32 }
  0x3e   :  { %2176 = vmatpush3.bf16.msra.mxu1 %v2742_v33  ;;  %2183 = vmatprep.subr.bf16.mxu0 %v2743_v46 }
  0x3f   :  { %2205 = vmatprep.subr.bf16.mxu1 %v2744_v47 }
  0x40   :  { %625 = vmatmul.mubr.bf16.vlgmr.msra.gmra.mxu0 %v65_v43 }
  0x41   :  { %666 = vmatmul.mubr.bf16.vlgmr.msra.gmra.mxu1 %v67_v45  ;;  %2184 = vmatpush3.bf16.msra.mxu0 %v2745_v48 }
  0x42   :  { %2206 = vmatpush3.bf16.msra.mxu1 %v2746_v49  ;;  %2185 = vmatprep.subr.bf16.mxu0 %v2747_v50 }
  0x43   :  { %2207 = vmatprep.subr.bf16.mxu1 %v2748_v51  ;;  %706 = vmatprep.mubr.bf16.mxu0 %v70_v18  ;;  %v4188_v18 = vmov %v3285_v17 }
  0x44   :  { %747 = vmatprep.mubr.bf16.mxu1 %v72_v22  ;;  %v4189_v22 = vmov %v3297_v23 }
  0x45   :  { %2186 = vmatpush3.bf16.msra.mxu0 %v2749_v52 }
  0x46   :  { %2208 = vmatpush3.bf16.msra.mxu1 %v2750_v53  ;;  %2187 = vmatprep.subr.bf16.mxu0 %v2751_v54 }
  0x47   :  { %2209 = vmatprep.subr.bf16.mxu1 %v2752_v55 }
  0x49   :  { %2188 = vmatpush3.bf16.msra.mxu0 %v2753_v56 }
  0x4a   :  { %2210 = vmatpush3.bf16.msra.mxu1 %v2754_v57  ;;  %2189 = vmatprep.subr.bf16.mxu0 %v2755_v58 }
  0x4b   :  { %2211 = vmatprep.subr.bf16.mxu1 %v2756_v59 }
  0x4d   :  { %2190 = vmatpush3.bf16.msra.mxu0 %v2757_v60 }
  0x4e   :  { %2212 = vmatpush3.bf16.msra.mxu1 %v2758_v61  ;;  %2191 = vmatprep.subr.bf16.mxu0 %v2759_v62 }
  0x4f   :  { %2213 = vmatprep.subr.bf16.mxu1 %v2760_v63 }
  0x51   :  { %2192 = vmatpush3.bf16.msra.mxu0 %v2761_v2 }
  0x52   :  { %2214 = vmatpush3.bf16.msra.mxu1 %v2762_v3  ;;  %2193 = vmatprep.subr.bf16.mxu0 %v2763_v4 }
  0x53   :  { %2215 = vmatprep.subr.bf16.mxu1 %v2764_v5 }
  0x55   :  { %2194 = vmatpush3.bf16.msra.mxu0 %v2765_v6 }
  0x56   :  { %2216 = vmatpush3.bf16.msra.mxu1 %v2766_v7  ;;  %2195 = vmatprep.subr.bf16.mxu0 %v2767_v8  ;;  %v3210_v7 = vmov 0.0  }
  0x57   :  { %2217 = vmatprep.subr.bf16.mxu1 %v2768_v9  ;;  %v1954_v8 = vrot.slane %v3210_v7, 4 }
  0x59   :  { %2196 = vmatpush3.bf16.msra.mxu0 %v2769_v10  ;;  %v1955_v9 = vmin.f32 %v1954_v8, 0.0 }
  0x5a   :  { %2218 = vmatpush3.bf16.msra.mxu1 %v2770_v11  ;;  %2197 = vmatprep.subr.bf16.mxu0 %v2771_v12 }
  0x5b   :  { %2219 = vmatprep.subr.bf16.mxu1 %v2772_v13  ;;  %v1956_v10 = vrot.slane %v1955_v9, 2 }
  0x5d   :  { %2198 = vmatpush3.bf16.msra.mxu0 %v2773_v14  ;;  %v1957_v11 = vmin.f32 %v1955_v9, %v1956_v10  ;;  %v4186_v14 = vmov %v3291_v20 }
  0x5e   :  { %2220 = vmatpush3.bf16.msra.mxu1 %v2774_v15  ;;  %v4187_v15 = vmov %v3301_v25 }
  0x5f   :  { %v1958_v12 = vrot.slane %v1957_v11, 1 }
  0x60   :  { %707 = vmatmul.mubr.bf16.vlgmr.msra.gmra.mxu0 %v69_v26  ;;  %v4190_v26 = vmov %v3265_v37 }
  0x61   :  { %748 = vmatmul.mubr.bf16.vlgmr.msra.gmra.mxu1 %v71_v27  ;;  %v1959_v13 = vmin.f32 %v1957_v11, %v1958_v12  ;;  %v4191_v27 = vmov %v3279_v44 }
  0x63   :  { %2387 = vpush %v1959_v13 }
  0x94   :  { %s2388_s5 = spop %2387 }
  0x95   :  { %p1961_p10 = scmp.lt.f32.partialorder %s2388_s5, 0.5 }
  0x96   :  { %v4202_v20 = vld [vmem:[#allocation16_spill] sm:$0xff] (%p1961_p10)  ;;  %v4206_v17 = vld [vmem:[#allocation14_spill] sm:$0xff] (%p1961_p10)  ;;  %s3415_s6 = smov (%p1961_p10), 0  }
  0x97   :  { %v4204_v25 = vld [vmem:[#allocation20_spill] sm:$0xff] (%p1961_p10)  ;;  %v4208_v23 = vld [vmem:[#allocation18_spill] sm:$0xff] (%p1961_p10) }
 0x100   :  { %v2155_v28 = vpop.f32.mrf.mxu0 }
 0x101   :  { %v2177_v29 = vpop.f32.mrf.mxu1 }
 0x102   :  { %v2156_v30 = vpop.f32.mrf.mxu0 }
 0x103   :  { %v2178_v31 = vpop.f32.mrf.mxu1  ;;  %v2157_v38 = vadd.f32 %v2156_v30, %v2155_v28  ;;  %v4192_v28 = vmov %v3261_v35  ;;  %v4194_v30 = vmov %v3289_v19  ;;  %v4214_v19 = vld [vmem:[#allocation15_spill] sm:$0xff] (%p1961_p10) }
 0x104   :  { %v2158_v32 = vpop.f32.mrf.mxu0  ;;  %v2179_v47 = vadd.f32 %v2178_v31, %v2177_v29  ;;  %v4193_v29 = vmov %v3273_v41  ;;  %v4195_v31 = vmov %v3299_v24  ;;  %v4216_v24 = vld [vmem:[#allocation19_spill] sm:$0xff] (%p1961_p10) }
 0x105   :  { %v2180_v33 = vpop.f32.mrf.mxu1  ;;  %v627_v46 = vadd.f32 %v2157_v38, %v2006_v39  ;;  %v4198_v38 = vmov %v3263_v36 }
 0x106   :  { %v2159_v43 = vpop.f32.mrf.mxu0 }
 0x107   :  { %v2181_v45 = vpop.f32.mrf.mxu1  ;;  %v2160_v48 = vadd.f32 %v2159_v43, %v2158_v32  ;;  %v668_v53 = vadd.f32 %v2179_v47, %v627_v46  ;;  %v4196_v32 = vmov %v3283_v16  ;;  %v4200_v43 = vmov %v3259_v34  ;;  %v4218_v16 = vld [vmem:[#allocation13_spill] sm:$0xff] (%p1961_p10) }
 0x108   :  { %v2182_v58 = vadd.f32 %v2181_v45, %v2180_v33  ;;  %v4197_v33 = vmov %v3293_v21  ;;  %v4201_v45 = vmov %v3271_v40  ;;  %v3359_v46 = vmov (%p1961_p10), 0.0   ;;  %v4220_v21 = vld [vmem:[#allocation17_spill] sm:$0xff] (%p1961_p10) }
 0x109   :  { %v630_v54 = vadd.f32 %v2160_v48, %v2006_v39  ;;  %v4199_v39 = vmov %v3275_v42  ;;  %v3361_v47 = vmov (%p1961_p10), 0.0   ;;  %v4203_v48 = vmov (%p1961_p10), %v4202_v20 }
 0x10b   :  { %v671_v63 = vadd.f32 %v2182_v58, %v630_v54  ;;  %v4212_v54 = vmov (%p1961_p10), %v3261_v35  ;;  %v4219_v58 = vmov (%p1961_p10), %v4218_v16 }
 0x120   :  { %v2199_v49 = vpop.f32.mrf.mxu0 }
 0x121   :  { %v2221_v50 = vpop.f32.mrf.mxu1 }
 0x122   :  { %v2200_v51 = vpop.f32.mrf.mxu0 }
 0x123   :  { %v2222_v52 = vpop.f32.mrf.mxu1  ;;  %v2201_v55 = vadd.f32 %v2200_v51, %v2199_v49  ;;  %v4205_v49 = vmov (%p1961_p10), %v4204_v25  ;;  %v4209_v51 = vmov (%p1961_p10), %v4208_v23 }
 0x124   :  { %v2202_v56 = vpop.f32.mrf.mxu0  ;;  %v2223_v60 = vadd.f32 %v2222_v52, %v2221_v50  ;;  %v4207_v50 = vmov (%p1961_p10), %v4206_v17  ;;  %v4210_v52 = vmov (%p1961_p10), %v3265_v37 }
 0x125   :  { %v2224_v57 = vpop.f32.mrf.mxu1  ;;  %v709_v59 = vadd.f32 %v2201_v55, %v668_v53  ;;  %v4211_v53 = vmov (%p1961_p10), %v3279_v44  ;;  %v4213_v55 = vmov (%p1961_p10), %v3273_v41 }
 0x126   :  { %v2203_v61 = vpop.f32.mrf.mxu0 }
 0x127   :  { %v2225_v62 = vpop.f32.mrf.mxu1  ;;  %v750_v2 = vadd.f32 %v2223_v60, %v709_v59   ;;  %v2204_v3 = vadd.f32 %v2203_v61, %v2202_v56  ;;  %1963 = sbr.rel (!%p1961_p10) target bundleno = 1285 (0x505), region = 45  ;;  %v4215_v56 = vmov (%p1961_p10), %v4214_v19  ;;  %v4221_v59 = vmov (%p1961_p10), %v4220_v21 }
 0x128   :  { %v2226_v5 = vadd.f32 %v2225_v62, %v2224_v57  ;;  %v4217_v57 = vmov (%p1961_p10), %v4216_v24  ;;  %v4222_v60 = vmov (%p1961_p10), %v3263_v36  ;;  %v4223_v61 = vmov (%p1961_p10), %v3275_v42 }
 0x129   :  { %v712_v4 = vadd.f32 %v2204_v3, %v671_v63  ;;  %v4224_v62 = vmov (%p1961_p10), %v3259_v34  ;;  %v4225_v63 = vmov (%p1961_p10), %v3271_v40 }
 0x12b   :  { %v753_v6 = vadd.f32 %v2226_v5, %v712_v4  }
 0x12c LB: > { %4226 = vst [vmem:[#allocation21_spill] sm:$0xff] %v3059_v46  ;;  %4227 = vst [vmem:[#allocation22_spill] sm:$0xff] %v3063_v47  ;;  %v3476_v3 = vld [vmem:[#allocation5 + $0x78] sm:$0xff]   ;;  %v4231_v0 = vld [vmem:[#allocation11_spill] sm:$0xff]  ;;  %v830_v9 = vsub.f32 1.0, %v3063_v47  ;;  %v831_v11 = vsub.f32 1.0, %v3059_v46  ;;  %v792_v26 = vmin.f32 %v3135_v63, %v3127_v61  ;;  %v793_v27 = vmin.f32 %v3131_v62, %v3123_v60  ;;  %s3139_s6 = sphi %s3415_s6, %s4322_s6   ;;  %v3135_v63 = vphi %v4225_v63, %v4321_v63   ;;  %v3131_v62 = vphi %v4224_v62, %v4320_v62   ;;  %v3127_v61 = vphi %v4223_v61, %v4319_v61   ;;  %v3123_v60 = vphi %v4222_v60, %v4318_v60   ;;  %v3119_v59 = vphi %v4221_v59, %v4317_v59   ;;  %v3115_v58 = vphi %v4219_v58, %v4316_v58   ;;  %v3111_v57 = vphi %v4217_v57, %v4315_v57   ;;  %v3107_v56 = vphi %v4215_v56, %v4314_v56   ;;  %v3103_v55 = vphi %v4213_v55, %v4313_v55   ;;  %v3099_v54 = vphi %v4212_v54, %v4312_v54   ;;  %v3095_v53 = vphi %v4211_v53, %v4311_v53   ;;  %v3091_v52 = vphi %v4210_v52, %v4310_v52   ;;  %v3087_v51 = vphi %v4209_v51, %v4309_v51   ;;  %v3083_v50 = vphi %v4207_v50, %v4308_v50   ;;  %v3079_v49 = vphi %v4205_v49, %v4307_v49   ;;  %v3075_v48 = vphi %v4203_v48, %v4306_v48   ;;  %v3071_v2 = vphi %v750_v2, %v1864_v2   ;;  %v3067_v6 = vphi %v753_v6, %v1867_v6   ;;  %v3063_v47 = vphi %v3361_v47, %v1894_v47   ;;  %v3059_v46 = vphi %v3359_v46, %v1895_v46  }
 0x12d   : > { %4228 = vst [vmem:[#allocation23_spill] sm:$0xff] %v3075_v48  ;;  %4229 = vst [vmem:[#allocation24_spill] sm:$0xff] %v3079_v49  ;;  %v3478_v4 = vld [vmem:[#allocation5 + $0xf8] sm:$0xff]   ;;  %2227 = vmatprep.subr.bf16.mxu0 %v3476_v3  ;;  %v828_v7 = vsub.f32 %v3071_v2, %v4231_v0  ;;  %v4232_v1 = vld [vmem:[#allocation12_spill] sm:$0xff]  ;;  %v810_v28 = vmax.f32 %v3135_v63, %v3127_v61  ;;  %v811_v29 = vmax.f32 %v3131_v62, %v3123_v60  ;;  %s1896_s9 = sadd.s32 1, %s3139_s6  }
 0x12e   : > { %4230 = vst [vmem:[#allocation25_spill] sm:$0xff] %v3083_v50  ;;  %v3481_v5 = vld [vmem:[#allocation5 + $0x38] sm:$0xff]   ;;  %v829_v8 = vsub.f32 %v3067_v6, %v4232_v1  ;;  %2245 = vmatprep.subr.bf16.mxu1 %v3478_v4  ;;  %v3491_v12 = vld [vmem:[#allocation5 + $0x70] sm:$0xff]   ;;  %v832_v13 = vmul.f32 0.03125, %v830_v9  ;;  %v833_v2 = vmul.f32 0.03125, %v831_v11  ;;  %v3510_v30 = vld [vmem:[#allocation5 + $0x68] sm:$0xff]   ;;  %v794_v33 = vmin.f32 %v792_v26, %v3119_v59  ;;  %s4322_s6 = smov %s1896_s9 }
 0x12f   : > { %v3487_v10 = vld [vmem:[#allocation5 + $0xb8] sm:$0xff]   ;;  %2228 = vmatpush3.bf16.xpose.msra.mxu0 %v3481_v5  ;;  %v3494_v14 = vld [vmem:[#allocation5 + $0xf0] sm:$0xff]   ;;  %v3514_v32 = vld [vmem:[#allocation5 + $0xe8] sm:$0xff]   ;;  %v795_v38 = vmin.f32 %v793_v27, %v3115_v58  ;;  %v812_v39 = vmax.f32 %v810_v28, %v3119_v59  ;;  %v813_v43 = vmax.f32 %v811_v29, %v3115_v58  ;;  %v802_v26 = vmin.f32 %v3099_v54, %v3091_v52  ;;  %p778_p11 = scmp.lt.s32.totalorder %s1896_s9, 10 }
 0x130   : > { %2246 = vmatpush3.bf16.xpose.msra.mxu1 %v3487_v10  ;;  %2229 = vmatprep.subr.bf16.mxu0 %v3491_v12  ;;  %v834_v6 = vmul.f32 %v832_v13, %v828_v7  ;;  %v3498_v15 = vld [vmem:[#allocation5 + $0x30] sm:$0xff]   ;;  %v835_v18 = vmul.f32 %v833_v2, %v829_v8  ;;  %v796_v45 = vmin.f32 %v794_v33, %v3111_v57  ;;  %v3530_v2 = vld [vmem:[#allocation5 + $0x28] sm:$0xff]   ;;  %v3542_v29 = vld [vmem:[#allocation5 + $0x60] sm:$0xff]  }
 0x131   : > { %2247 = vmatprep.subr.bf16.mxu1 %v3494_v14  ;;  %v3500_v22 = vld [vmem:[#allocation5 + $0xb0] sm:$0xff]   ;;  %v797_v7 = vmin.f32 %v795_v38, %v3107_v56  ;;  %v814_v8 = vmax.f32 %v812_v39, %v3111_v57  ;;  %v815_v9 = vmax.f32 %v813_v43, %v3107_v56  ;;  %v819_v27 = vmax.f32 %v3103_v55, %v3095_v53  ;;  %v3545_v38 = vld [vmem:[#allocation5 + $0xe0] sm:$0xff]   ;;  %v3596_v46 = vld [vmem:[#allocation5 + $0x88] sm:$0xff]  }
 0x132   : > { %v3512_v31 = vpack.c.bf16 %v835_v18, %v834_v6  ;;  %v801_v6 = vmin.f32 %v3103_v55, %v3095_v53  ;;  %v3534_v18 = vld [vmem:[#allocation5 + $0xa8] sm:$0xff]   ;;  %v820_v28 = vmax.f32 %v3099_v54, %v3091_v52  ;;  %v804_v39 = vmin.f32 %v802_v26, %v3083_v50  ;;  %v3558_v26 = vld [vmem:[#allocation5 + $0x20] sm:$0xff]   ;;  %v3610_v17 = vld [vmem:[#allocation5 + $0x178] sm:$0xff]  }
 0x133   : > { %v798_v11 = vmin.f32 %v796_v45, %v797_v7  ;;  %v816_v13 = vmax.f32 %v814_v8, %v815_v9  ;;  %v821_v43 = vmax.f32 %v819_v27, %v3087_v51  ;;  %v3560_v27 = vld [vmem:[#allocation5 + $0xa0] sm:$0xff]   ;;  %v3612_v25 = vld [vmem:[#allocation5 + $0x1f8] sm:$0xff]   ;;  %v3622_v16 = vld [vmem:[#allocation5 + $0x170] sm:$0xff]  }
 0x134   : > { %2243 = vmatprep.mubr.bf16.mxu0 %v3512_v31  ;;  %2261 = vmatprep.mubr.bf16.mxu1 %v3512_v31  ;;  %v803_v33 = vmin.f32 %v801_v6, %v3087_v51  ;;  %v822_v45 = vmax.f32 %v820_v28, %v3083_v50  ;;  %v806_v8 = vmin.f32 %v804_v39, %v3075_v48  ;;  %v3562_v28 = vld [vmem:[#allocation5 + $0x58] sm:$0xff]   ;;  %v3598_v47 = vld [vmem:[#allocation5 + $0x40] sm:$0xff]   ;;  %v3634_v24 = vld [vmem:[#allocation5 + $0x130] sm:$0xff]  }
 0x135   : > { %799 = vmin.xlane.f32.xlu0 %v798_v11  ;;  %817 = vmax.xlane.f32.xlu1 %v816_v13  ;;  %v823_v9 = vmax.f32 %v821_v43, %v3079_v49  ;;  %v3570_v39 = vld [vmem:[#allocation5 + $0x18] sm:$0xff]   ;;  %v3600_v1 = vld [vmem:[#allocation5 + $0xc0] sm:$0xff]   ;;  %4235 = vst [vmem:[#allocation28_spill] sm:$0xff] %v3622_v16  ;;  %4237 = vst [vmem:[#allocation30_spill] sm:$0xff] %v3634_v24 }
 0x136   : > { %v805_v7 = vmin.f32 %v803_v33, %v3079_v49  ;;  %v824_v11 = vmax.f32 %v822_v45, %v3075_v48  ;;  %v3564_v33 = vld [vmem:[#allocation5 + $0xd8] sm:$0xff]   ;;  %v3574_v45 = vld [vmem:[#allocation5 + $0x50] sm:$0xff]   ;;  %v3606_v0 = vld [vmem:[#allocation5] sm:$0xff]  }
 0x137   : > { %2230 = vmatpush3.bf16.xpose.msra.mxu0 %v3498_v15  ;;  %v3572_v43 = vld [vmem:[#allocation5 + $0x98] sm:$0xff]   ;;  %v3608_v20 = vld [vmem:[#allocation5 + $0x80] sm:$0xff]   ;;  %v3624_v48 = vld [vmem:[#allocation5 + $0x1f0] sm:$0xff]  }
 0x138   : > { %2248 = vmatpush3.bf16.xpose.msra.mxu1 %v3500_v22  ;;  %2231 = vmatprep.subr.bf16.mxu0 %v3510_v30  ;;  %v807_v13 = vmin.f32 %v805_v7, %v806_v8  ;;  %v825_v6 = vmax.f32 %v823_v9, %v824_v11  ;;  %v3576_v7 = vld [vmem:[#allocation5 + $0xd0] sm:$0xff]   ;;  %v3586_v11 = vld [vmem:[#allocation5 + $0x48] sm:$0xff]   ;;  %v3618_v23 = vld [vmem:[#allocation5 + $0x138] sm:$0xff]   ;;  %4236 = vst [vmem:[#allocation29_spill] sm:$0xff] %v3624_v48 }
 0x139   : > { %2249 = vmatprep.subr.bf16.mxu1 %v3514_v32  ;;  %v3582_v8 = vld [vmem:[#allocation5 + $0x10] sm:$0xff]   ;;  %4233 = vst [vmem:[#allocation26_spill] sm:$0xff] %v3618_v23  ;;  %v3620_v19 = vld [vmem:[#allocation5 + $0x1b8] sm:$0xff]   ;;  %v3638_v21 = vld [vmem:[#allocation5 + $0x168] sm:$0xff]  }
 0x13a   : > { %808 = vmin.xlane.f32.xlu0 %v807_v13  ;;  %826 = vmax.xlane.f32.xlu1 %v825_v6  ;;  %v3584_v9 = vld [vmem:[#allocation5 + $0x90] sm:$0xff]   ;;  %v3588_v13 = vld [vmem:[#allocation5 + $0xc8] sm:$0xff]   ;;  %4234 = vst [vmem:[#allocation27_spill] sm:$0xff] %v3620_v19  ;;  %4239 = vst [vmem:[#allocation32_spill] sm:$0xff] %v3638_v21 }
 0x13b   : > { %v3594_v6 = vld [vmem:[#allocation5 + $0x8] sm:$0xff]   ;;  %v3636_v50 = vld [vmem:[#allocation5 + $0x1b0] sm:$0xff]  }
 0x13c   : > { %4238 = vst [vmem:[#allocation31_spill] sm:$0xff] %v3636_v50  ;;  %v3640_v49 = vld [vmem:[#allocation5 + $0x1e8] sm:$0xff]  }
 0x13d   : > { %4240 = vst [vmem:[#allocation33_spill] sm:$0xff] %v3640_v49 }
 0x13f   : > { %2232 = vmatpush3.bf16.xpose.msra.mxu0 %v3530_v2 }
 0x140   : > { %2250 = vmatpush3.bf16.xpose.msra.mxu1 %v3534_v18  ;;  %2233 = vmatprep.subr.bf16.mxu0 %v3542_v29 }
 0x141   : > { %2251 = vmatprep.subr.bf16.mxu1 %v3545_v38 }
 0x147   : > { %2234 = vmatpush3.bf16.xpose.msra.mxu0 %v3558_v26 }
 0x148   : > { %2252 = vmatpush3.bf16.xpose.msra.mxu1 %v3560_v27  ;;  %2235 = vmatprep.subr.bf16.mxu0 %v3562_v28 }
 0x149   : > { %2253 = vmatprep.subr.bf16.mxu1 %v3564_v33 }
 0x14f   : > { %2236 = vmatpush3.bf16.xpose.msra.mxu0 %v3570_v39 }
 0x150   : > { %2254 = vmatpush3.bf16.xpose.msra.mxu1 %v3572_v43  ;;  %2237 = vmatprep.subr.bf16.mxu0 %v3574_v45 }
 0x151   : > { %2255 = vmatprep.subr.bf16.mxu1 %v3576_v7 }
 0x157   : > { %2238 = vmatpush3.bf16.xpose.msra.mxu0 %v3582_v8 }
 0x158   : > { %2256 = vmatpush3.bf16.xpose.msra.mxu1 %v3584_v9  ;;  %2239 = vmatprep.subr.bf16.mxu0 %v3586_v11 }
 0x159   : > { %2257 = vmatprep.subr.bf16.mxu1 %v3588_v13 }
 0x15f   : > { %2240 = vmatpush3.bf16.xpose.msra.mxu0 %v3594_v6 }
 0x160   : > { %2258 = vmatpush3.bf16.xpose.msra.mxu1 %v3596_v46  ;;  %2241 = vmatprep.subr.bf16.mxu0 %v3598_v47 }
 0x161   : > { %2259 = vmatprep.subr.bf16.mxu1 %v3600_v1 }
 0x167   : > { %2242 = vmatpush3.bf16.xpose.msra.mxu0 %v3606_v0 }
 0x168   : > { %2260 = vmatpush3.bf16.xpose.msra.mxu1 %v3608_v20  ;;  %2263 = vmatprep.subr.bf16.mxu0 %v3610_v17 }
 0x169   : > { %2281 = vmatprep.subr.bf16.mxu1 %v3612_v25 }
 0x16e   : > { %2244 = vmatmul.mubr.bf16.vlgmr.msra.gmra.mxu0 %v3512_v31 }
 0x16f   : > { %2262 = vmatmul.mubr.bf16.vlgmr.msra.gmra.mxu1 %v3512_v31  ;;  %2264 = vmatpush3.bf16.xpose.msra.mxu0 %v3618_v23  ;;  %v3652_v23 = vld [vmem:[#allocation5 + $0x1e0] sm:$0xff]  }
 0x170   : > { %2282 = vmatpush3.bf16.xpose.msra.mxu1 %v3620_v19  ;;  %2265 = vmatprep.subr.bf16.mxu0 %v3622_v16  ;;  %v3648_v16 = vld [vmem:[#allocation5 + $0x1a8] sm:$0xff]   ;;  %v3650_v19 = vld [vmem:[#allocation5 + $0x160] sm:$0xff]   ;;  %4244 = vst [vmem:[#allocation37_spill] sm:$0xff] %v3652_v23 }
 0x171   : > { %2283 = vmatprep.subr.bf16.mxu1 %v3624_v48  ;;  %2279 = vmatprep.mubr.bf16.mxu0 %v3512_v31  ;;  %v3646_v48 = vld [vmem:[#allocation5 + $0x128] sm:$0xff]   ;;  %4242 = vst [vmem:[#allocation35_spill] sm:$0xff] %v3648_v16  ;;  %4243 = vst [vmem:[#allocation36_spill] sm:$0xff] %v3650_v19 }
 0x172   : > { %2297 = vmatprep.mubr.bf16.mxu1 %v3512_v31  ;;  %4241 = vst [vmem:[#allocation34_spill] sm:$0xff] %v3646_v48 }
 0x177   : > { %2266 = vmatpush3.bf16.xpose.msra.mxu0 %v3634_v24  ;;  %v3664_v24 = vld [vmem:[#allocation5 + $0x1d8] sm:$0xff]  }
 0x178   : > { %2284 = vmatpush3.bf16.xpose.msra.mxu1 %v3636_v50  ;;  %2267 = vmatprep.subr.bf16.mxu0 %v3638_v21  ;;  %v3658_v50 = vld [vmem:[#allocation5 + $0x120] sm:$0xff]   ;;  %4248 = vst [vmem:[#allocation41_spill] sm:$0xff] %v3664_v24 }
 0x179   : > { %2285 = vmatprep.subr.bf16.mxu1 %v3640_v49  ;;  %4245 = vst [vmem:[#allocation38_spill] sm:$0xff] %v3658_v50  ;;  %v3660_v21 = vld [vmem:[#allocation5 + $0x1a0] sm:$0xff]   ;;  %v3662_v49 = vld [vmem:[#allocation5 + $0x158] sm:$0xff]  }
 0x17a   : > { %4246 = vst [vmem:[#allocation39_spill] sm:$0xff] %v3660_v21  ;;  %4247 = vst [vmem:[#allocation40_spill] sm:$0xff] %v3662_v49 }
 0x17f   : > { %2268 = vmatpush3.bf16.xpose.msra.mxu0 %v3646_v48  ;;  %v3676_v48 = vld [vmem:[#allocation5 + $0x1d0] sm:$0xff]  }
 0x180   : > { %2286 = vmatpush3.bf16.xpose.msra.mxu1 %v3648_v16  ;;  %2269 = vmatprep.subr.bf16.mxu0 %v3650_v19  ;;  %v3670_v16 = vld [vmem:[#allocation5 + $0x118] sm:$0xff]   ;;  %4252 = vst [vmem:[#allocation45_spill] sm:$0xff] %v3676_v48 }
 0x181   : > { %2287 = vmatprep.subr.bf16.mxu1 %v3652_v23  ;;  %4249 = vst [vmem:[#allocation42_spill] sm:$0xff] %v3670_v16  ;;  %v3672_v19 = vld [vmem:[#allocation5 + $0x198] sm:$0xff]   ;;  %v3674_v23 = vld [vmem:[#allocation5 + $0x150] sm:$0xff]  }
 0x182   : > { %4250 = vst [vmem:[#allocation43_spill] sm:$0xff] %v3672_v19  ;;  %4251 = vst [vmem:[#allocation44_spill] sm:$0xff] %v3674_v23 }
 0x187   : > { %2270 = vmatpush3.bf16.xpose.msra.mxu0 %v3658_v50  ;;  %v3688_v50 = vld [vmem:[#allocation5 + $0x1c8] sm:$0xff]  }
 0x188   : > { %2288 = vmatpush3.bf16.xpose.msra.mxu1 %v3660_v21  ;;  %2271 = vmatprep.subr.bf16.mxu0 %v3662_v49  ;;  %v3682_v21 = vld [vmem:[#allocation5 + $0x110] sm:$0xff]  }
 0x189   : > { %2289 = vmatprep.subr.bf16.mxu1 %v3664_v24  ;;  %v3684_v49 = vld [vmem:[#allocation5 + $0x190] sm:$0xff]   ;;  %v3686_v24 = vld [vmem:[#allocation5 + $0x148] sm:$0xff]  }
 0x18a   : > { %4253 = vst [vmem:[#allocation46_spill] sm:$0xff] %v3684_v49  ;;  %4254 = vst [vmem:[#allocation47_spill] sm:$0xff] %v3686_v24 }
 0x18f   : > { %2272 = vmatpush3.bf16.xpose.msra.mxu0 %v3670_v16  ;;  %v3700_v16 = vld [vmem:[#allocation5 + $0x1c0] sm:$0xff]  }
 0x190   : > { %2290 = vmatpush3.bf16.xpose.msra.mxu1 %v3672_v19  ;;  %2273 = vmatprep.subr.bf16.mxu0 %v3674_v23  ;;  %v3694_v19 = vld [vmem:[#allocation5 + $0x108] sm:$0xff]  }
 0x191   : > { %2291 = vmatprep.subr.bf16.mxu1 %v3676_v48  ;;  %v3696_v23 = vld [vmem:[#allocation5 + $0x188] sm:$0xff]   ;;  %v3698_v48 = vld [vmem:[#allocation5 + $0x140] sm:$0xff]  }
 0x197   : > { %2274 = vmatpush3.bf16.xpose.msra.mxu0 %v3682_v21 }
 0x198   : > { %2292 = vmatpush3.bf16.xpose.msra.mxu1 %v3684_v49  ;;  %2275 = vmatprep.subr.bf16.mxu0 %v3686_v24  ;;  %v3706_v49 = vld [vmem:[#allocation5 + $0x100] sm:$0xff]  }
 0x199   : > { %2293 = vmatprep.subr.bf16.mxu1 %v3688_v50  ;;  %v3708_v24 = vld [vmem:[#allocation5 + $0x180] sm:$0xff]  }
 0x19f   : > { %2276 = vmatpush3.bf16.xpose.msra.mxu0 %v3694_v19 }
 0x1a0   : > { %2294 = vmatpush3.bf16.xpose.msra.mxu1 %v3696_v23  ;;  %2277 = vmatprep.subr.bf16.mxu0 %v3698_v48 }
 0x1a1   : > { %2295 = vmatprep.subr.bf16.mxu1 %v3700_v16 }
 0x1a7   : > { %2278 = vmatpush3.bf16.xpose.msra.mxu0 %v3706_v49 }
 0x1a8   : > { %2296 = vmatpush3.bf16.xpose.msra.mxu1 %v3708_v24  ;;  %2299 = vmatprep.subr.bf16.mxu0 %v3476_v3 }
 0x1a9   : > { %2321 = vmatprep.subr.bf16.mxu1 %v3478_v4 }
 0x1ae   : > { %2280 = vmatmul.mubr.bf16.vlgmr.msra.gmra.mxu0 %v3512_v31 }
 0x1af   : > { %2298 = vmatmul.mubr.bf16.vlgmr.msra.gmra.mxu1 %v3512_v31  ;;  %2300 = vmatpush3.bf16.msra.mxu0 %v3481_v5 }
 0x1b0   : > { %2322 = vmatpush3.bf16.msra.mxu1 %v3487_v10  ;;  %2301 = vmatprep.subr.bf16.mxu0 %v3491_v12 }
 0x1b1   : > { %2323 = vmatprep.subr.bf16.mxu1 %v3494_v14 }
 0x1b3   : > { %2302 = vmatpush3.bf16.msra.mxu0 %v3498_v15 }
 0x1b4   : > { %2324 = vmatpush3.bf16.msra.mxu1 %v3500_v22  ;;  %2303 = vmatprep.subr.bf16.mxu0 %v3510_v30 }
 0x1b5   : > { %2325 = vmatprep.subr.bf16.mxu1 %v3514_v32 }
 0x1b7   : > { %2304 = vmatpush3.bf16.msra.mxu0 %v3530_v2 }
 0x1b8   : > { %2326 = vmatpush3.bf16.msra.mxu1 %v3534_v18  ;;  %2305 = vmatprep.subr.bf16.mxu0 %v3542_v29 }
 0x1b9   : > { %2327 = vmatprep.subr.bf16.mxu1 %v3545_v38 }
 0x1bb   : > { %2306 = vmatpush3.bf16.msra.mxu0 %v3558_v26 }
 0x1bc   : > { %2328 = vmatpush3.bf16.msra.mxu1 %v3560_v27  ;;  %2307 = vmatprep.subr.bf16.mxu0 %v3562_v28 }
 0x1bd   : > { %2329 = vmatprep.subr.bf16.mxu1 %v3564_v33 }
 0x1be   : > { %v3748_v12 = vpop.xlane.xlu0 %799  ;;  %v3754_v15 = vpop.xlane.xlu1 %817 }
 0x1bf   : > { %2308 = vmatpush3.bf16.msra.mxu0 %v3570_v39 }
 0x1c0   : > { %2330 = vmatpush3.bf16.msra.mxu1 %v3572_v43  ;;  %2309 = vmatprep.subr.bf16.mxu0 %v3574_v45 }
 0x1c1   : > { %2331 = vmatprep.subr.bf16.mxu1 %v3576_v7 }
 0x1c3   : > { %2310 = vmatpush3.bf16.msra.mxu0 %v3582_v8  ;;  %v3769_v38 = vpop.xlane.xlu1 %826 }
 0x1c4   : > { %2332 = vmatpush3.bf16.msra.mxu1 %v3584_v9  ;;  %2311 = vmatprep.subr.bf16.mxu0 %v3586_v11 }
 0x1c5   : > { %2333 = vmatprep.subr.bf16.mxu1 %v3588_v13 }
 0x1c7   : > { %2312 = vmatpush3.bf16.msra.mxu0 %v3594_v6 }
 0x1c8   : > { %2334 = vmatpush3.bf16.msra.mxu1 %v3596_v46  ;;  %2313 = vmatprep.subr.bf16.mxu0 %v3598_v47 }
 0x1c9   : > { %2335 = vmatprep.subr.bf16.mxu1 %v3600_v1 }
 0x1cb   : > { %2314 = vmatpush3.bf16.msra.mxu0 %v3606_v0 }
 0x1cc   : > { %2336 = vmatpush3.bf16.msra.mxu1 %v3608_v20  ;;  %2343 = vmatprep.subr.bf16.mxu0 %v3610_v17 }
 0x1cd   : > { %2365 = vmatprep.subr.bf16.mxu1 %v3612_v25 }
 0x22e   : > { %v1383_v3 = vpop.f32.mrf.mxu0 }
 0x22f   : > { %v1426_v4 = vpop.f32.mrf.mxu1  ;;  %v1521_v46 = vsub.f32 %v3135_v63, %v1383_v3 }
 0x230   : > { %v1385_v5 = vpop.f32.mrf.mxu0  ;;  %v1523_v47 = vsub.f32 %v3127_v61, %v1426_v4  ;;  %v3761_v61 = vpop.xlane.xlu0 %808 }
 0x231   : > { %v1428_v10 = vpop.f32.mrf.mxu1  ;;  %v1522_v1 = vsub.f32 %v3131_v62, %v1385_v5  ;;  %v1537_v22 = vmax.f32 %v3748_v12, %v1521_v46 }
 0x232   : > { %v1387_v14 = vpop.f32.mrf.mxu0  ;;  %v1524_v0 = vsub.f32 %v3123_v60, %v1428_v10  ;;  %v1539_v30 = vmax.f32 %v3748_v12, %v1523_v47 }
 0x233   : > { %v1430_v20 = vpop.f32.mrf.mxu1  ;;  %v1529_v17 = vsub.f32 %v3103_v55, %v1387_v14  ;;  %v1538_v31 = vmax.f32 %v3748_v12, %v1522_v1  ;;  %v1553_v2 = vmin.f32 %v3754_v15, %v1537_v22 }
 0x234   : > { %v1389_v25 = vpop.f32.mrf.mxu0  ;;  %v1540_v63 = vmax.f32 %v3748_v12, %v1524_v0  ;;  %v1531_v62 = vsub.f32 %v3095_v53, %v1430_v20  ;;  %v1555_v55 = vmin.f32 %v3754_v15, %v1539_v30 }
 0x235   : > { %v1432_v32 = vpop.f32.mrf.mxu1  ;;  %v1530_v60 = vsub.f32 %v3099_v54, %v1389_v25  ;;  %v1545_v18 = vmax.f32 %v3761_v61, %v1529_v17  ;;  %v1554_v26 = vmin.f32 %v3754_v15, %v1538_v31  ;;  %v3776_v54 = vsub.f32 %v1553_v2, %v3271_v40 }
 0x236   : > { %v1532_v29 = vsub.f32 %v3091_v52, %v1432_v32  ;;  %v1556_v27 = vmin.f32 %v3754_v15, %v1540_v63  ;;  %v1547_v28 = vmax.f32 %v3761_v61, %v1531_v62  ;;  %v3779_v33 = vsub.f32 %v1555_v55, %v3275_v42 }
 0x237   : > { %v1546_v53 = vmax.f32 %v3761_v61, %v1530_v60  ;;  %v1561_v39 = vmin.f32 %v3769_v38, %v1545_v18  ;;  %v3784_v43 = vsub.f32 %v1554_v26, %v3259_v34  ;;  %v1585_v9 = vand.u32 2147483647, %v3776_v54  ;;  %v4255_v26 = vld [vmem:[#allocation24_spill] sm:$0xff] }
 0x238   : > { %v1548_v52 = vmax.f32 %v3761_v61, %v1532_v29  ;;  %v3787_v45 = vsub.f32 %v1556_v27, %v3263_v36  ;;  %v1563_v7 = vmin.f32 %v3769_v38, %v1547_v28  ;;  %v1587_v11 = vand.u32 2147483647, %v3779_v33 }
 0x239   : > { %v1562_v8 = vmin.f32 %v3769_v38, %v1546_v53  ;;  %v3794_v13 = vsub.f32 %v1561_v39, %v3273_v41  ;;  %v1586_v3 = vand.u32 2147483647, %v3784_v43  ;;  %v4256_v53 = vld [vmem:[#allocation17_spill] sm:$0xff] }
 0x23a   : > { %v1588_v4 = vand.u32 2147483647, %v3787_v45  ;;  %v1564_v5 = vmin.f32 %v3769_v38, %v1548_v52  ;;  %v3801_v47 = vsub.f32 %v1563_v7, %v3279_v44  ;;  %v1601_v22 = vmax.f32.f32 %v1585_v9, %v1587_v11  ;;  %v4258_v11 = vld [vmem:[#allocation19_spill] sm:$0xff] }
 0x23b   : > { %v3805_v0 = vsub.f32 %v1562_v8, %v3261_v35  ;;  %v1593_v30 = vand.u32 2147483647, %v3794_v13 }
 0x23c   : > { %v1602_v62 = vmax.f32.f32 %v1586_v3, %v1588_v4  ;;  %v1595_v55 = vand.u32 2147483647, %v3801_v47  ;;  %v4259_v4 = vld [vmem:[#allocation23_spill] sm:$0xff] }
 0x23d   : > { %v1594_v28 = vand.u32 2147483647, %v3805_v0 }
 0x26e   : > { %v1469_v6 = vpop.f32.mrf.mxu0 }
 0x26f   : > { %v1525_v10 = vsub.f32 %v3119_v59, %v1469_v6  ;;  %v1512_v46 = vpop.f32.mrf.mxu1 }
 0x270   : > { %v1527_v14 = vsub.f32 %v3111_v57, %v1512_v46  ;;  %v1471_v1 = vpop.f32.mrf.mxu0  ;;  %v3813_v57 = vsub.f32 %v1564_v5, %v3265_v37  ;;  %v4260_v46 = vld [vmem:[#allocation13_spill] sm:$0xff] }
 0x271   : > { %v1541_v20 = vmax.f32 %v3748_v12, %v1525_v10  ;;  %v1526_v17 = vsub.f32 %v3115_v58, %v1471_v1  ;;  %v1514_v25 = vpop.f32.mrf.mxu1 }
 0x272   : > { %v1543_v59 = vmax.f32 %v3748_v12, %v1527_v14  ;;  %v1528_v31 = vsub.f32 %v3107_v56, %v1514_v25  ;;  %v1473_v63 = vpop.f32.mrf.mxu0 }
 0x273   : > { %v1557_v32 = vmin.f32 %v3754_v15, %v1541_v20  ;;  %v1542_v60 = vmax.f32 %v3748_v12, %v1526_v17  ;;  %v1533_v2 = vsub.f32 %v3087_v51, %v1473_v63  ;;  %v1516_v58 = vpop.f32.mrf.mxu1  ;;  %v4257_v51 = vld [vmem:[#allocation25_spill] sm:$0xff]  ;;  %v4261_v17 = vld [vmem:[#allocation15_spill] sm:$0xff] }
 0x274   : > { %v1559_v18 = vmin.f32 %v3754_v15, %v1543_v59  ;;  %v1544_v29 = vmax.f32 %v3748_v12, %v1528_v31  ;;  %v1535_v56 = vsub.f32 %v4255_v26, %v1516_v58  ;;  %v1475_v27 = vpop.f32.mrf.mxu0 }
 0x275   : > { %v3824_v39 = vsub.f32 %v1557_v32, %v4256_v53  ;;  %v1558_v52 = vmin.f32 %v3754_v15, %v1542_v60  ;;  %v1549_v7 = vmax.f32 %v3761_v61, %v1533_v2  ;;  %v1534_v8 = vsub.f32 %v4257_v51, %v1475_v27  ;;  %v1518_v9 = vpop.f32.mrf.mxu1  ;;  %v4262_v32 = vld [vmem:[#allocation18_spill] sm:$0xff] }
 0x276   : > { %v3830_v6 = vsub.f32 %v1559_v18, %v4258_v11  ;;  %v1560_v12 = vmin.f32 %v3754_v15, %v1544_v29  ;;  %v1551_v3 = vmax.f32 %v3761_v61, %v1535_v56  ;;  %v1536_v5 = vsub.f32 %v4259_v4, %v1518_v9  ;;  %v4263_v18 = vld [vmem:[#allocation20_spill] sm:$0xff] }
 0x277   : > { %v1589_v10 = vand.u32 2147483647, %v3824_v39  ;;  %v1574_v14 = vsub.f32 %v1558_v52, %v4260_v46  ;;  %v1565_v1 = vmin.f32 %v3769_v38, %v1549_v7  ;;  %v1550_v20 = vmax.f32 %v3761_v61, %v1534_v8  ;;  %v4265_v9 = vld [vmem:[#allocation16_spill] sm:$0xff] }
 0x278   : > { %v1576_v25 = vsub.f32 %v1560_v12, %v4261_v17  ;;  %v1567_v59 = vmin.f32 %v3769_v38, %v1551_v3  ;;  %v1552_v31 = vmax.f32 %v3761_v61, %v1536_v5  ;;  %v1596_v15 = vand.u32 2147483647, %v3813_v57  ;;  %v4264_v61 = vld [vmem:[#allocation14_spill] sm:$0xff] }
 0x279   : > { %v1590_v63 = vand.u32 2147483647, %v1574_v14  ;;  %v3844_v60 = vsub.f32 %v1565_v1, %v4262_v32  ;;  %v1566_v2 = vmin.f32 %v3769_v38, %v1550_v20  ;;  %v1603_v58 = vmax.f32.f32 %v1601_v22, %v1589_v10 }
 0x27a   : > { %v3848_v29 = vsub.f32 %v1567_v59, %v4263_v18  ;;  %v1568_v26 = vmin.f32 %v3769_v38, %v1552_v31  ;;  %v1591_v56 = vand.u32 2147483647, %v3830_v6  ;;  %v1610_v27 = vmax.f32.f32 %v1593_v30, %v1595_v55 }
 0x27b   : > { %v1597_v52 = vand.u32 2147483647, %v3844_v60  ;;  %v1582_v7 = vsub.f32 %v1566_v2, %v4264_v61  ;;  %v1592_v51 = vand.u32 2147483647, %v1576_v25  ;;  %v1604_v8 = vmax.f32.f32 %v1602_v62, %v1590_v63 }
 0x27c   : > { %v1584_v12 = vsub.f32 %v1568_v26, %v4265_v9  ;;  %v1611_v3 = vmax.f32.f32 %v1594_v28, %v1596_v15  ;;  %v1605_v5 = vmax.f32.f32 %v1603_v58, %v1591_v56  ;;  %v1599_v20 = vand.u32 2147483647, %v3848_v29 }
 0x27d   : > { %v1598_v4 = vand.u32 2147483647, %v1582_v7  ;;  %v1606_v22 = vmax.f32.f32 %v1604_v8, %v1592_v51  ;;  %v1612_v10 = vmax.f32.f32 %v1610_v27, %v1597_v52 }
 0x27e   : > { %v1600_v38 = vand.u32 2147483647, %v1584_v12 }
 0x27f   : > { %v1607_v1 = vmax.f32.f32 %v1605_v5, %v1606_v22  ;;  %v1613_v59 = vmax.f32.f32 %v1611_v3, %v1598_v4  ;;  %v1614_v30 = vmax.f32.f32 %v1612_v10, %v1599_v20 }
 0x281   : > { %1608 = vmax.xlane.f32.xlu0 %v1607_v1  ;;  %v1615_v55 = vmax.f32.f32 %v1613_v59, %v1600_v38 }
 0x283   : > { %v1616_v31 = vmax.f32.f32 %v1614_v30, %v1615_v55 }
 0x285   : > { %1617 = vmax.xlane.f32.xlu1 %v1616_v31 }
 0x30a   : > { %v1609_v2 = vpop.xlane.xlu0 %1608 }
 0x30b   : > { %2839 = vrcp.f32 %v1609_v2  ;;  %vm1619_vm0 = vcmp.gt.f32.partialorder %v1609_v2, 0.007843138 }
 0x30e   : > { %v1618_v62 = vpop.xlane.xlu1 %1617 }
 0x30f   : > { %2841 = vrcp.f32 %v1618_v62  ;;  %vm1620_vm1 = vcmp.gt.f32.partialorder %v1618_v62, 0.007843138 }
 0x318   : > { %v2840_v63 = vpop.eup %2839 }
 0x319   : > { %v1622_v28 = vmul.f32 0.007843138, %v2840_v63 }
 0x31b   : > { %v3856_v15 = vsel %vm1619_vm0, %v1622_v28, 1.0 }
 0x31c   : > { %v2842_v58 = vpop.eup %2841  ;;  %v1628_v26 = vmul.f32 %v3856_v15, %v3784_v43  ;;  %v1630_v56 = vmul.f32 %v3856_v15, %v3787_v45  ;;  %v1627_v27 = vmul.f32 %v3856_v15, %v3776_v54  ;;  %v1629_v52 = vmul.f32 %v3856_v15, %v3779_v33 }
 0x31d   : > { %v1624_v51 = vmul.f32 0.007843138, %v2842_v58  ;;  %v1632_v8 = vmul.f32 %v3856_v15, %v1574_v14  ;;  %v1634_v3 = vmul.f32 %v3856_v15, %v1576_v25 }
 0x31e   : > { %v1644_v4 = vadd.f32 %v1628_v26, %v3259_v34  ;;  %v1646_v5 = vadd.f32 %v1630_v56, %v3263_v36  ;;  %v1643_v43 = vadd.f32 %v1627_v27, %v3271_v40  ;;  %v1645_v45 = vadd.f32 %v1629_v52, %v3275_v42 }
 0x31f   : > { %v3872_v22 = vsel %vm1620_vm1, %v1624_v51, 1.0  ;;  %v1648_v55 = vadd.f32 %v1632_v8, %v4260_v46 }
 0x320   : > { %v1636_v54 = vmul.f32 %v3872_v22, %v3805_v0  ;;  %v1660_v33 = vmax.f32 %v1644_v4, 0.0  ;;  %v1638_v10 = vmul.f32 %v3872_v22, %v3813_v57  ;;  %v1662_v14 = vmax.f32 %v1646_v5, 0.0 }
 0x321   : > { %v1635_v25 = vmul.f32 %v3872_v22, %v3794_v13  ;;  %v1659_v1 = vmax.f32 %v1643_v43, 0.0  ;;  %v1637_v20 = vmul.f32 %v3872_v22, %v3801_v47  ;;  %v1661_v38 = vmax.f32 %v1645_v45, 0.0 }
 0x322   : > { %v1652_v59 = vadd.f32 %v1636_v54, %v3261_v35  ;;  %v1654_v30 = vadd.f32 %v1638_v10, %v3265_v37  ;;  %v1650_v0 = vadd.f32 %v1634_v3, %v4261_v17  ;;  %v3886_v62 = vmin.f32 %v1660_v33, 1.0  }
 0x323   : > { %v3888_v57 = vmin.f32 %v1662_v14, 1.0   ;;  %v1651_v31 = vadd.f32 %v1635_v25, %v3273_v41  ;;  %v1653_v13 = vadd.f32 %v1637_v20, %v3279_v44  ;;  %v3892_v47 = vmin.f32 %v1659_v1, 1.0  }
 0x324   : > { %v4266_v4 = vmov %v3886_v62  ;;  %v1668_v2 = vmax.f32 %v1652_v59, 0.0  ;;  %v1670_v63 = vmax.f32 %v1654_v30, 0.0  ;;  %v1640_v28 = vmul.f32 %v3872_v22, %v1582_v7  ;;  %v4276_v59 = vld [vmem:[#allocation27_spill] sm:$0xff] }
 0x325   : > { %v4267_v5 = vmov %v3888_v57  ;;  %v4268_v45 = vmov %v3892_v47  ;;  %v1667_v58 = vmax.f32 %v1651_v31, 0.0  ;;  %v1669_v26 = vmax.f32 %v1653_v13, 0.0  ;;  %v4278_v57 = vld [vmem:[#allocation29_spill] sm:$0xff]  ;;  %v4279_v31 = vld [vmem:[#allocation30_spill] sm:$0xff]  ;;  %v4280_v13 = vld [vmem:[#allocation31_spill] sm:$0xff] }
 0x326   : > { %v3895_v56 = vmin.f32 %v1661_v38, 1.0   ;;  %v1642_v46 = vmul.f32 %v3872_v22, %v1584_v12  ;;  %v3898_v54 = vmin.f32 %v1668_v2, 1.0   ;;  %v3900_v52 = vmin.f32 %v1670_v63, 1.0   ;;  %v4275_v38 = vld [vmem:[#allocation26_spill] sm:$0xff]  ;;  %v4281_v2 = vld [vmem:[#allocation32_spill] sm:$0xff]  ;;  %v4282_v63 = vld [vmem:[#allocation33_spill] sm:$0xff] }
 0x327   : > { %v1656_v62 = vadd.f32 %v1640_v28, %v4264_v61  ;;  %v1664_v51 = vmax.f32 %v1648_v55, 0.0  ;;  %v3903_v55 = vmin.f32 %v1667_v58, 1.0   ;;  %v3905_v43 = vmin.f32 %v1669_v26, 1.0   ;;  %v4283_v47 = vld [vmem:[#allocation34_spill] sm:$0xff]  ;;  %v4284_v28 = vld [vmem:[#allocation35_spill] sm:$0xff]  ;;  %v4286_v26 = vld [vmem:[#allocation37_spill] sm:$0xff] }
 0x328   : > { %v4269_v8 = vmov %v3895_v56  ;;  %v4270_v17 = vmov %v3898_v54  ;;  %v4271_v27 = vmov %v3900_v52  ;;  %v1658_v33 = vadd.f32 %v1642_v46, %v4265_v9  ;;  %v4288_v46 = vld [vmem:[#allocation39_spill] sm:$0xff] }
 0x329   : > { %v4272_v3 = vmov %v3903_v55  ;;  %v1666_v7 = vmax.f32 %v1650_v0, 0.0  ;;  %v1692_v10 = vpack.c.bf16 %v4270_v17, %v4266_v4  ;;  %v1694_v12 = vpack.c.bf16 %v4271_v27, %v4267_v5  ;;  %v4277_v0 = vld [vmem:[#allocation28_spill] sm:$0xff] }
 0x32a   : > { %v1672_v14 = vmax.f32 %v1656_v62, 0.0  ;;  %v1691_v52 = vpack.c.bf16 %v4272_v3, %v4268_v45  ;;  %v1693_v61 = vpack.c.bf16 %v3905_v43, %v4269_v8  ;;  %v1674_v54 = vmax.f32 %v1658_v33, 0.0  ;;  %v4289_v62 = vld [vmem:[#allocation40_spill] sm:$0xff] }
 0x32b   : > { %1738 = vmatprep.mubr.bf16.mxu0 %v1692_v10  ;;  %1779 = vmatprep.mubr.bf16.mxu1 %v1694_v12  ;;  %v3916_v58 = vmin.f32 %v1664_v51, 1.0   ;;  %v3920_v56 = vmin.f32 %v1666_v7, 1.0   ;;  %v4290_v51 = vld [vmem:[#allocation41_spill] sm:$0xff]  ;;  %v1639_v33 = vmul.f32 %v3872_v22, %v3844_v60  ;;  %v1641_v7 = vmul.f32 %v3872_v22, %v3848_v29 }
 0x32c   : > { %v3918_v9 = vmin.f32 %v1672_v14, 1.0   ;;  %1739 = vmatmul.mubr.bf16.vlgmr.msra.gmra.mxu0 %v1691_v52  ;;  %1780 = vmatmul.mubr.bf16.vlgmr.msra.gmra.mxu1 %v1693_v61  ;;  %v3922_v20 = vmin.f32 %v1674_v54, 1.0   ;;  %v1631_v10 = vmul.f32 %v3856_v15, %v3824_v39  ;;  %v1633_v12 = vmul.f32 %v3856_v15, %v3830_v6  ;;  %v4291_v14 = vld [vmem:[#allocation42_spill] sm:$0xff]  ;;  %v4292_v52 = vld [vmem:[#allocation43_spill] sm:$0xff]  ;;  %v4293_v61 = vld [vmem:[#allocation44_spill] sm:$0xff] }
 0x32d   : > { %v4273_v25 = vmov %v3916_v58  ;;  %v4274_v1 = vmov %v3920_v56  ;;  %2344 = vmatpush3.bf16.msra.mxu0 %v4275_v38  ;;  %2366 = vmatpush3.bf16.msra.mxu1 %v4276_v59  ;;  %v4285_v58 = vld [vmem:[#allocation36_spill] sm:$0xff]  ;;  %v4287_v56 = vld [vmem:[#allocation38_spill] sm:$0xff]  ;;  %v4294_v54 = vld [vmem:[#allocation45_spill] sm:$0xff]  ;;  %v1655_v38 = vadd.f32 %v1639_v33, %v4262_v32  ;;  %v1657_v60 = vadd.f32 %v1641_v7, %v4263_v18 }
 0x32e   : > { %v1696_v30 = vpack.c.bf16 %v3918_v9, %v4273_v25  ;;  %v1698_v55 = vpack.c.bf16 %v3922_v20, %v4274_v1  ;;  %2345 = vmatprep.subr.bf16.mxu0 %v4277_v0  ;;  %2367 = vmatprep.subr.bf16.mxu1 %v4278_v57  ;;  %v1647_v29 = vadd.f32 %v1631_v10, %v4256_v53  ;;  %v4295_v39 = vld [vmem:[#allocation46_spill] sm:$0xff]  ;;  %v4296_v6 = vld [vmem:[#allocation47_spill] sm:$0xff] }
 0x32f   : > { %v1649_v22 = vadd.f32 %v1633_v12, %v4258_v11  ;;  %v1671_v15 = vmax.f32 %v1655_v38, 0.0  ;;  %v1673_v59 = vmax.f32 %v1657_v60, 0.0 }
 0x330   : > { %1820 = vmatprep.mubr.bf16.mxu0 %v1696_v30  ;;  %1861 = vmatprep.mubr.bf16.mxu1 %v1698_v55  ;;  %v1663_v30 = vmax.f32 %v1647_v29, 0.0 }
 0x331   : > { %2346 = vmatpush3.bf16.msra.mxu0 %v4279_v31  ;;  %2368 = vmatpush3.bf16.msra.mxu1 %v4280_v13  ;;  %v1665_v55 = vmax.f32 %v1649_v22, 0.0  ;;  %v3970_v53 = vmin.f32 %v1673_v59, 1.0  }
 0x332   : > { %2347 = vmatprep.subr.bf16.mxu0 %v4281_v2  ;;  %2369 = vmatprep.subr.bf16.mxu1 %v4282_v63  ;;  %v3972_v59 = vmin.f32 %v1663_v30, 1.0  }
 0x333   : > { %v4298_v11 = vmov %v3970_v53  ;;  %v3974_v57 = vmin.f32 %v1665_v55, 1.0  }
 0x334   : > { %v4299_v0 = vmov %v3972_v59 }
 0x335   : > { %2348 = vmatpush3.bf16.msra.mxu0 %v4283_v47  ;;  %2370 = vmatpush3.bf16.msra.mxu1 %v4284_v28  ;;  %v4300_v32 = vmov %v3974_v57 }
 0x336   : > { %2349 = vmatprep.subr.bf16.mxu0 %v4285_v58  ;;  %2371 = vmatprep.subr.bf16.mxu1 %v4286_v26 }
 0x339   : > { %2350 = vmatpush3.bf16.msra.mxu0 %v4287_v56  ;;  %2372 = vmatpush3.bf16.msra.mxu1 %v4288_v46 }
 0x33a   : > { %2351 = vmatprep.subr.bf16.mxu0 %v4289_v62  ;;  %2373 = vmatprep.subr.bf16.mxu1 %v4290_v51  ;;  %v3968_v51 = vmin.f32 %v1671_v15, 1.0  }
 0x33d   : > { %2352 = vmatpush3.bf16.msra.mxu0 %v4291_v14  ;;  %2374 = vmatpush3.bf16.msra.mxu1 %v4292_v52 }
 0x33e   : > { %2353 = vmatprep.subr.bf16.mxu0 %v4293_v61  ;;  %2375 = vmatprep.subr.bf16.mxu1 %v4294_v54 }
 0x341   : > { %2354 = vmatpush3.bf16.msra.mxu0 %v3682_v21  ;;  %2376 = vmatpush3.bf16.msra.mxu1 %v4295_v39  ;;  %v4297_v21 = vmov %v3968_v51 }
 0x342   : > { %2355 = vmatprep.subr.bf16.mxu0 %v4296_v6  ;;  %2377 = vmatprep.subr.bf16.mxu1 %v3688_v50 }
 0x345   : > { %2356 = vmatpush3.bf16.msra.mxu0 %v3694_v19  ;;  %2378 = vmatpush3.bf16.msra.mxu1 %v3696_v23  ;;  %v1695_v19 = vpack.c.bf16 %v4297_v21, %v4299_v0  ;;  %v1697_v23 = vpack.c.bf16 %v4298_v11, %v4300_v32 }
 0x346   : > { %2357 = vmatprep.subr.bf16.mxu0 %v3698_v48  ;;  %2379 = vmatprep.subr.bf16.mxu1 %v3700_v16 }
 0x349   : > { %2358 = vmatpush3.bf16.msra.mxu0 %v3706_v49  ;;  %2380 = vmatpush3.bf16.msra.mxu1 %v3708_v24  ;;  %v2136_v49 = vld [vmem:[%s4131_s3] ss:$0 sm:$0xff] }
 0x34c   : > { %1821 = vmatmul.mubr.bf16.vlgmr.msra.gmra.mxu0 %v1695_v19  ;;  %1862 = vmatmul.mubr.bf16.vlgmr.msra.gmra.mxu1 %v1697_v23 }
 0x3ec   : > { %v2315_v16 = vpop.f32.mrf.mxu0  ;;  %v2337_v48 = vpop.f32.mrf.mxu1 }
 0x3ee   : > { %v2316_v50 = vpop.f32.mrf.mxu0  ;;  %v2338_v18 = vpop.f32.mrf.mxu1 }
 0x3ef   : > { %v2317_v2 = vadd.f32 %v2316_v50, %v2315_v16  ;;  %v2339_v26 = vadd.f32 %v2338_v18, %v2337_v48 }
 0x3f0   : > { %v2318_v31 = vpop.f32.mrf.mxu0  ;;  %v2340_v13 = vpop.f32.mrf.mxu1 }
 0x3f1   : > { %v1741_v63 = vadd.f32 %v2317_v2, %v2136_v49 }
 0x3f2   : > { %v2319_v24 = vpop.f32.mrf.mxu0  ;;  %v2341_v57 = vpop.f32.mrf.mxu1 }
 0x3f3   : > { %v2320_v47 = vadd.f32 %v2319_v24, %v2318_v31  ;;  %v1782_v62 = vadd.f32 %v2339_v26, %v1741_v63  ;;  %v2342_v12 = vadd.f32 %v2341_v57, %v2340_v13  ;;  %v4301_v57 = vld [vmem:[#allocation11_spill] sm:$0xff]  ;;  %v4302_v26 = vld [vmem:[#allocation12_spill] sm:$0xff] }
 0x3f5   : > { %v1744_v51 = vadd.f32 %v2320_v47, %v2136_v49 }
 0x3f7   : > { %v1785_v38 = vadd.f32 %v2342_v12, %v1744_v51  ;;  %v3211_v12 = vmov 0.0  }
 0x40c   : > { %v2359_v28 = vpop.f32.mrf.mxu0  ;;  %v2381_v58 = vpop.f32.mrf.mxu1 }
 0x40e   : > { %v2360_v56 = vpop.f32.mrf.mxu0  ;;  %v2382_v46 = vpop.f32.mrf.mxu1 }
 0x40f   : > { %v2361_v33 = vadd.f32 %v2360_v56, %v2359_v28  ;;  %v2383_v52 = vadd.f32 %v2382_v46, %v2381_v58 }
 0x410   : > { %v2362_v7 = vpop.f32.mrf.mxu0  ;;  %v2384_v10 = vpop.f32.mrf.mxu1 }
 0x411   : > { %v1823_v14 = vadd.f32 %v2361_v33, %v1782_v62 }
 0x412   : > { %v2363_v61 = vpop.f32.mrf.mxu0  ;;  %v2385_v54 = vpop.f32.mrf.mxu1 }
 0x413   : > { %v1864_v2 = vadd.f32 %v2383_v52, %v1823_v14   ;;  %v2364_v60 = vadd.f32 %v2363_v61, %v2362_v7  ;;  %v2386_v39 = vadd.f32 %v2385_v54, %v2384_v10  ;;  %v4303_v52 = vld [vmem:[#allocation22_spill] sm:$0xff] }
 0x415   : > { %v2391_v29 = vcvt.f32.s32 %v1864_v2  ;;  %v1826_v22 = vadd.f32 %v2364_v60, %v1785_v38  ;;  %v2389_v59 = vand.u32 2147483647, %v1864_v2  ;;  %v2394_v53 = vand.u32 2147483648, %v1864_v2  ;;  %v4304_v38 = vld [vmem:[#allocation21_spill] sm:$0xff] }
 0x417   : > { %v1867_v6 = vadd.f32 %v2386_v39, %v1826_v22   ;;  %v2392_v15 = vcvt.s32.f32 %v2391_v29  ;;  %vm2390_vm2 = vcmp.lt.f32.partialorder %v2389_v59, 8388608.0 }
 0x419   : > { %v2399_v30 = vcvt.f32.s32 %v1867_v6  ;;  %v2393_v55 = vand.u32 2147483647, %v2392_v15  ;;  %v2397_v16 = vand.u32 2147483647, %v1867_v6  ;;  %v2402_v18 = vand.u32 2147483648, %v1867_v6 }
 0x41b   : > { %v2395_v19 = vor.u32 %v2394_v53, %v2393_v55  ;;  %v2400_v23 = vcvt.s32.f32 %v2399_v30  ;;  %vm2398_vm3 = vcmp.lt.f32.partialorder %v2397_v16, 8388608.0  ;;  %v4311_v53 = vmov %v3905_v43 }
 0x41c   : > { %v4313_v55 = vmov %v4272_v3 }
 0x41d   : > { %v2396_v48 = vsel %vm2390_vm2, %v2395_v19, %v1864_v2  ;;  %v2401_v50 = vand.u32 2147483647, %v2400_v23 }
 0x41e   : > { %v1872_v31 = vmax.f32 %v2396_v48, 0.0  ;;  %v4306_v48 = vmov %v3922_v20 }
 0x41f   : > { %v2403_v13 = vor.u32 %v2402_v18, %v2401_v50  ;;  %v4308_v50 = vmov %v3918_v9 }
 0x420   : > { %v1874_v49 = vmin.f32 %v1872_v31, 1.0 }
 0x421   : > { %v2404_v24 = vsel %vm2398_vm3, %v2403_v13, %v1867_v6 }
 0x422   : > { %v1876_v63 = vsub.f32 %v1874_v49, %v4301_v57  ;;  %v1873_v47 = vmax.f32 %v2404_v24, 0.0  ;;  %v4307_v49 = vmov %v4298_v11  ;;  %v4315_v57 = vmov %v4300_v32 }
 0x424   : > { %v1878_v28 = vand.u32 2147483647, %v1876_v63  ;;  %v1875_v58 = vmin.f32 %v1873_v47, 1.0  ;;  %v4321_v63 = vmov %v4268_v45 }
 0x426   : > { %1880 = vadd.xlane.f32.xlu0 %v1878_v28  ;;  %v1877_v56 = vsub.f32 %v1875_v58, %v4302_v26  ;;  %v4316_v58 = vmov %v4273_v25 }
 0x428   : > { %v1879_v46 = vand.u32 2147483647, %v1877_v56  ;;  %v4314_v56 = vmov %v4274_v1 }
 0x42a   : > { %1882 = vadd.xlane.f32.xlu1 %v1879_v46 }
 0x4af   : > { %v1881_v62 = vpop.xlane.xlu0 %1880 }
 0x4b0   : > { %v1884_v51 = vmul.f32 0.0078125, %v1881_v62  ;;  %v4320_v62 = vmov %v4266_v4 }
 0x4b2   : > { %v1886_v33 = vsub.f32 1.0, %v1884_v51  ;;  %v4309_v51 = vmov %v4297_v21 }
 0x4b3   : > { %v1883_v7 = vpop.xlane.xlu1 %1882 }
 0x4b4   : > { %vm1888_vm4 = vcmp.ge.f32.partialorder %v1886_v33, 0.99  ;;  %v1885_v10 = vmul.f32 0.0078125, %v1883_v7 }
 0x4b5   : > { %v2137_v14 = vsel %vm1888_vm4, 1.0, %v3211_v12 }
 0x4b6   : > { %v1894_v47 = vmax.f32 %v4303_v52, %v2137_v14   ;;  %v1887_v61 = vsub.f32 1.0, %v1885_v10  ;;  %v4310_v52 = vmov %v4271_v27 }
 0x4b8   : > { %vm1889_vm5 = vcmp.ge.f32.partialorder %v1887_v61, 0.99  ;;  %v4319_v61 = vmov %v4269_v8 }
 0x4b9   : > { %v2138_v54 = vsel %vm1889_vm5, 1.0, %v3211_v12 }
 0x4ba   : > { %v1895_v46 = vmax.f32 %v4304_v38, %v2138_v54   ;;  %v4312_v54 = vmov %v4270_v17 }
 0x4bc   : > { %v779_v60 = vmin.f32 %v1894_v47, %v1895_v46 }
 0x4be   : > { %v780_v29 = vrot.slane %v779_v60, 4 }
 0x4c0   : > { %v781_v22 = vmin.f32 %v779_v60, %v780_v29  ;;  %v4318_v60 = vmov %v4267_v5 }
 0x4c2   : > { %v782_v39 = vrot.slane %v781_v22, 2 }
 0x4c4   : > { %v783_v15 = vmin.f32 %v781_v22, %v782_v39 }
 0x4c6   : > { %v784_v59 = vrot.slane %v783_v15, 1 }
 0x4c8   : > { %v785_v30 = vmin.f32 %v783_v15, %v784_v59  ;;  %v4317_v59 = vmov %v4299_v0 }
 0x4ca   : > { %2405 = vpush %v785_v30 }
 0x4fb   : > { %s2406_s10 = spop %2405 }
 0x4fc   : > { %p787_p12 = scmp.lt.f32.partialorder %s2406_s10, 0.5 }
 0x4fe   : > { %p3992_p13 = pnand %p787_p12, %p778_p11 }
 0x4ff   :  { %v4323_v14 = vmov (%p3992_p13), %v3922_v20  ;;  %v4324_v15 = vmov (%p3992_p13), %v4298_v11  ;;  %v4325_v18 = vmov (%p3992_p13), %v3918_v9  ;;  %v4326_v22 = vmov (%p3992_p13), %v4297_v21 }
 0x500   :  { %791 = sbr.rel (!%p3992_p13) target bundleno = 300 (0x12c), region = 51  ;;  %v4327_v26 = vmov (%p3992_p13), %v4271_v27  ;;  %v4328_v27 = vmov (%p3992_p13), %v3905_v43  ;;  %v4329_v28 = vmov (%p3992_p13), %v4270_v17  ;;  %v4330_v29 = vmov (%p3992_p13), %v4272_v3 }
 0x501   :  { %v4331_v30 = vmov (%p3992_p13), %v4274_v1  ;;  %v4332_v31 = vmov (%p3992_p13), %v4300_v32  ;;  %v4333_v32 = vmov (%p3992_p13), %v4273_v25  ;;  %v4334_v33 = vmov (%p3992_p13), %v4299_v0 }
 0x502   :  { %v4335_v38 = vmov (%p3992_p13), %v4267_v5  ;;  %v4336_v39 = vmov (%p3992_p13), %v4269_v8  ;;  %v4337_v43 = vmov (%p3992_p13), %v4266_v4 }
 0x505 PF:  { %1897 = vst [vmem:[#allocation7] sm:$0xff] %v3203_v45  ;;  %1898 = vst [vmem:[#allocation7 + $0x8] sm:$0xff] %v3199_v43  ;;  %s3212_s3 = smov [#allocation7]   ;;  %v3203_v45 = vphi %v4201_v45, %v4268_v45   ;;  %v3199_v43 = vphi %v4200_v43, %v4337_v43   ;;  %v3195_v39 = vphi %v4199_v39, %v4336_v39   ;;  %v3191_v38 = vphi %v4198_v38, %v4335_v38   ;;  %v3187_v33 = vphi %v4197_v33, %v4334_v33   ;;  %v3183_v32 = vphi %v4196_v32, %v4333_v32   ;;  %v3179_v31 = vphi %v4195_v31, %v4332_v31   ;;  %v3175_v30 = vphi %v4194_v30, %v4331_v30   ;;  %v3171_v29 = vphi %v4193_v29, %v4330_v29   ;;  %v3167_v28 = vphi %v4192_v28, %v4329_v28   ;;  %v3163_v27 = vphi %v4191_v27, %v4328_v27   ;;  %v3159_v26 = vphi %v4190_v26, %v4327_v26   ;;  %v3155_v22 = vphi %v4189_v22, %v4326_v22   ;;  %v3151_v18 = vphi %v4188_v18, %v4325_v18   ;;  %v3147_v15 = vphi %v4187_v15, %v4324_v15   ;;  %v3143_v14 = vphi %v4186_v14, %v4323_v14  }
 0x506   :  { %1899 = vst [vmem:[#allocation7 + $0x10] sm:$0xff] %v3195_v39  ;;  %1900 = vst [vmem:[#allocation7 + $0x18] sm:$0xff] %v3191_v38  ;;  %s1918_s12 = sshll.u32 %s3212_s3, 4  ;;  %s1919_s12 = int_to_ptr.vmem [resolvable:$true] %s1918_s12 }
 0x507   :  { %1901 = vst [vmem:[#allocation7 + $0x20] sm:$0xff] %v3187_v33  ;;  %1902 = vst [vmem:[#allocation7 + $0x28] sm:$0xff] %v3183_v32  ;;  %s2883_s13 = scalar_lea.vmem %s1919_s12, 2048  ;;  %p2888_p1 = scmp.lt.s32.totalorder %s1919_s12, %s1919_s12 }
 0x508   :  { %1903 = vst [vmem:[#allocation7 + $0x30] sm:$0xff] %v3179_v31  ;;  %1904 = vst [vmem:[#allocation7 + $0x38] sm:$0xff] %v3175_v30  ;;  %p2884_p0 = scmp.ne.s32.totalorder %s1919_s12, %s2883_s13  ;;  %p2889_p2 = scmp.lt.s32.totalorder %s2883_s13, %s2883_s13 }
 0x509   :  { %1905 = vst [vmem:[#allocation7 + $0x40] sm:$0xff] %v3171_v29  ;;  %1906 = vst [vmem:[#allocation7 + $0x48] sm:$0xff] %v3167_v28 }
 0x50a   :  { %1907 = vst [vmem:[#allocation7 + $0x50] sm:$0xff] %v3163_v27  ;;  %1908 = vst [vmem:[#allocation7 + $0x58] sm:$0xff] %v3159_v26  ;;  %p2890_p3 = por %p2889_p2, %p2888_p1 }
 0x50b   :  { %1909 = vst [vmem:[#allocation7 + $0x60] sm:$0xff] %v3155_v22  ;;  %1910 = vst [vmem:[#allocation7 + $0x68] sm:$0xff] %v3151_v18 }
 0x50c   :  { %1911 = vst [vmem:[#allocation7 + $0x70] sm:$0xff] %v3147_v15  ;;  %1912 = vst [vmem:[#allocation7 + $0x78] sm:$0xff] %v3143_v14  ;;  %p2891_p4 = pnand %p2890_p3, %p2884_p0 }
 0x50e   :  { %2894 = shalt.err (!%p2891_p4)
}
 0x50f   :  { %1924 = dma.vmem_to_hbm [thread:$0]  %s1919_s12, 2048, %s4132_s4, [#allocation4], %s3206_s18, %s3206_s18, %s3207_s19  }
 0x510   :  { %3055 = dma.done.wait [#allocation4], 2048  }
 0x511   :  { %3056 = vsyncadd [#allocation4], 4294965248 }
 0x512   :  { %1928 = vsyncpa [#allocation3], 1 }
 0x513   :  { %1929 = vsyncpa [#allocation6], 1 }
 0x514   :  { %1930 = vsyncpa [#allocation4], 1 }

// kernel: tpu_custom_call.1
= control target key start
LH: loop header
LB: loop body
LE: loop exit
PB: predicated region body
PF: predicated region fallthrough
CT: control target
= control target key end

     0   :  { %9 = vsyncpa [#allocation3], 0  ;;  %s4128_s0 = inlined_call_operand.hbm [shape: f32[16,1024], index: 0, kind: input, shape index: {}, may-alias: {0,4}]   ;;  %s4129_s1 = inlined_call_operand.vmem [shape: f32[16,128], index: 1, kind: input, shape index: {}]   ;;  %s4130_s2 = inlined_call_operand.hbm [shape: bf16[1024,128], index: 2, kind: input, shape index: {}]   ;;  %s4131_s3 = inlined_call_operand.vmem [shape: f32[1,128], index: 3, kind: input, shape index: {}]   ;;  %s4132_s4 = inlined_call_operand.hbm [shape: f32[16,1024], index: 4, kind: output, shape index: {}, may-alias: {0,4}]  }
   0x1   :  { %10 = vsyncpa [#allocation6], 0 }
   0x2   :  { %11 = vsyncpa [#allocation4], 0  ;;  %s3205_s15 = smov [#allocation2]  }
   0x3   :  { %s17_s16 = sshll.u32 %s3205_s15, 4  ;;  %s18_s16 = int_to_ptr.vmem [resolvable:$true] %s17_s16 }
   0x4   :  { %s2851_s17 = scalar_lea.vmem %s18_s16, 2048  ;;  %p2856_p1 = scmp.lt.s32.totalorder %s18_s16, %s18_s16 }
   0x5   :  { %p2852_p0 = scmp.ne.s32.totalorder %s18_s16, %s2851_s17  ;;  %p2857_p2 = scmp.lt.s32.totalorder %s2851_s17, %s2851_s17 }
   0x7   :  { %p2858_p3 = por %p2857_p2, %p2856_p1 }
   0x9   :  { %p2859_p4 = pnand %p2858_p3, %p2852_p0 }
   0xb   :  { %2862 = shalt.err (!%p2859_p4)
}
   0xc   :  { %s3206_s18 = smov 1024   ;;  %s3207_s19 = smov 64  }
   0xd   :  { %23 = dma.hbm_to_vmem [thread:$0]  %s4128_s0, 2048, %s18_s16, [#allocation3], %s3206_s18, %s3206_s18, %s3207_s19  }
   0xe   :  { %s3208_s22 = smov [#allocation5]  }
   0xf   :  { %s31_s23 = sshll.u32 %s3208_s22, 4  ;;  %s32_s23 = int_to_ptr.vmem [resolvable:$true] %s31_s23 }
  0x10   :  { %s2871_s24 = scalar_lea.vmem %s32_s23, 8192  ;;  %p2876_p6 = scmp.lt.s32.totalorder %s32_s23, %s32_s23 }
  0x11   :  { %p2872_p5 = scmp.ne.s32.totalorder %s32_s23, %s2871_s24  ;;  %p2877_p7 = scmp.lt.s32.totalorder %s2871_s24, %s2871_s24 }
  0x13   :  { %p2878_p8 = por %p2877_p7, %p2876_p6 }
  0x15   :  { %p2879_p9 = pnand %p2878_p8, %p2872_p5 }
  0x17   :  { %2882 = shalt.err (!%p2879_p9)
}
  0x18   :  { %s3209_s25 = smov 4  }
  0x19   :  { %37 = dma.hbm_to_vmem [thread:$0]  %s4130_s2, 8192, %s32_s23, [#allocation6], %s3207_s19, %s3207_s19, %s3209_s25  }
  0x1a   :  { %3051 = dma.done.wait [#allocation3], 2048  }
  0x1b   :  { %3052 = vsyncadd [#allocation3], 4294965248 }
  0x1c   :  { %3053 = dma.done.wait [#allocation6], 8192  }
  0x1d   :  { %3054 = vsyncadd [#allocation6], 4294959104  ;;  %v3252_v0 = vld [vmem:[%s4129_s1] sm:$0xff]  ;;  %v3257_v1 = vld [vmem:[%s4129_s1 + $0x8] sm:$0xff] }
  0x1e   :  { %4176 = vst [vmem:[#allocation11_spill] sm:$0xff] %v3252_v0  ;;  %4177 = vst [vmem:[#allocation12_spill] sm:$0xff] %v3257_v1  ;;  %v2711_v2 = vld [vmem:[#allocation5 + $0x78] sm:$0xff]   ;;  %v2715_v6 = vld [vmem:[#allocation5 + $0x70] sm:$0xff]  }
  0x1f   :  { %v2712_v3 = vld [vmem:[#allocation5 + $0xf8] sm:$0xff]   ;;  %2139 = vmatprep.subr.bf16.mxu0 %v2711_v2  ;;  %v2716_v7 = vld [vmem:[#allocation5 + $0xf0] sm:$0xff]   ;;  %v2719_v10 = vld [vmem:[#allocation5 + $0x68] sm:$0xff]  }
  0x20   :  { %v2713_v4 = vld [vmem:[#allocation5 + $0x38] sm:$0xff]   ;;  %2161 = vmatprep.subr.bf16.mxu1 %v2712_v3  ;;  %v2717_v8 = vld [vmem:[#allocation5 + $0x30] sm:$0xff]   ;;  %v2720_v11 = vld [vmem:[#allocation5 + $0xe8] sm:$0xff]  }
  0x21   :  { %v2714_v5 = vld [vmem:[#allocation5 + $0xb8] sm:$0xff]   ;;  %2140 = vmatpush3.bf16.msra.mxu0 %v2713_v4  ;;  %v2718_v9 = vld [vmem:[#allocation5 + $0xb0] sm:$0xff]   ;;  %v2721_v12 = vld [vmem:[#allocation5 + $0x28] sm:$0xff]  }
  0x22   :  { %2162 = vmatpush3.bf16.msra.mxu1 %v2714_v5  ;;  %2141 = vmatprep.subr.bf16.mxu0 %v2715_v6  ;;  %v2722_v13 = vld [vmem:[#allocation5 + $0xa8] sm:$0xff]   ;;  %v2723_v14 = vld [vmem:[#allocation5 + $0x60] sm:$0xff]   ;;  %v2727_v18 = vld [vmem:[#allocation5 + $0x58] sm:$0xff]  }
  0x23   :  { %2163 = vmatprep.subr.bf16.mxu1 %v2716_v7  ;;  %v2724_v15 = vld [vmem:[#allocation5 + $0xe0] sm:$0xff]   ;;  %v2728_v19 = vld [vmem:[#allocation5 + $0xd8] sm:$0xff]   ;;  %v2731_v22 = vld [vmem:[#allocation5 + $0x50] sm:$0xff]  }
  0x24   :  { %v2725_v16 = vld [vmem:[#allocation5 + $0x20] sm:$0xff]   ;;  %v2729_v20 = vld [vmem:[#allocation5 + $0x18] sm:$0xff]   ;;  %v2732_v23 = vld [vmem:[#allocation5 + $0xd0] sm:$0xff]  }
  0x25   :  { %2142 = vmatpush3.bf16.msra.mxu0 %v2717_v8  ;;  %v2726_v17 = vld [vmem:[#allocation5 + $0xa0] sm:$0xff]   ;;  %v2730_v21 = vld [vmem:[#allocation5 + $0x98] sm:$0xff]   ;;  %v2733_v24 = vld [vmem:[#allocation5 + $0x10] sm:$0xff]  }
  0x26   :  { %2164 = vmatpush3.bf16.msra.mxu1 %v2718_v9  ;;  %2143 = vmatprep.subr.bf16.mxu0 %v2719_v10  ;;  %v2734_v25 = vld [vmem:[#allocation5 + $0x90] sm:$0xff]   ;;  %v2735_v26 = vld [vmem:[#allocation5 + $0x48] sm:$0xff]   ;;  %v2739_v30 = vld [vmem:[#allocation5 + $0x40] sm:$0xff]  }
  0x27   :  { %2165 = vmatprep.subr.bf16.mxu1 %v2720_v11  ;;  %v2736_v27 = vld [vmem:[#allocation5 + $0xc8] sm:$0xff]   ;;  %v2740_v31 = vld [vmem:[#allocation5 + $0xc0] sm:$0xff]   ;;  %v3263_v36 = vld [vmem:[#allocation2 + $0x18] sm:$0xff]  }
  0x28   :  { %v2737_v28 = vld [vmem:[#allocation5 + $0x8] sm:$0xff]   ;;  %v2741_v32 = vld [vmem:[#allocation5] sm:$0xff]   ;;  %v3265_v37 = vld [vmem:[#allocation2 + $0x58] sm:$0xff]  }
  0x29   :  { %2144 = vmatpush3.bf16.msra.mxu0 %v2721_v12  ;;  %v2738_v29 = vld [vmem:[#allocation5 + $0x88] sm:$0xff]   ;;  %v2742_v33 = vld [vmem:[#allocation5 + $0x80] sm:$0xff]   ;;  %v68_v39 = vpack.c.bf16 %v3265_v37, %v3263_v36  ;;  %v3275_v42 = vld [vmem:[#allocation2 + $0x10] sm:$0xff]  }
  0x2a   :  { %2166 = vmatpush3.bf16.msra.mxu1 %v2722_v13  ;;  %2145 = vmatprep.subr.bf16.mxu0 %v2723_v14  ;;  %v3259_v34 = vld [vmem:[#allocation2 + $0x8] sm:$0xff]   ;;  %v3271_v40 = vld [vmem:[#allocation2] sm:$0xff]   ;;  %v3279_v44 = vld [vmem:[#allocation2 + $0x50] sm:$0xff]  }
  0x2b   :  { %2167 = vmatprep.subr.bf16.mxu1 %v2724_v15  ;;  %v3261_v35 = vld [vmem:[#allocation2 + $0x48] sm:$0xff]   ;;  %v3273_v41 = vld [vmem:[#allocation2 + $0x40] sm:$0xff]   ;;  %665 = vmatprep.mubr.bf16.mxu1 %v68_v39  ;;  %v67_v45 = vpack.c.bf16 %v3279_v44, %v3275_v42  ;;  %v2743_v46 = vld [vmem:[#allocation5 + $0x178] sm:$0xff]  }
  0x2c   :  { %v66_v38 = vpack.c.bf16 %v3261_v35, %v3259_v34  ;;  %v65_v43 = vpack.c.bf16 %v3273_v41, %v3271_v40  ;;  %v2744_v47 = vld [vmem:[#allocation5 + $0x1f8] sm:$0xff]   ;;  %v2747_v50 = vld [vmem:[#allocation5 + $0x170] sm:$0xff]   ;;  %v2751_v54 = vld [vmem:[#allocation5 + $0x168] sm:$0xff]  }
  0x2d   :  { %2146 = vmatpush3.bf16.msra.mxu0 %v2725_v16  ;;  %v2745_v48 = vld [vmem:[#allocation5 + $0x138] sm:$0xff]   ;;  %v2748_v51 = vld [vmem:[#allocation5 + $0x1f0] sm:$0xff]   ;;  %v2752_v55 = vld [vmem:[#allocation5 + $0x1e8] sm:$0xff]  }
  0x2e   :  { %2168 = vmatpush3.bf16.msra.mxu1 %v2726_v17  ;;  %2147 = vmatprep.subr.bf16.mxu0 %v2727_v18  ;;  %v2746_v49 = vld [vmem:[#allocation5 + $0x1b8] sm:$0xff]   ;;  %v2749_v52 = vld [vmem:[#allocation5 + $0x130] sm:$0xff]   ;;  %v2753_v56 = vld [vmem:[#allocation5 + $0x128] sm:$0xff]  }
  0x2f   :  { %2169 = vmatprep.subr.bf16.mxu1 %v2728_v19  ;;  %624 = vmatprep.mubr.bf16.mxu0 %v66_v38  ;;  %v2750_v53 = vld [vmem:[#allocation5 + $0x1b0] sm:$0xff]   ;;  %v2754_v57 = vld [vmem:[#allocation5 + $0x1a8] sm:$0xff]   ;;  %v2755_v58 = vld [vmem:[#allocation5 + $0x160] sm:$0xff]  }
  0x30   :  { %v2756_v59 = vld [vmem:[#allocation5 + $0x1e0] sm:$0xff]   ;;  %v2759_v62 = vld [vmem:[#allocation5 + $0x158] sm:$0xff]   ;;  %v2763_v4 = vld [vmem:[#allocation5 + $0x150] sm:$0xff]  }
  0x31   :  { %2148 = vmatpush3.bf16.msra.mxu0 %v2729_v20  ;;  %v2757_v60 = vld [vmem:[#allocation5 + $0x120] sm:$0xff]   ;;  %v2760_v63 = vld [vmem:[#allocation5 + $0x1d8] sm:$0xff]   ;;  %v2764_v5 = vld [vmem:[#allocation5 + $0x1d0] sm:$0xff]  }
  0x32   :  { %2170 = vmatpush3.bf16.msra.mxu1 %v2730_v21  ;;  %2149 = vmatprep.subr.bf16.mxu0 %v2731_v22  ;;  %v2758_v61 = vld [vmem:[#allocation5 + $0x1a0] sm:$0xff]   ;;  %v2761_v2 = vld [vmem:[#allocation5 + $0x118] sm:$0xff]   ;;  %v2765_v6 = vld [vmem:[#allocation5 + $0x110] sm:$0xff]  }
  0x33   :  { %2171 = vmatprep.subr.bf16.mxu1 %v2732_v23  ;;  %v2762_v3 = vld [vmem:[#allocation5 + $0x198] sm:$0xff]   ;;  %v2766_v7 = vld [vmem:[#allocation5 + $0x190] sm:$0xff]   ;;  %v2767_v8 = vld [vmem:[#allocation5 + $0x148] sm:$0xff]  }
  0x34   :  { %v2768_v9 = vld [vmem:[#allocation5 + $0x1c8] sm:$0xff]   ;;  %v2771_v12 = vld [vmem:[#allocation5 + $0x140] sm:$0xff]   ;;  %v3289_v19 = vld [vmem:[#allocation2 + $0x38] sm:$0xff]  }
  0x35   :  { %2150 = vmatpush3.bf16.msra.mxu0 %v2733_v24  ;;  %v2769_v10 = vld [vmem:[#allocation5 + $0x108] sm:$0xff]   ;;  %v2772_v13 = vld [vmem:[#allocation5 + $0x1c0] sm:$0xff]   ;;  %4180 = vst [vmem:[#allocation15_spill] sm:$0xff] %v3289_v19  ;;  %v3291_v20 = vld [vmem:[#allocation2 + $0x78] sm:$0xff]  }
  0x36   :  { %2172 = vmatpush3.bf16.msra.mxu1 %v2734_v25  ;;  %2151 = vmatprep.subr.bf16.mxu0 %v2735_v26  ;;  %v2770_v11 = vld [vmem:[#allocation5 + $0x188] sm:$0xff]   ;;  %v2773_v14 = vld [vmem:[#allocation5 + $0x100] sm:$0xff]   ;;  %4181 = vst [vmem:[#allocation16_spill] sm:$0xff] %v3291_v20  ;;  %v72_v22 = vpack.c.bf16 %v3291_v20, %v3289_v19  ;;  %v3299_v24 = vld [vmem:[#allocation2 + $0x30] sm:$0xff]  }
  0x37   :  { %2173 = vmatprep.subr.bf16.mxu1 %v2736_v27  ;;  %v2774_v15 = vld [vmem:[#allocation5 + $0x180] sm:$0xff]   ;;  %v3283_v16 = vld [vmem:[#allocation2 + $0x28] sm:$0xff]   ;;  %4184 = vst [vmem:[#allocation19_spill] sm:$0xff] %v3299_v24  ;;  %v3301_v25 = vld [vmem:[#allocation2 + $0x70] sm:$0xff]  }
  0x38   :  { %4178 = vst [vmem:[#allocation13_spill] sm:$0xff] %v3283_v16  ;;  %v3285_v17 = vld [vmem:[#allocation2 + $0x68] sm:$0xff]   ;;  %v3293_v21 = vld [vmem:[#allocation2 + $0x20] sm:$0xff]   ;;  %4185 = vst [vmem:[#allocation20_spill] sm:$0xff] %v3301_v25  ;;  %v71_v27 = vpack.c.bf16 %v3301_v25, %v3299_v24 }
  0x39   :  { %2152 = vmatpush3.bf16.msra.mxu0 %v2737_v28  ;;  %4179 = vst [vmem:[#allocation14_spill] sm:$0xff] %v3285_v17  ;;  %v70_v18 = vpack.c.bf16 %v3285_v17, %v3283_v16  ;;  %4182 = vst [vmem:[#allocation17_spill] sm:$0xff] %v3293_v21  ;;  %v3297_v23 = vld [vmem:[#allocation2 + $0x60] sm:$0xff]  }
  0x3a   :  { %2174 = vmatpush3.bf16.msra.mxu1 %v2738_v29  ;;  %2153 = vmatprep.subr.bf16.mxu0 %v2739_v30  ;;  %4183 = vst [vmem:[#allocation18_spill] sm:$0xff] %v3297_v23  ;;  %v69_v26 = vpack.c.bf16 %v3297_v23, %v3293_v21  ;;  %v2006_v39 = vld [vmem:[%s4131_s3] ss:$0 sm:$0xff] }
  0x3b   :  { %2175 = vmatprep.subr.bf16.mxu1 %v2740_v31 }
  0x3d   :  { %2154 = vmatpush3.bf16.msra.mxu0 %v2741_v32 }
  0x3e   :  { %2176 = vmatpush3.bf16.msra.mxu1 %v2742_v33  ;;  %2183 = vmatprep.subr.bf16.mxu0 %v2743_v46 }
  0x3f   :  { %2205 = vmatprep.subr.bf16.mxu1 %v2744_v47 }
  0x40   :  { %625 = vmatmul.mubr.bf16.vlgmr.msra.gmra.mxu0 %v65_v43 }
  0x41   :  { %666 = vmatmul.mubr.bf16.vlgmr.msra.gmra.mxu1 %v67_v45  ;;  %2184 = vmatpush3.bf16.msra.mxu0 %v2745_v48 }
  0x42   :  { %2206 = vmatpush3.bf16.msra.mxu1 %v2746_v49  ;;  %2185 = vmatprep.subr.bf16.mxu0 %v2747_v50 }
  0x43   :  { %2207 = vmatprep.subr.bf16.mxu1 %v2748_v51  ;;  %706 = vmatprep.mubr.bf16.mxu0 %v70_v18  ;;  %v4188_v18 = vmov %v3285_v17 }
  0x44   :  { %747 = vmatprep.mubr.bf16.mxu1 %v72_v22  ;;  %v4189_v22 = vmov %v3297_v23 }
  0x45   :  { %2186 = vmatpush3.bf16.msra.mxu0 %v2749_v52 }
  0x46   :  { %2208 = vmatpush3.bf16.msra.mxu1 %v2750_v53  ;;  %2187 = vmatprep.subr.bf16.mxu0 %v2751_v54 }
  0x47   :  { %2209 = vmatprep.subr.bf16.mxu1 %v2752_v55 }
  0x49   :  { %2188 = vmatpush3.bf16.msra.mxu0 %v2753_v56 }
  0x4a   :  { %2210 = vmatpush3.bf16.msra.mxu1 %v2754_v57  ;;  %2189 = vmatprep.subr.bf16.mxu0 %v2755_v58 }
  0x4b   :  { %2211 = vmatprep.subr.bf16.mxu1 %v2756_v59 }
  0x4d   :  { %2190 = vmatpush3.bf16.msra.mxu0 %v2757_v60 }
  0x4e   :  { %2212 = vmatpush3.bf16.msra.mxu1 %v2758_v61  ;;  %2191 = vmatprep.subr.bf16.mxu0 %v2759_v62 }
  0x4f   :  { %2213 = vmatprep.subr.bf16.mxu1 %v2760_v63 }
  0x51   :  { %2192 = vmatpush3.bf16.msra.mxu0 %v2761_v2 }
  0x52   :  { %2214 = vmatpush3.bf16.msra.mxu1 %v2762_v3  ;;  %2193 = vmatprep.subr.bf16.mxu0 %v2763_v4 }
  0x53   :  { %2215 = vmatprep.subr.bf16.mxu1 %v2764_v5 }
  0x55   :  { %2194 = vmatpush3.bf16.msra.mxu0 %v2765_v6 }
  0x56   :  { %2216 = vmatpush3.bf16.msra.mxu1 %v2766_v7  ;;  %2195 = vmatprep.subr.bf16.mxu0 %v2767_v8  ;;  %v3210_v7 = vmov 0.0  }
  0x57   :  { %2217 = vmatprep.subr.bf16.mxu1 %v2768_v9  ;;  %v1954_v8 = vrot.slane %v3210_v7, 4 }
  0x59   :  { %2196 = vmatpush3.bf16.msra.mxu0 %v2769_v10  ;;  %v1955_v9 = vmin.f32 %v1954_v8, 0.0 }
  0x5a   :  { %2218 = vmatpush3.bf16.msra.mxu1 %v2770_v11  ;;  %2197 = vmatprep.subr.bf16.mxu0 %v2771_v12 }
  0x5b   :  { %2219 = vmatprep.subr.bf16.mxu1 %v2772_v13  ;;  %v1956_v10 = vrot.slane %v1955_v9, 2 }
  0x5d   :  { %2198 = vmatpush3.bf16.msra.mxu0 %v2773_v14  ;;  %v1957_v11 = vmin.f32 %v1955_v9, %v1956_v10  ;;  %v4186_v14 = vmov %v3291_v20 }
  0x5e   :  { %2220 = vmatpush3.bf16.msra.mxu1 %v2774_v15  ;;  %v4187_v15 = vmov %v3301_v25 }
  0x5f   :  { %v1958_v12 = vrot.slane %v1957_v11, 1 }
  0x60   :  { %707 = vmatmul.mubr.bf16.vlgmr.msra.gmra.mxu0 %v69_v26  ;;  %v4190_v26 = vmov %v3265_v37 }
  0x61   :  { %748 = vmatmul.mubr.bf16.vlgmr.msra.gmra.mxu1 %v71_v27  ;;  %v1959_v13 = vmin.f32 %v1957_v11, %v1958_v12  ;;  %v4191_v27 = vmov %v3279_v44 }
  0x63   :  { %2387 = vpush %v1959_v13 }
  0x94   :  { %s2388_s5 = spop %2387 }
  0x95   :  { %p1961_p10 = scmp.lt.f32.partialorder %s2388_s5, 0.5 }
  0x96   :  { %v4202_v20 = vld [vmem:[#allocation16_spill] sm:$0xff] (%p1961_p10)  ;;  %v4206_v17 = vld [vmem:[#allocation14_spill] sm:$0xff] (%p1961_p10)  ;;  %s3415_s6 = smov (%p1961_p10), 0  }
  0x97   :  { %v4204_v25 = vld [vmem:[#allocation20_spill] sm:$0xff] (%p1961_p10)  ;;  %v4208_v23 = vld [vmem:[#allocation18_spill] sm:$0xff] (%p1961_p10) }
 0x100   :  { %v2155_v28 = vpop.f32.mrf.mxu0 }
 0x101   :  { %v2177_v29 = vpop.f32.mrf.mxu1 }
 0x102   :  { %v2156_v30 = vpop.f32.mrf.mxu0 }
 0x103   :  { %v2178_v31 = vpop.f32.mrf.mxu1  ;;  %v2157_v38 = vadd.f32 %v2156_v30, %v2155_v28  ;;  %v4192_v28 = vmov %v3261_v35  ;;  %v4194_v30 = vmov %v3289_v19  ;;  %v4214_v19 = vld [vmem:[#allocation15_spill] sm:$0xff] (%p1961_p10) }
 0x104   :  { %v2158_v32 = vpop.f32.mrf.mxu0  ;;  %v2179_v47 = vadd.f32 %v2178_v31, %v2177_v29  ;;  %v4193_v29 = vmov %v3273_v41  ;;  %v4195_v31 = vmov %v3299_v24  ;;  %v4216_v24 = vld [vmem:[#allocation19_spill] sm:$0xff] (%p1961_p10) }
 0x105   :  { %v2180_v33 = vpop.f32.mrf.mxu1  ;;  %v627_v46 = vadd.f32 %v2157_v38, %v2006_v39  ;;  %v4198_v38 = vmov %v3263_v36 }
 0x106   :  { %v2159_v43 = vpop.f32.mrf.mxu0 }
 0x107   :  { %v2181_v45 = vpop.f32.mrf.mxu1  ;;  %v2160_v48 = vadd.f32 %v2159_v43, %v2158_v32  ;;  %v668_v53 = vadd.f32 %v2179_v47, %v627_v46  ;;  %v4196_v32 = vmov %v3283_v16  ;;  %v4200_v43 = vmov %v3259_v34  ;;  %v4218_v16 = vld [vmem:[#allocation13_spill] sm:$0xff] (%p1961_p10) }
 0x108   :  { %v2182_v58 = vadd.f32 %v2181_v45, %v2180_v33  ;;  %v4197_v33 = vmov %v3293_v21  ;;  %v4201_v45 = vmov %v3271_v40  ;;  %v3359_v46 = vmov (%p1961_p10), 0.0   ;;  %v4220_v21 = vld [vmem:[#allocation17_spill] sm:$0xff] (%p1961_p10) }
 0x109   :  { %v630_v54 = vadd.f32 %v2160_v48, %v2006_v39  ;;  %v4199_v39 = vmov %v3275_v42  ;;  %v3361_v47 = vmov (%p1961_p10), 0.0   ;;  %v4203_v48 = vmov (%p1961_p10), %v4202_v20 }
 0x10b   :  { %v671_v63 = vadd.f32 %v2182_v58, %v630_v54  ;;  %v4212_v54 = vmov (%p1961_p10), %v3261_v35  ;;  %v4219_v58 = vmov (%p1961_p10), %v4218_v16 }
 0x120   :  { %v2199_v49 = vpop.f32.mrf.mxu0 }
 0x121   :  { %v2221_v50 = vpop.f32.mrf.mxu1 }
 0x122   :  { %v2200_v51 = vpop.f32.mrf.mxu0 }
 0x123   :  { %v2222_v52 = vpop.f32.mrf.mxu1  ;;  %v2201_v55 = vadd.f32 %v2200_v51, %v2199_v49  ;;  %v4205_v49 = vmov (%p1961_p10), %v4204_v25  ;;  %v4209_v51 = vmov (%p1961_p10), %v4208_v23 }
 0x124   :  { %v2202_v56 = vpop.f32.mrf.mxu0  ;;  %v2223_v60 = vadd.f32 %v2222_v52, %v2221_v50  ;;  %v4207_v50 = vmov (%p1961_p10), %v4206_v17  ;;  %v4210_v52 = vmov (%p1961_p10), %v3265_v37 }
 0x125   :  { %v2224_v57 = vpop.f32.mrf.mxu1  ;;  %v709_v59 = vadd.f32 %v2201_v55, %v668_v53  ;;  %v4211_v53 = vmov (%p1961_p10), %v3279_v44  ;;  %v4213_v55 = vmov (%p1961_p10), %v3273_v41 }
 0x126   :  { %v2203_v61 = vpop.f32.mrf.mxu0 }
 0x127   :  { %v2225_v62 = vpop.f32.mrf.mxu1  ;;  %v750_v2 = vadd.f32 %v2223_v60, %v709_v59   ;;  %v2204_v3 = vadd.f32 %v2203_v61, %v2202_v56  ;;  %1963 = sbr.rel (!%p1961_p10) target bundleno = 1285 (0x505), region = 45  ;;  %v4215_v56 = vmov (%p1961_p10), %v4214_v19  ;;  %v4221_v59 = vmov (%p1961_p10), %v4220_v21 }
 0x128   :  { %v2226_v5 = vadd.f32 %v2225_v62, %v2224_v57  ;;  %v4217_v57 = vmov (%p1961_p10), %v4216_v24  ;;  %v4222_v60 = vmov (%p1961_p10), %v3263_v36  ;;  %v4223_v61 = vmov (%p1961_p10), %v3275_v42 }
 0x129   :  { %v712_v4 = vadd.f32 %v2204_v3, %v671_v63  ;;  %v4224_v62 = vmov (%p1961_p10), %v3259_v34  ;;  %v4225_v63 = vmov (%p1961_p10), %v3271_v40 }
 0x12b   :  { %v753_v6 = vadd.f32 %v2226_v5, %v712_v4  }
 0x12c LB: > { %4226 = vst [vmem:[#allocation21_spill] sm:$0xff] %v3059_v46  ;;  %4227 = vst [vmem:[#allocation22_spill] sm:$0xff] %v3063_v47  ;;  %v3476_v3 = vld [vmem:[#allocation5 + $0x78] sm:$0xff]   ;;  %v4231_v0 = vld [vmem:[#allocation11_spill] sm:$0xff]  ;;  %v830_v9 = vsub.f32 1.0, %v3063_v47  ;;  %v831_v11 = vsub.f32 1.0, %v3059_v46  ;;  %v792_v26 = vmin.f32 %v3135_v63, %v3127_v61  ;;  %v793_v27 = vmin.f32 %v3131_v62, %v3123_v60  ;;  %s3139_s6 = sphi %s3415_s6, %s4322_s6   ;;  %v3135_v63 = vphi %v4225_v63, %v4321_v63   ;;  %v3131_v62 = vphi %v4224_v62, %v4320_v62   ;;  %v3127_v61 = vphi %v4223_v61, %v4319_v61   ;;  %v3123_v60 = vphi %v4222_v60, %v4318_v60   ;;  %v3119_v59 = vphi %v4221_v59, %v4317_v59   ;;  %v3115_v58 = vphi %v4219_v58, %v4316_v58   ;;  %v3111_v57 = vphi %v4217_v57, %v4315_v57   ;;  %v3107_v56 = vphi %v4215_v56, %v4314_v56   ;;  %v3103_v55 = vphi %v4213_v55, %v4313_v55   ;;  %v3099_v54 = vphi %v4212_v54, %v4312_v54   ;;  %v3095_v53 = vphi %v4211_v53, %v4311_v53   ;;  %v3091_v52 = vphi %v4210_v52, %v4310_v52   ;;  %v3087_v51 = vphi %v4209_v51, %v4309_v51   ;;  %v3083_v50 = vphi %v4207_v50, %v4308_v50   ;;  %v3079_v49 = vphi %v4205_v49, %v4307_v49   ;;  %v3075_v48 = vphi %v4203_v48, %v4306_v48   ;;  %v3071_v2 = vphi %v750_v2, %v1864_v2   ;;  %v3067_v6 = vphi %v753_v6, %v1867_v6   ;;  %v3063_v47 = vphi %v3361_v47, %v1894_v47   ;;  %v3059_v46 = vphi %v3359_v46, %v1895_v46  }
 0x12d   : > { %4228 = vst [vmem:[#allocation23_spill] sm:$0xff] %v3075_v48  ;;  %4229 = vst [vmem:[#allocation24_spill] sm:$0xff] %v3079_v49  ;;  %v3478_v4 = vld [vmem:[#allocation5 + $0xf8] sm:$0xff]   ;;  %2227 = vmatprep.subr.bf16.mxu0 %v3476_v3  ;;  %v828_v7 = vsub.f32 %v3071_v2, %v4231_v0  ;;  %v4232_v1 = vld [vmem:[#allocation12_spill] sm:$0xff]  ;;  %v810_v28 = vmax.f32 %v3135_v63, %v3127_v61  ;;  %v811_v29 = vmax.f32 %v3131_v62, %v3123_v60  ;;  %s1896_s9 = sadd.s32 1, %s3139_s6  }
 0x12e   : > { %4230 = vst [vmem:[#allocation25_spill] sm:$0xff] %v3083_v50  ;;  %v3481_v5 = vld [vmem:[#allocation5 + $0x38] sm:$0xff]   ;;  %v829_v8 = vsub.f32 %v3067_v6, %v4232_v1  ;;  %2245 = vmatprep.subr.bf16.mxu1 %v3478_v4  ;;  %v3491_v12 = vld [vmem:[#allocation5 + $0x70] sm:$0xff]   ;;  %v832_v13 = vmul.f32 0.03125, %v830_v9  ;;  %v833_v2 = vmul.f32 0.03125, %v831_v11  ;;  %v3510_v30 = vld [vmem:[#allocation5 + $0x68] sm:$0xff]   ;;  %v794_v33 = vmin.f32 %v792_v26, %v3119_v59  ;;  %s4322_s6 = smov %s1896_s9 }
 0x12f   : > { %v3487_v10 = vld [vmem:[#allocation5 + $0xb8] sm:$0xff]   ;;  %2228 = vmatpush3.bf16.xpose.msra.mxu0 %v3481_v5  ;;  %v3494_v14 = vld [vmem:[#allocation5 + $0xf0] sm:$0xff]   ;;  %v3514_v32 = vld [vmem:[#allocation5 + $0xe8] sm:$0xff]   ;;  %v795_v38 = vmin.f32 %v793_v27, %v3115_v58  ;;  %v812_v39 = vmax.f32 %v810_v28, %v3119_v59  ;;  %v813_v43 = vmax.f32 %v811_v29, %v3115_v58  ;;  %v802_v26 = vmin.f32 %v3099_v54, %v3091_v52  ;;  %p778_p11 = scmp.lt.s32.totalorder %s1896_s9, 10 }
 0x130   : > { %2246 = vmatpush3.bf16.xpose.msra.mxu1 %v3487_v10  ;;  %2229 = vmatprep.subr.bf16.mxu0 %v3491_v12  ;;  %v834_v6 = vmul.f32 %v832_v13, %v828_v7  ;;  %v3498_v15 = vld [vmem:[#allocation5 + $0x30] sm:$0xff]   ;;  %v835_v18 = vmul.f32 %v833_v2, %v829_v8  ;;  %v796_v45 = vmin.f32 %v794_v33, %v3111_v57  ;;  %v3530_v2 = vld [vmem:[#allocation5 + $0x28] sm:$0xff]   ;;  %v3542_v29 = vld [vmem:[#allocation5 + $0x60] sm:$0xff]  }
 0x131   : > { %2247 = vmatprep.subr.bf16.mxu1 %v3494_v14  ;;  %v3500_v22 = vld [vmem:[#allocation5 + $0xb0] sm:$0xff]   ;;  %v797_v7 = vmin.f32 %v795_v38, %v3107_v56  ;;  %v814_v8 = vmax.f32 %v812_v39, %v3111_v57  ;;  %v815_v9 = vmax.f32 %v813_v43, %v3107_v56  ;;  %v819_v27 = vmax.f32 %v3103_v55, %v3095_v53  ;;  %v3545_v38 = vld [vmem:[#allocation5 + $0xe0] sm:$0xff]   ;;  %v3596_v46 = vld [vmem:[#allocation5 + $0x88] sm:$0xff]  }
 0x132   : > { %v3512_v31 = vpack.c.bf16 %v835_v18, %v834_v6  ;;  %v801_v6 = vmin.f32 %v3103_v55, %v3095_v53  ;;  %v3534_v18 = vld [vmem:[#allocation5 + $0xa8] sm:$0xff]   ;;  %v820_v28 = vmax.f32 %v3099_v54, %v3091_v52  ;;  %v804_v39 = vmin.f32 %v802_v26, %v3083_v50  ;;  %v3558_v26 = vld [vmem:[#allocation5 + $0x20] sm:$0xff]   ;;  %v3610_v17 = vld [vmem:[#allocation5 + $0x178] sm:$0xff]  }
 0x133   : > { %v798_v11 = vmin.f32 %v796_v45, %v797_v7  ;;  %v816_v13 = vmax.f32 %v814_v8, %v815_v9  ;;  %v821_v43 = vmax.f32 %v819_v27, %v3087_v51  ;;  %v3560_v27 = vld [vmem:[#allocation5 + $0xa0] sm:$0xff]   ;;  %v3612_v25 = vld [vmem:[#allocation5 + $0x1f8] sm:$0xff]   ;;  %v3622_v16 = vld [vmem:[#allocation5 + $0x170] sm:$0xff]  }
 0x134   : > { %2243 = vmatprep.mubr.bf16.mxu0 %v3512_v31  ;;  %2261 = vmatprep.mubr.bf16.mxu1 %v3512_v31  ;;  %v803_v33 = vmin.f32 %v801_v6, %v3087_v51  ;;  %v822_v45 = vmax.f32 %v820_v28, %v3083_v50  ;;  %v806_v8 = vmin.f32 %v804_v39, %v3075_v48  ;;  %v3562_v28 = vld [vmem:[#allocation5 + $0x58] sm:$0xff]   ;;  %v3598_v47 = vld [vmem:[#allocation5 + $0x40] sm:$0xff]   ;;  %v3634_v24 = vld [vmem:[#allocation5 + $0x130] sm:$0xff]  }
 0x135   : > { %799 = vmin.xlane.f32.xlu0 %v798_v11  ;;  %817 = vmax.xlane.f32.xlu1 %v816_v13  ;;  %v823_v9 = vmax.f32 %v821_v43, %v3079_v49  ;;  %v3570_v39 = vld [vmem:[#allocation5 + $0x18] sm:$0xff]   ;;  %v3600_v1 = vld [vmem:[#allocation5 + $0xc0] sm:$0xff]   ;;  %4235 = vst [vmem:[#allocation28_spill] sm:$0xff] %v3622_v16  ;;  %4237 = vst [vmem:[#allocation30_spill] sm:$0xff] %v3634_v24 }
 0x136   : > { %v805_v7 = vmin.f32 %v803_v33, %v3079_v49  ;;  %v824_v11 = vmax.f32 %v822_v45, %v3075_v48  ;;  %v3564_v33 = vld [vmem:[#allocation5 + $0xd8] sm:$0xff]   ;;  %v3574_v45 = vld [vmem:[#allocation5 + $0x50] sm:$0xff]   ;;  %v3606_v0 = vld [vmem:[#allocation5] sm:$0xff]  }
 0x137   : > { %2230 = vmatpush3.bf16.xpose.msra.mxu0 %v3498_v15  ;;  %v3572_v43 = vld [vmem:[#allocation5 + $0x98] sm:$0xff]   ;;  %v3608_v20 = vld [vmem:[#allocation5 + $0x80] sm:$0xff]   ;;  %v3624_v48 = vld [vmem:[#allocation5 + $0x1f0] sm:$0xff]  }
 0x138   : > { %2248 = vmatpush3.bf16.xpose.msra.mxu1 %v3500_v22  ;;  %2231 = vmatprep.subr.bf16.mxu0 %v3510_v30  ;;  %v807_v13 = vmin.f32 %v805_v7, %v806_v8  ;;  %v825_v6 = vmax.f32 %v823_v9, %v824_v11  ;;  %v3576_v7 = vld [vmem:[#allocation5 + $0xd0] sm:$0xff]   ;;  %v3586_v11 = vld [vmem:[#allocation5 + $0x48] sm:$0xff]   ;;  %v3618_v23 = vld [vmem:[#allocation5 + $0x138] sm:$0xff]   ;;  %4236 = vst [vmem:[#allocation29_spill] sm:$0xff] %v3624_v48 }
 0x139   : > { %2249 = vmatprep.subr.bf16.mxu1 %v3514_v32  ;;  %v3582_v8 = vld [vmem:[#allocation5 + $0x10] sm:$0xff]   ;;  %4233 = vst [vmem:[#allocation26_spill] sm:$0xff] %v3618_v23  ;;  %v3620_v19 = vld [vmem:[#allocation5 + $0x1b8] sm:$0xff]   ;;  %v3638_v21 = vld [vmem:[#allocation5 + $0x168] sm:$0xff]  }
 0x13a   : > { %808 = vmin.xlane.f32.xlu0 %v807_v13  ;;  %826 = vmax.xlane.f32.xlu1 %v825_v6  ;;  %v3584_v9 = vld [vmem:[#allocation5 + $0x90] sm:$0xff]   ;;  %v3588_v13 = vld [vmem:[#allocation5 + $0xc8] sm:$0xff]   ;;  %4234 = vst [vmem:[#allocation27_spill] sm:$0xff] %v3620_v19  ;;  %4239 = vst [vmem:[#allocation32_spill] sm:$0xff] %v3638_v21 }
 0x13b   : > { %v3594_v6 = vld [vmem:[#allocation5 + $0x8] sm:$0xff]   ;;  %v3636_v50 = vld [vmem:[#allocation5 + $0x1b0] sm:$0xff]  }
 0x13c   : > { %4238 = vst [vmem:[#allocation31_spill] sm:$0xff] %v3636_v50  ;;  %v3640_v49 = vld [vmem:[#allocation5 + $0x1e8] sm:$0xff]  }
 0x13d   : > { %4240 = vst [vmem:[#allocation33_spill] sm:$0xff] %v3640_v49 }
 0x13f   : > { %2232 = vmatpush3.bf16.xpose.msra.mxu0 %v3530_v2 }
 0x140   : > { %2250 = vmatpush3.bf16.xpose.msra.mxu1 %v3534_v18  ;;  %2233 = vmatprep.subr.bf16.mxu0 %v3542_v29 }
 0x141   : > { %2251 = vmatprep.subr.bf16.mxu1 %v3545_v38 }
 0x147   : > { %2234 = vmatpush3.bf16.xpose.msra.mxu0 %v3558_v26 }
 0x148   : > { %2252 = vmatpush3.bf16.xpose.msra.mxu1 %v3560_v27  ;;  %2235 = vmatprep.subr.bf16.mxu0 %v3562_v28 }
 0x149   : > { %2253 = vmatprep.subr.bf16.mxu1 %v3564_v33 }
 0x14f   : > { %2236 = vmatpush3.bf16.xpose.msra.mxu0 %v3570_v39 }
 0x150   : > { %2254 = vmatpush3.bf16.xpose.msra.mxu1 %v3572_v43  ;;  %2237 = vmatprep.subr.bf16.mxu0 %v3574_v45 }
 0x151   : > { %2255 = vmatprep.subr.bf16.mxu1 %v3576_v7 }
 0x157   : > { %2238 = vmatpush3.bf16.xpose.msra.mxu0 %v3582_v8 }
 0x158   : > { %2256 = vmatpush3.bf16.xpose.msra.mxu1 %v3584_v9  ;;  %2239 = vmatprep.subr.bf16.mxu0 %v3586_v11 }
 0x159   : > { %2257 = vmatprep.subr.bf16.mxu1 %v3588_v13 }
 0x15f   : > { %2240 = vmatpush3.bf16.xpose.msra.mxu0 %v3594_v6 }
 0x160   : > { %2258 = vmatpush3.bf16.xpose.msra.mxu1 %v3596_v46  ;;  %2241 = vmatprep.subr.bf16.mxu0 %v3598_v47 }
 0x161   : > { %2259 = vmatprep.subr.bf16.mxu1 %v3600_v1 }
 0x167   : > { %2242 = vmatpush3.bf16.xpose.msra.mxu0 %v3606_v0 }
 0x168   : > { %2260 = vmatpush3.bf16.xpose.msra.mxu1 %v3608_v20  ;;  %2263 = vmatprep.subr.bf16.mxu0 %v3610_v17 }
 0x169   : > { %2281 = vmatprep.subr.bf16.mxu1 %v3612_v25 }
 0x16e   : > { %2244 = vmatmul.mubr.bf16.vlgmr.msra.gmra.mxu0 %v3512_v31 }
 0x16f   : > { %2262 = vmatmul.mubr.bf16.vlgmr.msra.gmra.mxu1 %v3512_v31  ;;  %2264 = vmatpush3.bf16.xpose.msra.mxu0 %v3618_v23  ;;  %v3652_v23 = vld [vmem:[#allocation5 + $0x1e0] sm:$0xff]  }
 0x170   : > { %2282 = vmatpush3.bf16.xpose.msra.mxu1 %v3620_v19  ;;  %2265 = vmatprep.subr.bf16.mxu0 %v3622_v16  ;;  %v3648_v16 = vld [vmem:[#allocation5 + $0x1a8] sm:$0xff]   ;;  %v3650_v19 = vld [vmem:[#allocation5 + $0x160] sm:$0xff]   ;;  %4244 = vst [vmem:[#allocation37_spill] sm:$0xff] %v3652_v23 }
 0x171   : > { %2283 = vmatprep.subr.bf16.mxu1 %v3624_v48  ;;  %2279 = vmatprep.mubr.bf16.mxu0 %v3512_v31  ;;  %v3646_v48 = vld [vmem:[#allocation5 + $0x128] sm:$0xff]   ;;  %4242 = vst [vmem:[#allocation35_spill] sm:$0xff] %v3648_v16  ;;  %4243 = vst [vmem:[#allocation36_spill] sm:$0xff] %v3650_v19 }
 0x172   : > { %2297 = vmatprep.mubr.bf16.mxu1 %v3512_v31  ;;  %4241 = vst [vmem:[#allocation34_spill] sm:$0xff] %v3646_v48 }
 0x177   : > { %2266 = vmatpush3.bf16.xpose.msra.mxu0 %v3634_v24  ;;  %v3664_v24 = vld [vmem:[#allocation5 + $0x1d8] sm:$0xff]  }
 0x178   : > { %2284 = vmatpush3.bf16.xpose.msra.mxu1 %v3636_v50  ;;  %2267 = vmatprep.subr.bf16.mxu0 %v3638_v21  ;;  %v3658_v50 = vld [vmem:[#allocation5 + $0x120] sm:$0xff]   ;;  %4248 = vst [vmem:[#allocation41_spill] sm:$0xff] %v3664_v24 }
 0x179   : > { %2285 = vmatprep.subr.bf16.mxu1 %v3640_v49  ;;  %4245 = vst [vmem:[#allocation38_spill] sm:$0xff] %v3658_v50  ;;  %v3660_v21 = vld [vmem:[#allocation5 + $0x1a0] sm:$0xff]   ;;  %v3662_v49 = vld [vmem:[#allocation5 + $0x158] sm:$0xff]  }
 0x17a   : > { %4246 = vst [vmem:[#allocation39_spill] sm:$0xff] %v3660_v21  ;;  %4247 = vst [vmem:[#allocation40_spill] sm:$0xff] %v3662_v49 }
 0x17f   : > { %2268 = vmatpush3.bf16.xpose.msra.mxu0 %v3646_v48  ;;  %v3676_v48 = vld [vmem:[#allocation5 + $0x1d0] sm:$0xff]  }
 0x180   : > { %2286 = vmatpush3.bf16.xpose.msra.mxu1 %v3648_v16  ;;  %2269 = vmatprep.subr.bf16.mxu0 %v3650_v19  ;;  %v3670_v16 = vld [vmem:[#allocation5 + $0x118] sm:$0xff]   ;;  %4252 = vst [vmem:[#allocation45_spill] sm:$0xff] %v3676_v48 }
 0x181   : > { %2287 = vmatprep.subr.bf16.mxu1 %v3652_v23  ;;  %4249 = vst [vmem:[#allocation42_spill] sm:$0xff] %v3670_v16  ;;  %v3672_v19 = vld [vmem:[#allocation5 + $0x198] sm:$0xff]   ;;  %v3674_v23 = vld [vmem:[#allocation5 + $0x150] sm:$0xff]  }
 0x182   : > { %4250 = vst [vmem:[#allocation43_spill] sm:$0xff] %v3672_v19  ;;  %4251 = vst [vmem:[#allocation44_spill] sm:$0xff] %v3674_v23 }
 0x187   : > { %2270 = vmatpush3.bf16.xpose.msra.mxu0 %v3658_v50  ;;  %v3688_v50 = vld [vmem:[#allocation5 + $0x1c8] sm:$0xff]  }
 0x188   : > { %2288 = vmatpush3.bf16.xpose.msra.mxu1 %v3660_v21  ;;  %2271 = vmatprep.subr.bf16.mxu0 %v3662_v49  ;;  %v3682_v21 = vld [vmem:[#allocation5 + $0x110] sm:$0xff]  }
 0x189   : > { %2289 = vmatprep.subr.bf16.mxu1 %v3664_v24  ;;  %v3684_v49 = vld [vmem:[#allocation5 + $0x190] sm:$0xff]   ;;  %v3686_v24 = vld [vmem:[#allocation5 + $0x148] sm:$0xff]  }
 0x18a   : > { %4253 = vst [vmem:[#allocation46_spill] sm:$0xff] %v3684_v49  ;;  %4254 = vst [vmem:[#allocation47_spill] sm:$0xff] %v3686_v24 }
 0x18f   : > { %2272 = vmatpush3.bf16.xpose.msra.mxu0 %v3670_v16  ;;  %v3700_v16 = vld [vmem:[#allocation5 + $0x1c0] sm:$0xff]  }
 0x190   : > { %2290 = vmatpush3.bf16.xpose.msra.mxu1 %v3672_v19  ;;  %2273 = vmatprep.subr.bf16.mxu0 %v3674_v23  ;;  %v3694_v19 = vld [vmem:[#allocation5 + $0x108] sm:$0xff]  }
 0x191   : > { %2291 = vmatprep.subr.bf16.mxu1 %v3676_v48  ;;  %v3696_v23 = vld [vmem:[#allocation5 + $0x188] sm:$0xff]   ;;  %v3698_v48 = vld [vmem:[#allocation5 + $0x140] sm:$0xff]  }
 0x197   : > { %2274 = vmatpush3.bf16.xpose.msra.mxu0 %v3682_v21 }
 0x198   : > { %2292 = vmatpush3.bf16.xpose.msra.mxu1 %v3684_v49  ;;  %2275 = vmatprep.subr.bf16.mxu0 %v3686_v24  ;;  %v3706_v49 = vld [vmem:[#allocation5 + $0x100] sm:$0xff]  }
 0x199   : > { %2293 = vmatprep.subr.bf16.mxu1 %v3688_v50  ;;  %v3708_v24 = vld [vmem:[#allocation5 + $0x180] sm:$0xff]  }
 0x19f   : > { %2276 = vmatpush3.bf16.xpose.msra.mxu0 %v3694_v19 }
 0x1a0   : > { %2294 = vmatpush3.bf16.xpose.msra.mxu1 %v3696_v23  ;;  %2277 = vmatprep.subr.bf16.mxu0 %v3698_v48 }
 0x1a1   : > { %2295 = vmatprep.subr.bf16.mxu1 %v3700_v16 }
 0x1a7   : > { %2278 = vmatpush3.bf16.xpose.msra.mxu0 %v3706_v49 }
 0x1a8   : > { %2296 = vmatpush3.bf16.xpose.msra.mxu1 %v3708_v24  ;;  %2299 = vmatprep.subr.bf16.mxu0 %v3476_v3 }
 0x1a9   : > { %2321 = vmatprep.subr.bf16.mxu1 %v3478_v4 }
 0x1ae   : > { %2280 = vmatmul.mubr.bf16.vlgmr.msra.gmra.mxu0 %v3512_v31 }
 0x1af   : > { %2298 = vmatmul.mubr.bf16.vlgmr.msra.gmra.mxu1 %v3512_v31  ;;  %2300 = vmatpush3.bf16.msra.mxu0 %v3481_v5 }
 0x1b0   : > { %2322 = vmatpush3.bf16.msra.mxu1 %v3487_v10  ;;  %2301 = vmatprep.subr.bf16.mxu0 %v3491_v12 }
 0x1b1   : > { %2323 = vmatprep.subr.bf16.mxu1 %v3494_v14 }
 0x1b3   : > { %2302 = vmatpush3.bf16.msra.mxu0 %v3498_v15 }
 0x1b4   : > { %2324 = vmatpush3.bf16.msra.mxu1 %v3500_v22  ;;  %2303 = vmatprep.subr.bf16.mxu0 %v3510_v30 }
 0x1b5   : > { %2325 = vmatprep.subr.bf16.mxu1 %v3514_v32 }
 0x1b7   : > { %2304 = vmatpush3.bf16.msra.mxu0 %v3530_v2 }
 0x1b8   : > { %2326 = vmatpush3.bf16.msra.mxu1 %v3534_v18  ;;  %2305 = vmatprep.subr.bf16.mxu0 %v3542_v29 }
 0x1b9   : > { %2327 = vmatprep.subr.bf16.mxu1 %v3545_v38 }
 0x1bb   : > { %2306 = vmatpush3.bf16.msra.mxu0 %v3558_v26 }
 0x1bc   : > { %2328 = vmatpush3.bf16.msra.mxu1 %v3560_v27  ;;  %2307 = vmatprep.subr.bf16.mxu0 %v3562_v28 }
 0x1bd   : > { %2329 = vmatprep.subr.bf16.mxu1 %v3564_v33 }
 0x1be   : > { %v3748_v12 = vpop.xlane.xlu0 %799  ;;  %v3754_v15 = vpop.xlane.xlu1 %817 }
 0x1bf   : > { %2308 = vmatpush3.bf16.msra.mxu0 %v3570_v39 }
 0x1c0   : > { %2330 = vmatpush3.bf16.msra.mxu1 %v3572_v43  ;;  %2309 = vmatprep.subr.bf16.mxu0 %v3574_v45 }
 0x1c1   : > { %2331 = vmatprep.subr.bf16.mxu1 %v3576_v7 }
 0x1c3   : > { %2310 = vmatpush3.bf16.msra.mxu0 %v3582_v8  ;;  %v3769_v38 = vpop.xlane.xlu1 %826 }
 0x1c4   : > { %2332 = vmatpush3.bf16.msra.mxu1 %v3584_v9  ;;  %2311 = vmatprep.subr.bf16.mxu0 %v3586_v11 }
 0x1c5   : > { %2333 = vmatprep.subr.bf16.mxu1 %v3588_v13 }
 0x1c7   : > { %2312 = vmatpush3.bf16.msra.mxu0 %v3594_v6 }
 0x1c8   : > { %2334 = vmatpush3.bf16.msra.mxu1 %v3596_v46  ;;  %2313 = vmatprep.subr.bf16.mxu0 %v3598_v47 }
 0x1c9   : > { %2335 = vmatprep.subr.bf16.mxu1 %v3600_v1 }
 0x1cb   : > { %2314 = vmatpush3.bf16.msra.mxu0 %v3606_v0 }
 0x1cc   : > { %2336 = vmatpush3.bf16.msra.mxu1 %v3608_v20  ;;  %2343 = vmatprep.subr.bf16.mxu0 %v3610_v17 }
 0x1cd   : > { %2365 = vmatprep.subr.bf16.mxu1 %v3612_v25 }
 0x22e   : > { %v1383_v3 = vpop.f32.mrf.mxu0 }
 0x22f   : > { %v1426_v4 = vpop.f32.mrf.mxu1  ;;  %v1521_v46 = vsub.f32 %v3135_v63, %v1383_v3 }
 0x230   : > { %v1385_v5 = vpop.f32.mrf.mxu0  ;;  %v1523_v47 = vsub.f32 %v3127_v61, %v1426_v4  ;;  %v3761_v61 = vpop.xlane.xlu0 %808 }
 0x231   : > { %v1428_v10 = vpop.f32.mrf.mxu1  ;;  %v1522_v1 = vsub.f32 %v3131_v62, %v1385_v5  ;;  %v1537_v22 = vmax.f32 %v3748_v12, %v1521_v46 }
 0x232   : > { %v1387_v14 = vpop.f32.mrf.mxu0  ;;  %v1524_v0 = vsub.f32 %v3123_v60, %v1428_v10  ;;  %v1539_v30 = vmax.f32 %v3748_v12, %v1523_v47 }
 0x233   : > { %v1430_v20 = vpop.f32.mrf.mxu1  ;;  %v1529_v17 = vsub.f32 %v3103_v55, %v1387_v14  ;;  %v1538_v31 = vmax.f32 %v3748_v12, %v1522_v1  ;;  %v1553_v2 = vmin.f32 %v3754_v15, %v1537_v22 }
 0x234   : > { %v1389_v25 = vpop.f32.mrf.mxu0  ;;  %v1540_v63 = vmax.f32 %v3748_v12, %v1524_v0  ;;  %v1531_v62 = vsub.f32 %v3095_v53, %v1430_v20  ;;  %v1555_v55 = vmin.f32 %v3754_v15, %v1539_v30 }
 0x235   : > { %v1432_v32 = vpop.f32.mrf.mxu1  ;;  %v1530_v60 = vsub.f32 %v3099_v54, %v1389_v25  ;;  %v1545_v18 = vmax.f32 %v3761_v61, %v1529_v17  ;;  %v1554_v26 = vmin.f32 %v3754_v15, %v1538_v31  ;;  %v3776_v54 = vsub.f32 %v1553_v2, %v3271_v40 }
 0x236   : > { %v1532_v29 = vsub.f32 %v3091_v52, %v1432_v32  ;;  %v1556_v27 = vmin.f32 %v3754_v15, %v1540_v63  ;;  %v1547_v28 = vmax.f32 %v3761_v61, %v1531_v62  ;;  %v3779_v33 = vsub.f32 %v1555_v55, %v3275_v42 }
 0x237   : > { %v1546_v53 = vmax.f32 %v3761_v61, %v1530_v60  ;;  %v1561_v39 = vmin.f32 %v3769_v38, %v1545_v18  ;;  %v3784_v43 = vsub.f32 %v1554_v26, %v3259_v34  ;;  %v1585_v9 = vand.u32 2147483647, %v3776_v54  ;;  %v4255_v26 = vld [vmem:[#allocation24_spill] sm:$0xff] }
 0x238   : > { %v1548_v52 = vmax.f32 %v3761_v61, %v1532_v29  ;;  %v3787_v45 = vsub.f32 %v1556_v27, %v3263_v36  ;;  %v1563_v7 = vmin.f32 %v3769_v38, %v1547_v28  ;;  %v1587_v11 = vand.u32 2147483647, %v3779_v33 }
 0x239   : > { %v1562_v8 = vmin.f32 %v3769_v38, %v1546_v53  ;;  %v3794_v13 = vsub.f32 %v1561_v39, %v3273_v41  ;;  %v1586_v3 = vand.u32 2147483647, %v3784_v43  ;;  %v4256_v53 = vld [vmem:[#allocation17_spill] sm:$0xff] }
 0x23a   : > { %v1588_v4 = vand.u32 2147483647, %v3787_v45  ;;  %v1564_v5 = vmin.f32 %v3769_v38, %v1548_v52  ;;  %v3801_v47 = vsub.f32 %v1563_v7, %v3279_v44  ;;  %v1601_v22 = vmax.f32.f32 %v1585_v9, %v1587_v11  ;;  %v4258_v11 = vld [vmem:[#allocation19_spill] sm:$0xff] }
 0x23b   : > { %v3805_v0 = vsub.f32 %v1562_v8, %v3261_v35  ;;  %v1593_v30 = vand.u32 2147483647, %v3794_v13 }
 0x23c   : > { %v1602_v62 = vmax.f32.f32 %v1586_v3, %v1588_v4  ;;  %v1595_v55 = vand.u32 2147483647, %v3801_v47  ;;  %v4259_v4 = vld [vmem:[#allocation23_spill] sm:$0xff] }
 0x23d   : > { %v1594_v28 = vand.u32 2147483647, %v3805_v0 }
 0x26e   : > { %v1469_v6 = vpop.f32.mrf.mxu0 }
 0x26f   : > { %v1525_v10 = vsub.f32 %v3119_v59, %v1469_v6  ;;  %v1512_v46 = vpop.f32.mrf.mxu1 }
 0x270   : > { %v1527_v14 = vsub.f32 %v3111_v57, %v1512_v46  ;;  %v1471_v1 = vpop.f32.mrf.mxu0  ;;  %v3813_v57 = vsub.f32 %v1564_v5, %v3265_v37  ;;  %v4260_v46 = vld [vmem:[#allocation13_spill] sm:$0xff] }
 0x271   : > { %v1541_v20 = vmax.f32 %v3748_v12, %v1525_v10  ;;  %v1526_v17 = vsub.f32 %v3115_v58, %v1471_v1  ;;  %v1514_v25 = vpop.f32.mrf.mxu1 }
 0x272   : > { %v1543_v59 = vmax.f32 %v3748_v12, %v1527_v14  ;;  %v1528_v31 = vsub.f32 %v3107_v56, %v1514_v25  ;;  %v1473_v63 = vpop.f32.mrf.mxu0 }
 0x273   : > { %v1557_v32 = vmin.f32 %v3754_v15, %v1541_v20  ;;  %v1542_v60 = vmax.f32 %v3748_v12, %v1526_v17  ;;  %v1533_v2 = vsub.f32 %v3087_v51, %v1473_v63  ;;  %v1516_v58 = vpop.f32.mrf.mxu1  ;;  %v4257_v51 = vld [vmem:[#allocation25_spill] sm:$0xff]  ;;  %v4261_v17 = vld [vmem:[#allocation15_spill] sm:$0xff] }
 0x274   : > { %v1559_v18 = vmin.f32 %v3754_v15, %v1543_v59  ;;  %v1544_v29 = vmax.f32 %v3748_v12, %v1528_v31  ;;  %v1535_v56 = vsub.f32 %v4255_v26, %v1516_v58  ;;  %v1475_v27 = vpop.f32.mrf.mxu0 }
 0x275   : > { %v3824_v39 = vsub.f32 %v1557_v32, %v4256_v53  ;;  %v1558_v52 = vmin.f32 %v3754_v15, %v1542_v60  ;;  %v1549_v7 = vmax.f32 %v3761_v61, %v1533_v2  ;;  %v1534_v8 = vsub.f32 %v4257_v51, %v1475_v27  ;;  %v1518_v9 = vpop.f32.mrf.mxu1  ;;  %v4262_v32 = vld [vmem:[#allocation18_spill] sm:$0xff] }
 0x276   : > { %v3830_v6 = vsub.f32 %v1559_v18, %v4258_v11  ;;  %v1560_v12 = vmin.f32 %v3754_v15, %v1544_v29  ;;  %v1551_v3 = vmax.f32 %v3761_v61, %v1535_v56  ;;  %v1536_v5 = vsub.f32 %v4259_v4, %v1518_v9  ;;  %v4263_v18 = vld [vmem:[#allocation20_spill] sm:$0xff] }
 0x277   : > { %v1589_v10 = vand.u32 2147483647, %v3824_v39  ;;  %v1574_v14 = vsub.f32 %v1558_v52, %v4260_v46  ;;  %v1565_v1 = vmin.f32 %v3769_v38, %v1549_v7  ;;  %v1550_v20 = vmax.f32 %v3761_v61, %v1534_v8  ;;  %v4265_v9 = vld [vmem:[#allocation16_spill] sm:$0xff] }
 0x278   : > { %v1576_v25 = vsub.f32 %v1560_v12, %v4261_v17  ;;  %v1567_v59 = vmin.f32 %v3769_v38, %v1551_v3  ;;  %v1552_v31 = vmax.f32 %v3761_v61, %v1536_v5  ;;  %v1596_v15 = vand.u32 2147483647, %v3813_v57  ;;  %v4264_v61 = vld [vmem:[#allocation14_spill] sm:$0xff] }
 0x279   : > { %v1590_v63 = vand.u32 2147483647, %v1574_v14  ;;  %v3844_v60 = vsub.f32 %v1565_v1, %v4262_v32  ;;  %v1566_v2 = vmin.f32 %v3769_v38, %v1550_v20  ;;  %v1603_v58 = vmax.f32.f32 %v1601_v22, %v1589_v10 }
 0x27a   : > { %v3848_v29 = vsub.f32 %v1567_v59, %v4263_v18  ;;  %v1568_v26 = vmin.f32 %v3769_v38, %v1552_v31  ;;  %v1591_v56 = vand.u32 2147483647, %v3830_v6  ;;  %v1610_v27 = vmax.f32.f32 %v1593_v30, %v1595_v55 }
 0x27b   : > { %v1597_v52 = vand.u32 2147483647, %v3844_v60  ;;  %v1582_v7 = vsub.f32 %v1566_v2, %v4264_v61  ;;  %v1592_v51 = vand.u32 2147483647, %v1576_v25  ;;  %v1604_v8 = vmax.f32.f32 %v1602_v62, %v1590_v63 }
 0x27c   : > { %v1584_v12 = vsub.f32 %v1568_v26, %v4265_v9  ;;  %v1611_v3 = vmax.f32.f32 %v1594_v28, %v1596_v15  ;;  %v1605_v5 = vmax.f32.f32 %v1603_v58, %v1591_v56  ;;  %v1599_v20 = vand.u32 2147483647, %v3848_v29 }
 0x27d   : > { %v1598_v4 = vand.u32 2147483647, %v1582_v7  ;;  %v1606_v22 = vmax.f32.f32 %v1604_v8, %v1592_v51  ;;  %v1612_v10 = vmax.f32.f32 %v1610_v27, %v1597_v52 }
 0x27e   : > { %v1600_v38 = vand.u32 2147483647, %v1584_v12 }
 0x27f   : > { %v1607_v1 = vmax.f32.f32 %v1605_v5, %v1606_v22  ;;  %v1613_v59 = vmax.f32.f32 %v1611_v3, %v1598_v4  ;;  %v1614_v30 = vmax.f32.f32 %v1612_v10, %v1599_v20 }
 0x281   : > { %1608 = vmax.xlane.f32.xlu0 %v1607_v1  ;;  %v1615_v55 = vmax.f32.f32 %v1613_v59, %v1600_v38 }
 0x283   : > { %v1616_v31 = vmax.f32.f32 %v1614_v30, %v1615_v55 }
 0x285   : > { %1617 = vmax.xlane.f32.xlu1 %v1616_v31 }
 0x30a   : > { %v1609_v2 = vpop.xlane.xlu0 %1608 }
 0x30b   : > { %2839 = vrcp.f32 %v1609_v2  ;;  %vm1619_vm0 = vcmp.gt.f32.partialorder %v1609_v2, 0.007843138 }
 0x30e   : > { %v1618_v62 = vpop.xlane.xlu1 %1617 }
 0x30f   : > { %2841 = vrcp.f32 %v1618_v62  ;;  %vm1620_vm1 = vcmp.gt.f32.partialorder %v1618_v62, 0.007843138 }
 0x318   : > { %v2840_v63 = vpop.eup %2839 }
 0x319   : > { %v1622_v28 = vmul.f32 0.007843138, %v2840_v63 }
 0x31b   : > { %v3856_v15 = vsel %vm1619_vm0, %v1622_v28, 1.0 }
 0x31c   : > { %v2842_v58 = vpop.eup %2841  ;;  %v1628_v26 = vmul.f32 %v3856_v15, %v3784_v43  ;;  %v1630_v56 = vmul.f32 %v3856_v15, %v3787_v45  ;;  %v1627_v27 = vmul.f32 %v3856_v15, %v3776_v54  ;;  %v1629_v52 = vmul.f32 %v3856_v15, %v3779_v33 }
 0x31d   : > { %v1624_v51 = vmul.f32 0.007843138, %v2842_v58  ;;  %v1632_v8 = vmul.f32 %v3856_v15, %v1574_v14  ;;  %v1634_v3 = vmul.f32 %v3856_v15, %v1576_v25 }
 0x31e   : > { %v1644_v4 = vadd.f32 %v1628_v26, %v3259_v34  ;;  %v1646_v5 = vadd.f32 %v1630_v56, %v3263_v36  ;;  %v1643_v43 = vadd.f32 %v1627_v27, %v3271_v40  ;;  %v1645_v45 = vadd.f32 %v1629_v52, %v3275_v42 }
 0x31f   : > { %v3872_v22 = vsel %vm1620_vm1, %v1624_v51, 1.0  ;;  %v1648_v55 = vadd.f32 %v1632_v8, %v4260_v46 }
 0x320   : > { %v1636_v54 = vmul.f32 %v3872_v22, %v3805_v0  ;;  %v1660_v33 = vmax.f32 %v1644_v4, 0.0  ;;  %v1638_v10 = vmul.f32 %v3872_v22, %v3813_v57  ;;  %v1662_v14 = vmax.f32 %v1646_v5, 0.0 }
 0x321   : > { %v1635_v25 = vmul.f32 %v3872_v22, %v3794_v13  ;;  %v1659_v1 = vmax.f32 %v1643_v43, 0.0  ;;  %v1637_v20 = vmul.f32 %v3872_v22, %v3801_v47  ;;  %v1661_v38 = vmax.f32 %v1645_v45, 0.0 }
 0x322   : > { %v1652_v59 = vadd.f32 %v1636_v54, %v3261_v35  ;;  %v1654_v30 = vadd.f32 %v1638_v10, %v3265_v37  ;;  %v1650_v0 = vadd.f32 %v1634_v3, %v4261_v17  ;;  %v3886_v62 = vmin.f32 %v1660_v33, 1.0  }
 0x323   : > { %v3888_v57 = vmin.f32 %v1662_v14, 1.0   ;;  %v1651_v31 = vadd.f32 %v1635_v25, %v3273_v41  ;;  %v1653_v13 = vadd.f32 %v1637_v20, %v3279_v44  ;;  %v3892_v47 = vmin.f32 %v1659_v1, 1.0  }
 0x324   : > { %v4266_v4 = vmov %v3886_v62  ;;  %v1668_v2 = vmax.f32 %v1652_v59, 0.0  ;;  %v1670_v63 = vmax.f32 %v1654_v30, 0.0  ;;  %v1640_v28 = vmul.f32 %v3872_v22, %v1582_v7  ;;  %v4276_v59 = vld [vmem:[#allocation27_spill] sm:$0xff] }
 0x325   : > { %v4267_v5 = vmov %v3888_v57  ;;  %v4268_v45 = vmov %v3892_v47  ;;  %v1667_v58 = vmax.f32 %v1651_v31, 0.0  ;;  %v1669_v26 = vmax.f32 %v1653_v13, 0.0  ;;  %v4278_v57 = vld [vmem:[#allocation29_spill] sm:$0xff]  ;;  %v4279_v31 = vld [vmem:[#allocation30_spill] sm:$0xff]  ;;  %v4280_v13 = vld [vmem:[#allocation31_spill] sm:$0xff] }
 0x326   : > { %v3895_v56 = vmin.f32 %v1661_v38, 1.0   ;;  %v1642_v46 = vmul.f32 %v3872_v22, %v1584_v12  ;;  %v3898_v54 = vmin.f32 %v1668_v2, 1.0   ;;  %v3900_v52 = vmin.f32 %v1670_v63, 1.0   ;;  %v4275_v38 = vld [vmem:[#allocation26_spill] sm:$0xff]  ;;  %v4281_v2 = vld [vmem:[#allocation32_spill] sm:$0xff]  ;;  %v4282_v63 = vld [vmem:[#allocation33_spill] sm:$0xff] }
 0x327   : > { %v1656_v62 = vadd.f32 %v1640_v28, %v4264_v61  ;;  %v1664_v51 = vmax.f32 %v1648_v55, 0.0  ;;  %v3903_v55 = vmin.f32 %v1667_v58, 1.0   ;;  %v3905_v43 = vmin.f32 %v1669_v26, 1.0   ;;  %v4283_v47 = vld [vmem:[#allocation34_spill] sm:$0xff]  ;;  %v4284_v28 = vld [vmem:[#allocation35_spill] sm:$0xff]  ;;  %v4286_v26 = vld [vmem:[#allocation37_spill] sm:$0xff] }
 0x328   : > { %v4269_v8 = vmov %v3895_v56  ;;  %v4270_v17 = vmov %v3898_v54  ;;  %v4271_v27 = vmov %v3900_v52  ;;  %v1658_v33 = vadd.f32 %v1642_v46, %v4265_v9  ;;  %v4288_v46 = vld [vmem:[#allocation39_spill] sm:$0xff] }
 0x329   : > { %v4272_v3 = vmov %v3903_v55  ;;  %v1666_v7 = vmax.f32 %v1650_v0, 0.0  ;;  %v1692_v10 = vpack.c.bf16 %v4270_v17, %v4266_v4  ;;  %v1694_v12 = vpack.c.bf16 %v4271_v27, %v4267_v5  ;;  %v4277_v0 = vld [vmem:[#allocation28_spill] sm:$0xff] }
 0x32a   : > { %v1672_v14 = vmax.f32 %v1656_v62, 0.0  ;;  %v1691_v52 = vpack.c.bf16 %v4272_v3, %v4268_v45  ;;  %v1693_v61 = vpack.c.bf16 %v3905_v43, %v4269_v8  ;;  %v1674_v54 = vmax.f32 %v1658_v33, 0.0  ;;  %v4289_v62 = vld [vmem:[#allocation40_spill] sm:$0xff] }
 0x32b   : > { %1738 = vmatprep.mubr.bf16.mxu0 %v1692_v10  ;;  %1779 = vmatprep.mubr.bf16.mxu1 %v1694_v12  ;;  %v3916_v58 = vmin.f32 %v1664_v51, 1.0   ;;  %v3920_v56 = vmin.f32 %v1666_v7, 1.0   ;;  %v4290_v51 = vld [vmem:[#allocation41_spill] sm:$0xff]  ;;  %v1639_v33 = vmul.f32 %v3872_v22, %v3844_v60  ;;  %v1641_v7 = vmul.f32 %v3872_v22, %v3848_v29 }
 0x32c   : > { %v3918_v9 = vmin.f32 %v1672_v14, 1.0   ;;  %1739 = vmatmul.mubr.bf16.vlgmr.msra.gmra.mxu0 %v1691_v52  ;;  %1780 = vmatmul.mubr.bf16.vlgmr.msra.gmra.mxu1 %v1693_v61  ;;  %v3922_v20 = vmin.f32 %v1674_v54, 1.0   ;;  %v1631_v10 = vmul.f32 %v3856_v15, %v3824_v39  ;;  %v1633_v12 = vmul.f32 %v3856_v15, %v3830_v6  ;;  %v4291_v14 = vld [vmem:[#allocation42_spill] sm:$0xff]  ;;  %v4292_v52 = vld [vmem:[#allocation43_spill] sm:$0xff]  ;;  %v4293_v61 = vld [vmem:[#allocation44_spill] sm:$0xff] }
 0x32d   : > { %v4273_v25 = vmov %v3916_v58  ;;  %v4274_v1 = vmov %v3920_v56  ;;  %2344 = vmatpush3.bf16.msra.mxu0 %v4275_v38  ;;  %2366 = vmatpush3.bf16.msra.mxu1 %v4276_v59  ;;  %v4285_v58 = vld [vmem:[#allocation36_spill] sm:$0xff]  ;;  %v4287_v56 = vld [vmem:[#allocation38_spill] sm:$0xff]  ;;  %v4294_v54 = vld [vmem:[#allocation45_spill] sm:$0xff]  ;;  %v1655_v38 = vadd.f32 %v1639_v33, %v4262_v32  ;;  %v1657_v60 = vadd.f32 %v1641_v7, %v4263_v18 }
 0x32e   : > { %v1696_v30 = vpack.c.bf16 %v3918_v9, %v4273_v25  ;;  %v1698_v55 = vpack.c.bf16 %v3922_v20, %v4274_v1  ;;  %2345 = vmatprep.subr.bf16.mxu0 %v4277_v0  ;;  %2367 = vmatprep.subr.bf16.mxu1 %v4278_v57  ;;  %v1647_v29 = vadd.f32 %v1631_v10, %v4256_v53  ;;  %v4295_v39 = vld [vmem:[#allocation46_spill] sm:$0xff]  ;;  %v4296_v6 = vld [vmem:[#allocation47_spill] sm:$0xff] }
 0x32f   : > { %v1649_v22 = vadd.f32 %v1633_v12, %v4258_v11  ;;  %v1671_v15 = vmax.f32 %v1655_v38, 0.0  ;;  %v1673_v59 = vmax.f32 %v1657_v60, 0.0 }
 0x330   : > { %1820 = vmatprep.mubr.bf16.mxu0 %v1696_v30  ;;  %1861 = vmatprep.mubr.bf16.mxu1 %v1698_v55  ;;  %v1663_v30 = vmax.f32 %v1647_v29, 0.0 }
 0x331   : > { %2346 = vmatpush3.bf16.msra.mxu0 %v4279_v31  ;;  %2368 = vmatpush3.bf16.msra.mxu1 %v4280_v13  ;;  %v1665_v55 = vmax.f32 %v1649_v22, 0.0  ;;  %v3970_v53 = vmin.f32 %v1673_v59, 1.0  }
 0x332   : > { %2347 = vmatprep.subr.bf16.mxu0 %v4281_v2  ;;  %2369 = vmatprep.subr.bf16.mxu1 %v4282_v63  ;;  %v3972_v59 = vmin.f32 %v1663_v30, 1.0  }
 0x333   : > { %v4298_v11 = vmov %v3970_v53  ;;  %v3974_v57 = vmin.f32 %v1665_v55, 1.0  }
 0x334   : > { %v4299_v0 = vmov %v3972_v59 }
 0x335   : > { %2348 = vmatpush3.bf16.msra.mxu0 %v4283_v47  ;;  %2370 = vmatpush3.bf16.msra.mxu1 %v4284_v28  ;;  %v4300_v32 = vmov %v3974_v57 }
 0x336   : > { %2349 = vmatprep.subr.bf16.mxu0 %v4285_v58  ;;  %2371 = vmatprep.subr.bf16.mxu1 %v4286_v26 }
 0x339   : > { %2350 = vmatpush3.bf16.msra.mxu0 %v4287_v56  ;;  %2372 = vmatpush3.bf16.msra.mxu1 %v4288_v46 }
 0x33a   : > { %2351 = vmatprep.subr.bf16.mxu0 %v4289_v62  ;;  %2373 = vmatprep.subr.bf16.mxu1 %v4290_v51  ;;  %v3968_v51 = vmin.f32 %v1671_v15, 1.0  }
 0x33d   : > { %2352 = vmatpush3.bf16.msra.mxu0 %v4291_v14  ;;  %2374 = vmatpush3.bf16.msra.mxu1 %v4292_v52 }
 0x33e   : > { %2353 = vmatprep.subr.bf16.mxu0 %v4293_v61  ;;  %2375 = vmatprep.subr.bf16.mxu1 %v4294_v54 }
 0x341   : > { %2354 = vmatpush3.bf16.msra.mxu0 %v3682_v21  ;;  %2376 = vmatpush3.bf16.msra.mxu1 %v4295_v39  ;;  %v4297_v21 = vmov %v3968_v51 }
 0x342   : > { %2355 = vmatprep.subr.bf16.mxu0 %v4296_v6  ;;  %2377 = vmatprep.subr.bf16.mxu1 %v3688_v50 }
 0x345   : > { %2356 = vmatpush3.bf16.msra.mxu0 %v3694_v19  ;;  %2378 = vmatpush3.bf16.msra.mxu1 %v3696_v23  ;;  %v1695_v19 = vpack.c.bf16 %v4297_v21, %v4299_v0  ;;  %v1697_v23 = vpack.c.bf16 %v4298_v11, %v4300_v32 }
 0x346   : > { %2357 = vmatprep.subr.bf16.mxu0 %v3698_v48  ;;  %2379 = vmatprep.subr.bf16.mxu1 %v3700_v16 }
 0x349   : > { %2358 = vmatpush3.bf16.msra.mxu0 %v3706_v49  ;;  %2380 = vmatpush3.bf16.msra.mxu1 %v3708_v24  ;;  %v2136_v49 = vld [vmem:[%s4131_s3] ss:$0 sm:$0xff] }
 0x34c   : > { %1821 = vmatmul.mubr.bf16.vlgmr.msra.gmra.mxu0 %v1695_v19  ;;  %1862 = vmatmul.mubr.bf16.vlgmr.msra.gmra.mxu1 %v1697_v23 }
 0x3ec   : > { %v2315_v16 = vpop.f32.mrf.mxu0  ;;  %v2337_v48 = vpop.f32.mrf.mxu1 }
 0x3ee   : > { %v2316_v50 = vpop.f32.mrf.mxu0  ;;  %v2338_v18 = vpop.f32.mrf.mxu1 }
 0x3ef   : > { %v2317_v2 = vadd.f32 %v2316_v50, %v2315_v16  ;;  %v2339_v26 = vadd.f32 %v2338_v18, %v2337_v48 }
 0x3f0   : > { %v2318_v31 = vpop.f32.mrf.mxu0  ;;  %v2340_v13 = vpop.f32.mrf.mxu1 }
 0x3f1   : > { %v1741_v63 = vadd.f32 %v2317_v2, %v2136_v49 }
 0x3f2   : > { %v2319_v24 = vpop.f32.mrf.mxu0  ;;  %v2341_v57 = vpop.f32.mrf.mxu1 }
 0x3f3   : > { %v2320_v47 = vadd.f32 %v2319_v24, %v2318_v31  ;;  %v1782_v62 = vadd.f32 %v2339_v26, %v1741_v63  ;;  %v2342_v12 = vadd.f32 %v2341_v57, %v2340_v13  ;;  %v4301_v57 = vld [vmem:[#allocation11_spill] sm:$0xff]  ;;  %v4302_v26 = vld [vmem:[#allocation12_spill] sm:$0xff] }
 0x3f5   : > { %v1744_v51 = vadd.f32 %v2320_v47, %v2136_v49 }
 0x3f7   : > { %v1785_v38 = vadd.f32 %v2342_v12, %v1744_v51  ;;  %v3211_v12 = vmov 0.0  }
 0x40c   : > { %v2359_v28 = vpop.f32.mrf.mxu0  ;;  %v2381_v58 = vpop.f32.mrf.mxu1 }
 0x40e   : > { %v2360_v56 = vpop.f32.mrf.mxu0  ;;  %v2382_v46 = vpop.f32.mrf.mxu1 }
 0x40f   : > { %v2361_v33 = vadd.f32 %v2360_v56, %v2359_v28  ;;  %v2383_v52 = vadd.f32 %v2382_v46, %v2381_v58 }
 0x410   : > { %v2362_v7 = vpop.f32.mrf.mxu0  ;;  %v2384_v10 = vpop.f32.mrf.mxu1 }
 0x411   : > { %v1823_v14 = vadd.f32 %v2361_v33, %v1782_v62 }
 0x412   : > { %v2363_v61 = vpop.f32.mrf.mxu0  ;;  %v2385_v54 = vpop.f32.mrf.mxu1 }
 0x413   : > { %v1864_v2 = vadd.f32 %v2383_v52, %v1823_v14   ;;  %v2364_v60 = vadd.f32 %v2363_v61, %v2362_v7  ;;  %v2386_v39 = vadd.f32 %v2385_v54, %v2384_v10  ;;  %v4303_v52 = vld [vmem:[#allocation22_spill] sm:$0xff] }
 0x415   : > { %v2391_v29 = vcvt.f32.s32 %v1864_v2  ;;  %v1826_v22 = vadd.f32 %v2364_v60, %v1785_v38  ;;  %v2389_v59 = vand.u32 2147483647, %v1864_v2  ;;  %v2394_v53 = vand.u32 2147483648, %v1864_v2  ;;  %v4304_v38 = vld [vmem:[#allocation21_spill] sm:$0xff] }
 0x417   : > { %v1867_v6 = vadd.f32 %v2386_v39, %v1826_v22   ;;  %v2392_v15 = vcvt.s32.f32 %v2391_v29  ;;  %vm2390_vm2 = vcmp.lt.f32.partialorder %v2389_v59, 8388608.0 }
 0x419   : > { %v2399_v30 = vcvt.f32.s32 %v1867_v6  ;;  %v2393_v55 = vand.u32 2147483647, %v2392_v15  ;;  %v2397_v16 = vand.u32 2147483647, %v1867_v6  ;;  %v2402_v18 = vand.u32 2147483648, %v1867_v6 }
 0x41b   : > { %v2395_v19 = vor.u32 %v2394_v53, %v2393_v55  ;;  %v2400_v23 = vcvt.s32.f32 %v2399_v30  ;;  %vm2398_vm3 = vcmp.lt.f32.partialorder %v2397_v16, 8388608.0  ;;  %v4311_v53 = vmov %v3905_v43 }
 0x41c   : > { %v4313_v55 = vmov %v4272_v3 }
 0x41d   : > { %v2396_v48 = vsel %vm2390_vm2, %v2395_v19, %v1864_v2  ;;  %v2401_v50 = vand.u32 2147483647, %v2400_v23 }
 0x41e   : > { %v1872_v31 = vmax.f32 %v2396_v48, 0.0  ;;  %v4306_v48 = vmov %v3922_v20 }
 0x41f   : > { %v2403_v13 = vor.u32 %v2402_v18, %v2401_v50  ;;  %v4308_v50 = vmov %v3918_v9 }
 0x420   : > { %v1874_v49 = vmin.f32 %v1872_v31, 1.0 }
 0x421   : > { %v2404_v24 = vsel %vm2398_vm3, %v2403_v13, %v1867_v6 }
 0x422   : > { %v1876_v63 = vsub.f32 %v1874_v49, %v4301_v57  ;;  %v1873_v47 = vmax.f32 %v2404_v24, 0.0  ;;  %v4307_v49 = vmov %v4298_v11  ;;  %v4315_v57 = vmov %v4300_v32 }
 0x424   : > { %v1878_v28 = vand.u32 2147483647, %v1876_v63  ;;  %v1875_v58 = vmin.f32 %v1873_v47, 1.0  ;;  %v4321_v63 = vmov %v4268_v45 }
 0x426   : > { %1880 = vadd.xlane.f32.xlu0 %v1878_v28  ;;  %v1877_v56 = vsub.f32 %v1875_v58, %v4302_v26  ;;  %v4316_v58 = vmov %v4273_v25 }
 0x428   : > { %v1879_v46 = vand.u32 2147483647, %v1877_v56  ;;  %v4314_v56 = vmov %v4274_v1 }
 0x42a   : > { %1882 = vadd.xlane.f32.xlu1 %v1879_v46 }
 0x4af   : > { %v1881_v62 = vpop.xlane.xlu0 %1880 }
 0x4b0   : > { %v1884_v51 = vmul.f32 0.0078125, %v1881_v62  ;;  %v4320_v62 = vmov %v4266_v4 }
 0x4b2   : > { %v1886_v33 = vsub.f32 1.0, %v1884_v51  ;;  %v4309_v51 = vmov %v4297_v21 }
 0x4b3   : > { %v1883_v7 = vpop.xlane.xlu1 %1882 }
 0x4b4   : > { %vm1888_vm4 = vcmp.ge.f32.partialorder %v1886_v33, 0.99  ;;  %v1885_v10 = vmul.f32 0.0078125, %v1883_v7 }
 0x4b5   : > { %v2137_v14 = vsel %vm1888_vm4, 1.0, %v3211_v12 }
 0x4b6   : > { %v1894_v47 = vmax.f32 %v4303_v52, %v2137_v14   ;;  %v1887_v61 = vsub.f32 1.0, %v1885_v10  ;;  %v4310_v52 = vmov %v4271_v27 }
 0x4b8   : > { %vm1889_vm5 = vcmp.ge.f32.partialorder %v1887_v61, 0.99  ;;  %v4319_v61 = vmov %v4269_v8 }
 0x4b9   : > { %v2138_v54 = vsel %vm1889_vm5, 1.0, %v3211_v12 }
 0x4ba   : > { %v1895_v46 = vmax.f32 %v4304_v38, %v2138_v54   ;;  %v4312_v54 = vmov %v4270_v17 }
 0x4bc   : > { %v779_v60 = vmin.f32 %v1894_v47, %v1895_v46 }
 0x4be   : > { %v780_v29 = vrot.slane %v779_v60, 4 }
 0x4c0   : > { %v781_v22 = vmin.f32 %v779_v60, %v780_v29  ;;  %v4318_v60 = vmov %v4267_v5 }
 0x4c2   : > { %v782_v39 = vrot.slane %v781_v22, 2 }
 0x4c4   : > { %v783_v15 = vmin.f32 %v781_v22, %v782_v39 }
 0x4c6   : > { %v784_v59 = vrot.slane %v783_v15, 1 }
 0x4c8   : > { %v785_v30 = vmin.f32 %v783_v15, %v784_v59  ;;  %v4317_v59 = vmov %v4299_v0 }
 0x4ca   : > { %2405 = vpush %v785_v30 }
 0x4fb   : > { %s2406_s10 = spop %2405 }
 0x4fc   : > { %p787_p12 = scmp.lt.f32.partialorder %s2406_s10, 0.5 }
 0x4fe   : > { %p3992_p13 = pnand %p787_p12, %p778_p11 }
 0x4ff   :  { %v4323_v14 = vmov (%p3992_p13), %v3922_v20  ;;  %v4324_v15 = vmov (%p3992_p13), %v4298_v11  ;;  %v4325_v18 = vmov (%p3992_p13), %v3918_v9  ;;  %v4326_v22 = vmov (%p3992_p13), %v4297_v21 }
 0x500   :  { %791 = sbr.rel (!%p3992_p13) target bundleno = 300 (0x12c), region = 51  ;;  %v4327_v26 = vmov (%p3992_p13), %v4271_v27  ;;  %v4328_v27 = vmov (%p3992_p13), %v3905_v43  ;;  %v4329_v28 = vmov (%p3992_p13), %v4270_v17  ;;  %v4330_v29 = vmov (%p3992_p13), %v4272_v3 }
 0x501   :  { %v4331_v30 = vmov (%p3992_p13), %v4274_v1  ;;  %v4332_v31 = vmov (%p3992_p13), %v4300_v32  ;;  %v4333_v32 = vmov (%p3992_p13), %v4273_v25  ;;  %v4334_v33 = vmov (%p3992_p13), %v4299_v0 }
 0x502   :  { %v4335_v38 = vmov (%p3992_p13), %v4267_v5  ;;  %v4336_v39 = vmov (%p3992_p13), %v4269_v8  ;;  %v4337_v43 = vmov (%p3992_p13), %v4266_v4 }
 0x505 PF:  { %1897 = vst [vmem:[#allocation7] sm:$0xff] %v3203_v45  ;;  %1898 = vst [vmem:[#allocation7 + $0x8] sm:$0xff] %v3199_v43  ;;  %s3212_s3 = smov [#allocation7]   ;;  %v3203_v45 = vphi %v4201_v45, %v4268_v45   ;;  %v3199_v43 = vphi %v4200_v43, %v4337_v43   ;;  %v3195_v39 = vphi %v4199_v39, %v4336_v39   ;;  %v3191_v38 = vphi %v4198_v38, %v4335_v38   ;;  %v3187_v33 = vphi %v4197_v33, %v4334_v33   ;;  %v3183_v32 = vphi %v4196_v32, %v4333_v32   ;;  %v3179_v31 = vphi %v4195_v31, %v4332_v31   ;;  %v3175_v30 = vphi %v4194_v30, %v4331_v30   ;;  %v3171_v29 = vphi %v4193_v29, %v4330_v29   ;;  %v3167_v28 = vphi %v4192_v28, %v4329_v28   ;;  %v3163_v27 = vphi %v4191_v27, %v4328_v27   ;;  %v3159_v26 = vphi %v4190_v26, %v4327_v26   ;;  %v3155_v22 = vphi %v4189_v22, %v4326_v22   ;;  %v3151_v18 = vphi %v4188_v18, %v4325_v18   ;;  %v3147_v15 = vphi %v4187_v15, %v4324_v15   ;;  %v3143_v14 = vphi %v4186_v14, %v4323_v14  }
 0x506   :  { %1899 = vst [vmem:[#allocation7 + $0x10] sm:$0xff] %v3195_v39  ;;  %1900 = vst [vmem:[#allocation7 + $0x18] sm:$0xff] %v3191_v38  ;;  %s1918_s12 = sshll.u32 %s3212_s3, 4  ;;  %s1919_s12 = int_to_ptr.vmem [resolvable:$true] %s1918_s12 }
 0x507   :  { %1901 = vst [vmem:[#allocation7 + $0x20] sm:$0xff] %v3187_v33  ;;  %1902 = vst [vmem:[#allocation7 + $0x28] sm:$0xff] %v3183_v32  ;;  %s2883_s13 = scalar_lea.vmem %s1919_s12, 2048  ;;  %p2888_p1 = scmp.lt.s32.totalorder %s1919_s12, %s1919_s12 }
 0x508   :  { %1903 = vst [vmem:[#allocation7 + $0x30] sm:$0xff] %v3179_v31  ;;  %1904 = vst [vmem:[#allocation7 + $0x38] sm:$0xff] %v3175_v30  ;;  %p2884_p0 = scmp.ne.s32.totalorder %s1919_s12, %s2883_s13  ;;  %p2889_p2 = scmp.lt.s32.totalorder %s2883_s13, %s2883_s13 }
 0x509   :  { %1905 = vst [vmem:[#allocation7 + $0x40] sm:$0xff] %v3171_v29  ;;  %1906 = vst [vmem:[#allocation7 + $0x48] sm:$0xff] %v3167_v28 }
 0x50a   :  { %1907 = vst [vmem:[#allocation7 + $0x50] sm:$0xff] %v3163_v27  ;;  %1908 = vst [vmem:[#allocation7 + $0x58] sm:$0xff] %v3159_v26  ;;  %p2890_p3 = por %p2889_p2, %p2888_p1 }
 0x50b   :  { %1909 = vst [vmem:[#allocation7 + $0x60] sm:$0xff] %v3155_v22  ;;  %1910 = vst [vmem:[#allocation7 + $0x68] sm:$0xff] %v3151_v18 }
 0x50c   :  { %1911 = vst [vmem:[#allocation7 + $0x70] sm:$0xff] %v3147_v15  ;;  %1912 = vst [vmem:[#allocation7 + $0x78] sm:$0xff] %v3143_v14  ;;  %p2891_p4 = pnand %p2890_p3, %p2884_p0 }
 0x50e   :  { %2894 = shalt.err (!%p2891_p4)
}
 0x50f   :  { %1924 = dma.vmem_to_hbm [thread:$0]  %s1919_s12, 2048, %s4132_s4, [#allocation4], %s3206_s18, %s3206_s18, %s3207_s19  }
 0x510   :  { %3055 = dma.done.wait [#allocation4], 2048  }
 0x511   :  { %3056 = vsyncadd [#allocation4], 4294965248 }
 0x512   :  { %1928 = vsyncpa [#allocation3], 1 }
 0x513   :  { %1929 = vsyncpa [#allocation6], 1 }
 0x514   :  { %1930 = vsyncpa [#allocation4], 1 }

</bundles_post_ra>
